<compile_context>
chip_gen: v6e
topology: v6e:2x2x1
jax: 0.10.0
libtpu: 0.0.40
codegen_flags: <defaults>
</compile_context>

<pallas_src>
import functools

import jax
import jax.numpy as jnp
import numpy as np
from jax.experimental import pallas as pl
from jax.experimental.pallas import tpu as pltpu


def _round_up(n, m):
    return (n + m - 1) // m * m


# ----------------------------------------------------------------------------
# Fused kernel: conv stem (9 shifted MXU taps) + bias + ReLU + GAP
#               -> fc -> softmax(dim=-1) -> regressor
# ----------------------------------------------------------------------------
def _make_kernel(*, BT, H, W, Cin, KH, KW, F_PAD):
    HW = H * W
    inv_hw = 1.0 / float(HW)   # static constant -> plain multiply, no runtime divide

    def kernel(xs_ref, wconv_ref, bconv_ref, wfc_ref, bfc_ref, wreg_ref, breg_ref,
               cls_ref, reg_ref, feats_ref):
        # xs_ref   : (BT, KW, (H+KH-1)*W, Cin) bf16   width-pre-shifted padded image
        # wconv_ref: (KH*KW, Cin, F_PAD)        bf16   one (Cin, F) slab per conv tap
        # bconv_ref: (1, F_PAD) f32
        # wfc_ref  : (F_PAD, C_PAD) bf16
        # bfc_ref  : (1, C_PAD) f32   (padded class lanes = -1e30 -> exp() == 0)
        # wreg_ref : (C_PAD, R_PAD) f32 (padded rows zero)
        # breg_ref : (1, R_PAD) f32
        # cls_ref  : (BT, C_PAD) f32   lane-dense output
        # reg_ref  : (BT, R_PAD) f32   lane-dense output
        # feats_ref: (BT, F_PAD) f32   VMEM scratch holding pooled features

        # ---- conv(3x3, pad=1) + bias + ReLU + global average pool -------------
        for b in range(BT):                       # static unroll, BT small
            acc = jnp.zeros((HW, F_PAD), jnp.float32)
            for kh in range(KH):
                for kw in range(KW):
                    # aligned contiguous slice: rows (h+kh)*W + w for the (h, w) grid
                    lhs = xs_ref[b, kw, kh * W:kh * W + HW, :]      # (HW, Cin) bf16
                    acc = acc + jnp.dot(lhs, wconv_ref[kh * KW + kw],
                                        preferred_element_type=jnp.float32)
            acc = jnp.maximum(acc + bconv_ref[...], 0.0)            # f32 bias + ReLU
            feats_ref[b:b + 1, :] = (
                jnp.sum(acc, axis=0, keepdims=True) * inv_hw)       # GAP

        feats = feats_ref[...]                                      # (BT, F_PAD) f32

        # ---- head: fc -> softmax(dim=-1) -> regressor --------------------------
        logits = jnp.dot(feats.astype(jnp.bfloat16), wfc_ref[...],
                         preferred_element_type=jnp.float32) + bfc_ref[...]
        m = jnp.max(logits, axis=-1, keepdims=True)
        e = jnp.exp(logits - m)          # padded lanes: exp(-1e30 - m) == 0 exactly
        denom = jnp.sum(e, axis=-1, keepdims=True)
        probs = e * pl.reciprocal(denom, approx=True)   # EUP reciprocal (free slot)
        cls_ref[...] = probs.astype(cls_ref.dtype)

        reg = jnp.dot(probs, wreg_ref[...],
                      preferred_element_type=jnp.float32) + breg_ref[...]
        reg_ref[...] = reg.astype(reg_ref.dtype)

    return kernel


# ----------------------------------------------------------------------------
# Wrapper: padding / lane-dense layout plumbing + pallas_call
# ----------------------------------------------------------------------------
def dld2_forward_impl(x_nhwc, params, *, batch_tile=8):
    B, H, W, Cin = x_nhwc.shape
    KH, KW, _, F = params["w_conv"].shape
    C = params["w_fc"].shape[1]
    R = params["w_reg"].shape[1]

    F_PAD = _round_up(F, 128)
    C_PAD = _round_up(C, 128)
    R_PAD = _round_up(R, 128)

    BT = min(batch_tile, B)          # batch elements per grid step
    NB = pl.cdiv(B, BT)
    BP = NB * BT
    ph, pw = (KH - 1) // 2, (KW - 1) // 2
    Hp = H + 2 * ph

    f32, bf16 = jnp.float32, jnp.bfloat16

    # Padded image; batch padded up to a multiple of the batch tile (zeros, sliced out).
    xpad = jnp.pad(x_nhwc.astype(f32),
                   ((0, BP - B), (ph, ph), (pw, pw), (0, 0)))       # (BP, Hp, Wp, Cin)
    # Width-pre-shifted stack (KW copies, bf16): keeps every in-kernel access an aligned
    # 2-D slice and costs ~KW/2 x the f32 input bytes vs 9x for a full f32 im2col.
    xs = jnp.stack([xpad[:, :, kw:kw + W, :] for kw in range(KW)], axis=1)
    xs = xs.reshape(BP, KW, Hp * W, Cin).astype(bf16)

    # Conv weights / bias, F padded to 128 (zero pad -> padded features are exactly 0).
    w_conv = jnp.pad(params["w_conv"].astype(f32),
                     ((0, 0), (0, 0), (0, 0), (0, F_PAD - F)))
    w_conv = w_conv.reshape(KH * KW, Cin, F_PAD).astype(bf16)
    b_conv = jnp.pad(params["b_conv"].astype(f32), ((0, F_PAD - F),)).reshape(1, F_PAD)

    # fc: zero-pad extra feature rows; padded class lanes get bias -1e30 so the softmax
    # denominator is unchanged (exp underflows to 0).
    w_fc = jnp.pad(params["w_fc"].astype(f32),
                   ((0, F_PAD - F), (0, C_PAD - C))).astype(bf16)
    b_fc = jnp.pad(params["b_fc"].astype(f32), ((0, C_PAD - C),),
                   constant_values=-1e30).reshape(1, C_PAD)

    # Regressor: padded prob lanes are exactly 0, so zero-padded rows keep it exact.
    w_reg = jnp.pad(params["w_reg"].astype(f32), ((0, C_PAD - C), (0, R_PAD - R)))
    b_reg = jnp.pad(params["b_reg"].astype(f32), ((0, R_PAD - R),)).reshape(1, R_PAD)

    kernel = _make_kernel(BT=BT, H=H, W=W, Cin=Cin, KH=KH, KW=KW, F_PAD=F_PAD)

    cls_p, reg_p = pl.pallas_call(
        kernel,
        out_shape=(jax.ShapeDtypeStruct((BP, C_PAD), f32),
                   jax.ShapeDtypeStruct((BP, R_PAD), f32)),
        grid=(NB,),
        in_specs=[
            pl.BlockSpec((BT, KW, Hp * W, Cin), lambda i: (i, 0, 0, 0)),
            pl.BlockSpec((KH * KW, Cin, F_PAD), lambda i: (0, 0, 0)),
            pl.BlockSpec((1, F_PAD), lambda i: (0, 0)),
            pl.BlockSpec((F_PAD, C_PAD), lambda i: (0, 0)),
            pl.BlockSpec((1, C_PAD), lambda i: (0, 0)),
            pl.BlockSpec((C_PAD, R_PAD), lambda i: (0, 0)),
            pl.BlockSpec((1, R_PAD), lambda i: (0, 0)),
        ],
        out_specs=(
            pl.BlockSpec((BT, C_PAD), lambda i: (i, 0)),
            pl.BlockSpec((BT, R_PAD), lambda i: (i, 0)),
        ),
        scratch_shapes=[pltpu.VMEM((BT, F_PAD), f32)],
        compiler_params=pltpu.CompilerParams(
            dimension_semantics=("parallel",),          # batch tiles are independent
            vmem_limit_bytes=32 * 1024 * 1024,          # generous headroom, safe on all gens
        ),
    )(xs, w_conv, b_conv, w_fc, b_fc, w_reg, b_reg)

    # Slice padded lanes / padded batch rows back to the module's real output widths.
    return cls_p[:B, :C], reg_p[:B, :R]


dld2_forward = jax.jit(dld2_forward_impl)


# ----------------------------------------------------------------------------
# Pure-JAX reference (matches the kernel's bf16 MXU operands, exact softmax)
# ----------------------------------------------------------------------------
def _reference(x_nhwc, params):
    f32, bf16 = jnp.float32, jnp.bfloat16
    B, H, W, Cin = x_nhwc.shape
    KH, KW, _, F = params["w_conv"].shape
    xp = jnp.pad(x_nhwc.astype(f32), ((0, 0), (1, 1), (1, 1), (0, 0)))
    cols = [xp[:, kh:kh + H, kw:kw + W, :] for kh in range(KH) for kw in range(KW)]
    patches = jnp.concatenate(cols, axis=-1).reshape(B, H * W, KH * KW * Cin)
    patches = patches.astype(bf16).astype(f32)
    w2d = params["w_conv"].astype(bf16).astype(f32).reshape(KH * KW * Cin, F)
    acts = jax.nn.relu(
        jnp.einsum("bpk,kf->bpf", patches, w2d, precision="highest")
        + params["b_conv"][None, None, :])
    feats = jnp.mean(acts, axis=1)
    w_fc = params["w_fc"].astype(bf16).astype(f32)
    logits = jnp.dot(feats.astype(bf16).astype(f32), w_fc,
                     precision="highest") + params["b_fc"]
    probs = jax.nn.softmax(logits, axis=-1)
    reg = jnp.dot(probs, params["w_reg"], precision="highest") + params["b_reg"]
    return probs, reg


if __name__ == "__main__":
    # Small shapes consistent with the module: RGB image input, F features,
    # n_class_distribution classes, n_regression regression outputs.
    B, H, W, Cin = 2, 16, 16, 3
    F = 32                      # stands in for resnest50 fc.in_features (2048)
    n_class_distribution = 8
    n_regression = 4

    key = jax.random.PRNGKey(0)
    kx, kc, kbc, kfc, kbfc, kr, kbr = jax.random.split(key, 7)

    x_nhwc = jax.random.normal(kx, (B, H, W, Cin), dtype=jnp.float32)

    params = {
        "w_conv": 0.1 * jax.random.normal(kc, (3, 3, Cin, F), dtype=jnp.float32),
        "b_conv": 0.1 * jax.random.normal(kbc, (F,), dtype=jnp.float32),
        "w_fc": 0.1 * jax.random.normal(kfc, (F, n_class_distribution), dtype=jnp.float32),
        "b_fc": 0.1 * jax.random.normal(kbfc, (n_class_distribution,), dtype=jnp.float32),
        "w_reg": 0.1 * jax.random.normal(kr, (n_class_distribution, n_regression), dtype=jnp.float32),
        "b_reg": 0.1 * jax.random.normal(kbr, (n_regression,), dtype=jnp.float32),
    }

    class_scores, regression_score = dld2_forward(x_nhwc, params)
    jax.block_until_ready((class_scores, regression_score))

    # Tolerances account for bf16 MXU operands and the EUP approx reciprocal in softmax.
    ref_cls, ref_reg = _reference(x_nhwc, params)
    np.testing.assert_allclose(np.asarray(class_scores), np.asarray(ref_cls),
                               rtol=1e-2, atol=5e-4)
    np.testing.assert_allclose(np.asarray(regression_score), np.asarray(ref_reg),
                               rtol=1e-2, atol=5e-4)

    # Sanity: lane-padding must not corrupt the softmax normalization.
    np.testing.assert_allclose(np.asarray(class_scores).sum(-1), np.ones(B),
                               rtol=0.0, atol=5e-3)

    assert class_scores.shape == (B, n_class_distribution)
    assert regression_score.shape == (B, n_regression)
    print("KERNEL_OK")
</pallas_src>

<mosaic_0001>
module attributes {stable_mosaic.version = 11 : i64} {
  func.func @kernel(%arg0: i32, %arg1: memref<2x3x288x3xbf16, #tpu.memory_space<vmem>>, %arg2: memref<9x3x128xbf16, #tpu.memory_space<vmem>>, %arg3: memref<1x128xf32, #tpu.memory_space<vmem>>, %arg4: memref<128x128xbf16, #tpu.memory_space<vmem>>, %arg5: memref<1x128xf32, #tpu.memory_space<vmem>>, %arg6: memref<128x128xf32, #tpu.memory_space<vmem>>, %arg7: memref<1x128xf32, #tpu.memory_space<vmem>>, %arg8: memref<2x128xf32, #tpu.memory_space<vmem>>, %arg9: memref<2x128xf32, #tpu.memory_space<vmem>>, %arg10: memref<2x128xf32, #tpu.memory_space<vmem>>) attributes {dimension_semantics = [#tpu.dimension_semantics<parallel>], iteration_bounds = array<i64: 1>, scalar_prefetch = 0 : i64, scratch_operands = 1 : i64, tpu.core_type = #tpu.core_type<tc>, window_params = [{transform_indices = @transform_0, window_bounds = array<i64: 2, 3, 288, 3>}, {pipeline_mode = #tpu.pipeline_mode<synchronous>, transform_indices = @transform_1, window_bounds = array<i64: 9, 3, 128>}, {pipeline_mode = #tpu.pipeline_mode<synchronous>, transform_indices = @transform_2, window_bounds = array<i64: 1, 128>}, {pipeline_mode = #tpu.pipeline_mode<synchronous>, transform_indices = @transform_3, window_bounds = array<i64: 128, 128>}, {pipeline_mode = #tpu.pipeline_mode<synchronous>, transform_indices = @transform_4, window_bounds = array<i64: 1, 128>}, {pipeline_mode = #tpu.pipeline_mode<synchronous>, transform_indices = @transform_5, window_bounds = array<i64: 128, 128>}, {pipeline_mode = #tpu.pipeline_mode<synchronous>, transform_indices = @transform_6, window_bounds = array<i64: 1, 128>}, {transform_indices = @transform_7, window_bounds = array<i64: 2, 128>}, {transform_indices = @transform_8, window_bounds = array<i64: 2, 128>}]} {
    %cst = arith.constant 0.000000e+00 : f32
    %0 = vector.broadcast %cst : f32 to vector<256x128xf32>
    %c0 = arith.constant 0 : index
    %c0_0 = arith.constant 0 : index
    %c0_1 = arith.constant 0 : index
    %c0_2 = arith.constant 0 : index
    %1 = vector.load %arg1[%c0, %c0_0, %c0_1, %c0_2] : memref<2x3x288x3xbf16, #tpu.memory_space<vmem>>, vector<1x1x256x3xbf16>
    %2 = vector.shape_cast %1 : vector<1x1x256x3xbf16> to vector<256x3xbf16>
    %c0_3 = arith.constant 0 : index
    %c0_4 = arith.constant 0 : index
    %c0_5 = arith.constant 0 : index
    %3 = vector.load %arg2[%c0_3, %c0_4, %c0_5] : memref<9x3x128xbf16, #tpu.memory_space<vmem>>, vector<1x3x128xbf16>
    %4 = vector.shape_cast %3 : vector<1x3x128xbf16> to vector<3x128xbf16>
    %cst_6 = arith.constant dense<0.000000e+00> : vector<256x128xf32>
    %5 = tpu.matmul %2, %4, %cst_6 {dimension_numbers = #tpu.dot_dimension_numbers<[1], [0], [0], [1], [0, 0, 1, 1], [], []>} : vector<256x3xbf16>, vector<3x128xbf16>, vector<256x128xf32> -> vector<256x128xf32>
    %6 = arith.addf %0, %5 : vector<256x128xf32>
    %c0_7 = arith.constant 0 : index
    %c1 = arith.constant 1 : index
    %c0_8 = arith.constant 0 : index
    %c0_9 = arith.constant 0 : index
    %7 = vector.load %arg1[%c0_7, %c1, %c0_8, %c0_9] : memref<2x3x288x3xbf16, #tpu.memory_space<vmem>>, vector<1x1x256x3xbf16>
    %8 = vector.shape_cast %7 : vector<1x1x256x3xbf16> to vector<256x3xbf16>
    %c1_10 = arith.constant 1 : index
    %c0_11 = arith.constant 0 : index
    %c0_12 = arith.constant 0 : index
    %9 = vector.load %arg2[%c1_10, %c0_11, %c0_12] : memref<9x3x128xbf16, #tpu.memory_space<vmem>>, vector<1x3x128xbf16>
    %10 = vector.shape_cast %9 : vector<1x3x128xbf16> to vector<3x128xbf16>
    %cst_13 = arith.constant dense<0.000000e+00> : vector<256x128xf32>
    %11 = tpu.matmul %8, %10, %cst_13 {dimension_numbers = #tpu.dot_dimension_numbers<[1], [0], [0], [1], [0, 0, 1, 1], [], []>} : vector<256x3xbf16>, vector<3x128xbf16>, vector<256x128xf32> -> vector<256x128xf32>
    %12 = arith.addf %6, %11 : vector<256x128xf32>
    %c0_14 = arith.constant 0 : index
    %c2 = arith.constant 2 : index
    %c0_15 = arith.constant 0 : index
    %c0_16 = arith.constant 0 : index
    %13 = vector.load %arg1[%c0_14, %c2, %c0_15, %c0_16] : memref<2x3x288x3xbf16, #tpu.memory_space<vmem>>, vector<1x1x256x3xbf16>
    %14 = vector.shape_cast %13 : vector<1x1x256x3xbf16> to vector<256x3xbf16>
    %c2_17 = arith.constant 2 : index
    %c0_18 = arith.constant 0 : index
    %c0_19 = arith.constant 0 : index
    %15 = vector.load %arg2[%c2_17, %c0_18, %c0_19] : memref<9x3x128xbf16, #tpu.memory_space<vmem>>, vector<1x3x128xbf16>
    %16 = vector.shape_cast %15 : vector<1x3x128xbf16> to vector<3x128xbf16>
    %cst_20 = arith.constant dense<0.000000e+00> : vector<256x128xf32>
    %17 = tpu.matmul %14, %16, %cst_20 {dimension_numbers = #tpu.dot_dimension_numbers<[1], [0], [0], [1], [0, 0, 1, 1], [], []>} : vector<256x3xbf16>, vector<3x128xbf16>, vector<256x128xf32> -> vector<256x128xf32>
    %18 = arith.addf %12, %17 : vector<256x128xf32>
    %c0_21 = arith.constant 0 : index
    %c0_22 = arith.constant 0 : index
    %c16 = arith.constant 16 : index
    %c0_23 = arith.constant 0 : index
    %19 = vector.load %arg1[%c0_21, %c0_22, %c16, %c0_23] : memref<2x3x288x3xbf16, #tpu.memory_space<vmem>>, vector<1x1x256x3xbf16>
    %20 = vector.shape_cast %19 : vector<1x1x256x3xbf16> to vector<256x3xbf16>
    %c3 = arith.constant 3 : index
    %c0_24 = arith.constant 0 : index
    %c0_25 = arith.constant 0 : index
    %21 = vector.load %arg2[%c3, %c0_24, %c0_25] : memref<9x3x128xbf16, #tpu.memory_space<vmem>>, vector<1x3x128xbf16>
    %22 = vector.shape_cast %21 : vector<1x3x128xbf16> to vector<3x128xbf16>
    %cst_26 = arith.constant dense<0.000000e+00> : vector<256x128xf32>
    %23 = tpu.matmul %20, %22, %cst_26 {dimension_numbers = #tpu.dot_dimension_numbers<[1], [0], [0], [1], [0, 0, 1, 1], [], []>} : vector<256x3xbf16>, vector<3x128xbf16>, vector<256x128xf32> -> vector<256x128xf32>
    %24 = arith.addf %18, %23 : vector<256x128xf32>
    %c0_27 = arith.constant 0 : index
    %c1_28 = arith.constant 1 : index
    %c16_29 = arith.constant 16 : index
    %c0_30 = arith.constant 0 : index
    %25 = vector.load %arg1[%c0_27, %c1_28, %c16_29, %c0_30] : memref<2x3x288x3xbf16, #tpu.memory_space<vmem>>, vector<1x1x256x3xbf16>
    %26 = vector.shape_cast %25 : vector<1x1x256x3xbf16> to vector<256x3xbf16>
    %c4 = arith.constant 4 : index
    %c0_31 = arith.constant 0 : index
    %c0_32 = arith.constant 0 : index
    %27 = vector.load %arg2[%c4, %c0_31, %c0_32] : memref<9x3x128xbf16, #tpu.memory_space<vmem>>, vector<1x3x128xbf16>
    %28 = vector.shape_cast %27 : vector<1x3x128xbf16> to vector<3x128xbf16>
    %cst_33 = arith.constant dense<0.000000e+00> : vector<256x128xf32>
    %29 = tpu.matmul %26, %28, %cst_33 {dimension_numbers = #tpu.dot_dimension_numbers<[1], [0], [0], [1], [0, 0, 1, 1], [], []>} : vector<256x3xbf16>, vector<3x128xbf16>, vector<256x128xf32> -> vector<256x128xf32>
    %30 = arith.addf %24, %29 : vector<256x128xf32>
    %c0_34 = arith.constant 0 : index
    %c2_35 = arith.constant 2 : index
    %c16_36 = arith.constant 16 : index
    %c0_37 = arith.constant 0 : index
    %31 = vector.load %arg1[%c0_34, %c2_35, %c16_36, %c0_37] : memref<2x3x288x3xbf16, #tpu.memory_space<vmem>>, vector<1x1x256x3xbf16>
    %32 = vector.shape_cast %31 : vector<1x1x256x3xbf16> to vector<256x3xbf16>
    %c5 = arith.constant 5 : index
    %c0_38 = arith.constant 0 : index
    %c0_39 = arith.constant 0 : index
    %33 = vector.load %arg2[%c5, %c0_38, %c0_39] : memref<9x3x128xbf16, #tpu.memory_space<vmem>>, vector<1x3x128xbf16>
    %34 = vector.shape_cast %33 : vector<1x3x128xbf16> to vector<3x128xbf16>
    %cst_40 = arith.constant dense<0.000000e+00> : vector<256x128xf32>
    %35 = tpu.matmul %32, %34, %cst_40 {dimension_numbers = #tpu.dot_dimension_numbers<[1], [0], [0], [1], [0, 0, 1, 1], [], []>} : vector<256x3xbf16>, vector<3x128xbf16>, vector<256x128xf32> -> vector<256x128xf32>
    %36 = arith.addf %30, %35 : vector<256x128xf32>
    %c0_41 = arith.constant 0 : index
    %c0_42 = arith.constant 0 : index
    %c32 = arith.constant 32 : index
    %c0_43 = arith.constant 0 : index
    %37 = vector.load %arg1[%c0_41, %c0_42, %c32, %c0_43] : memref<2x3x288x3xbf16, #tpu.memory_space<vmem>>, vector<1x1x256x3xbf16>
    %38 = vector.shape_cast %37 : vector<1x1x256x3xbf16> to vector<256x3xbf16>
    %c6 = arith.constant 6 : index
    %c0_44 = arith.constant 0 : index
    %c0_45 = arith.constant 0 : index
    %39 = vector.load %arg2[%c6, %c0_44, %c0_45] : memref<9x3x128xbf16, #tpu.memory_space<vmem>>, vector<1x3x128xbf16>
    %40 = vector.shape_cast %39 : vector<1x3x128xbf16> to vector<3x128xbf16>
    %cst_46 = arith.constant dense<0.000000e+00> : vector<256x128xf32>
    %41 = tpu.matmul %38, %40, %cst_46 {dimension_numbers = #tpu.dot_dimension_numbers<[1], [0], [0], [1], [0, 0, 1, 1], [], []>} : vector<256x3xbf16>, vector<3x128xbf16>, vector<256x128xf32> -> vector<256x128xf32>
    %42 = arith.addf %36, %41 : vector<256x128xf32>
    %c0_47 = arith.constant 0 : index
    %c1_48 = arith.constant 1 : index
    %c32_49 = arith.constant 32 : index
    %c0_50 = arith.constant 0 : index
    %43 = vector.load %arg1[%c0_47, %c1_48, %c32_49, %c0_50] : memref<2x3x288x3xbf16, #tpu.memory_space<vmem>>, vector<1x1x256x3xbf16>
    %44 = vector.shape_cast %43 : vector<1x1x256x3xbf16> to vector<256x3xbf16>
    %c7 = arith.constant 7 : index
    %c0_51 = arith.constant 0 : index
    %c0_52 = arith.constant 0 : index
    %45 = vector.load %arg2[%c7, %c0_51, %c0_52] : memref<9x3x128xbf16, #tpu.memory_space<vmem>>, vector<1x3x128xbf16>
    %46 = vector.shape_cast %45 : vector<1x3x128xbf16> to vector<3x128xbf16>
    %cst_53 = arith.constant dense<0.000000e+00> : vector<256x128xf32>
    %47 = tpu.matmul %44, %46, %cst_53 {dimension_numbers = #tpu.dot_dimension_numbers<[1], [0], [0], [1], [0, 0, 1, 1], [], []>} : vector<256x3xbf16>, vector<3x128xbf16>, vector<256x128xf32> -> vector<256x128xf32>
    %48 = arith.addf %42, %47 : vector<256x128xf32>
    %c0_54 = arith.constant 0 : index
    %c2_55 = arith.constant 2 : index
    %c32_56 = arith.constant 32 : index
    %c0_57 = arith.constant 0 : index
    %49 = vector.load %arg1[%c0_54, %c2_55, %c32_56, %c0_57] : memref<2x3x288x3xbf16, #tpu.memory_space<vmem>>, vector<1x1x256x3xbf16>
    %50 = vector.shape_cast %49 : vector<1x1x256x3xbf16> to vector<256x3xbf16>
    %c8 = arith.constant 8 : index
    %c0_58 = arith.constant 0 : index
    %c0_59 = arith.constant 0 : index
    %51 = vector.load %arg2[%c8, %c0_58, %c0_59] : memref<9x3x128xbf16, #tpu.memory_space<vmem>>, vector<1x3x128xbf16>
    %52 = vector.shape_cast %51 : vector<1x3x128xbf16> to vector<3x128xbf16>
    %cst_60 = arith.constant dense<0.000000e+00> : vector<256x128xf32>
    %53 = tpu.matmul %50, %52, %cst_60 {dimension_numbers = #tpu.dot_dimension_numbers<[1], [0], [0], [1], [0, 0, 1, 1], [], []>} : vector<256x3xbf16>, vector<3x128xbf16>, vector<256x128xf32> -> vector<256x128xf32>
    %54 = arith.addf %48, %53 : vector<256x128xf32>
    %c0_61 = arith.constant 0 : index
    %c0_62 = arith.constant 0 : index
    %55 = vector.load %arg3[%c0_61, %c0_62] : memref<1x128xf32, #tpu.memory_space<vmem>>, vector<1x128xf32>
    %56 = vector.broadcast %55 : vector<1x128xf32> to vector<256x128xf32>
    %57 = arith.addf %54, %56 : vector<256x128xf32>
    %cst_63 = arith.constant 0.000000e+00 : f32
    %58 = vector.broadcast %cst_63 : f32 to vector<256x128xf32>
    %59 = arith.maximumf %57, %58 : vector<256x128xf32>
    %cst_64 = arith.constant dense<0.000000e+00> : vector<128xf32>
    %60 = vector.multi_reduction <add>, %59, %cst_64 [0] : vector<256x128xf32> to vector<128xf32>
    %61 = vector.shape_cast %60 : vector<128xf32> to vector<1x128xf32>
    %cst_65 = arith.constant 3.906250e-03 : f32
    %62 = vector.broadcast %cst_65 : f32 to vector<1x128xf32>
    %63 = arith.mulf %61, %62 : vector<1x128xf32>
    %c0_66 = arith.constant 0 : index
    %c0_67 = arith.constant 0 : index
    %64 = vector.load %arg10[%c0_66, %c0_67] : memref<2x128xf32, #tpu.memory_space<vmem>>, vector<1x128xf32>
    tpu.vector_store %arg10[%c0_66, %c0_67], %63 {strides = array<i32>} : memref<2x128xf32, #tpu.memory_space<vmem>>, vector<1x128xf32>,
    %cst_68 = arith.constant 0.000000e+00 : f32
    %65 = vector.broadcast %cst_68 : f32 to vector<256x128xf32>
    %c1_69 = arith.constant 1 : index
    %c0_70 = arith.constant 0 : index
    %c0_71 = arith.constant 0 : index
    %c0_72 = arith.constant 0 : index
    %66 = vector.load %arg1[%c1_69, %c0_70, %c0_71, %c0_72] : memref<2x3x288x3xbf16, #tpu.memory_space<vmem>>, vector<1x1x256x3xbf16>
    %67 = vector.shape_cast %66 : vector<1x1x256x3xbf16> to vector<256x3xbf16>
    %c0_73 = arith.constant 0 : index
    %c0_74 = arith.constant 0 : index
    %c0_75 = arith.constant 0 : index
    %68 = vector.load %arg2[%c0_73, %c0_74, %c0_75] : memref<9x3x128xbf16, #tpu.memory_space<vmem>>, vector<1x3x128xbf16>
    %69 = vector.shape_cast %68 : vector<1x3x128xbf16> to vector<3x128xbf16>
    %cst_76 = arith.constant dense<0.000000e+00> : vector<256x128xf32>
    %70 = tpu.matmul %67, %69, %cst_76 {dimension_numbers = #tpu.dot_dimension_numbers<[1], [0], [0], [1], [0, 0, 1, 1], [], []>} : vector<256x3xbf16>, vector<3x128xbf16>, vector<256x128xf32> -> vector<256x128xf32>
    %71 = arith.addf %65, %70 : vector<256x128xf32>
    %c1_77 = arith.constant 1 : index
    %c1_78 = arith.constant 1 : index
    %c0_79 = arith.constant 0 : index
    %c0_80 = arith.constant 0 : index
    %72 = vector.load %arg1[%c1_77, %c1_78, %c0_79, %c0_80] : memref<2x3x288x3xbf16, #tpu.memory_space<vmem>>, vector<1x1x256x3xbf16>
    %73 = vector.shape_cast %72 : vector<1x1x256x3xbf16> to vector<256x3xbf16>
    %c1_81 = arith.constant 1 : index
    %c0_82 = arith.constant 0 : index
    %c0_83 = arith.constant 0 : index
    %74 = vector.load %arg2[%c1_81, %c0_82, %c0_83] : memref<9x3x128xbf16, #tpu.memory_space<vmem>>, vector<1x3x128xbf16>
    %75 = vector.shape_cast %74 : vector<1x3x128xbf16> to vector<3x128xbf16>
    %cst_84 = arith.constant dense<0.000000e+00> : vector<256x128xf32>
    %76 = tpu.matmul %73, %75, %cst_84 {dimension_numbers = #tpu.dot_dimension_numbers<[1], [0], [0], [1], [0, 0, 1, 1], [], []>} : vector<256x3xbf16>, vector<3x128xbf16>, vector<256x128xf32> -> vector<256x128xf32>
    %77 = arith.addf %71, %76 : vector<256x128xf32>
    %c1_85 = arith.constant 1 : index
    %c2_86 = arith.constant 2 : index
    %c0_87 = arith.constant 0 : index
    %c0_88 = arith.constant 0 : index
    %78 = vector.load %arg1[%c1_85, %c2_86, %c0_87, %c0_88] : memref<2x3x288x3xbf16, #tpu.memory_space<vmem>>, vector<1x1x256x3xbf16>
    %79 = vector.shape_cast %78 : vector<1x1x256x3xbf16> to vector<256x3xbf16>
    %c2_89 = arith.constant 2 : index
    %c0_90 = arith.constant 0 : index
    %c0_91 = arith.constant 0 : index
    %80 = vector.load %arg2[%c2_89, %c0_90, %c0_91] : memref<9x3x128xbf16, #tpu.memory_space<vmem>>, vector<1x3x128xbf16>
    %81 = vector.shape_cast %80 : vector<1x3x128xbf16> to vector<3x128xbf16>
    %cst_92 = arith.constant dense<0.000000e+00> : vector<256x128xf32>
    %82 = tpu.matmul %79, %81, %cst_92 {dimension_numbers = #tpu.dot_dimension_numbers<[1], [0], [0], [1], [0, 0, 1, 1], [], []>} : vector<256x3xbf16>, vector<3x128xbf16>, vector<256x128xf32> -> vector<256x128xf32>
    %83 = arith.addf %77, %82 : vector<256x128xf32>
    %c1_93 = arith.constant 1 : index
    %c0_94 = arith.constant 0 : index
    %c16_95 = arith.constant 16 : index
    %c0_96 = arith.constant 0 : index
    %84 = vector.load %arg1[%c1_93, %c0_94, %c16_95, %c0_96] : memref<2x3x288x3xbf16, #tpu.memory_space<vmem>>, vector<1x1x256x3xbf16>
    %85 = vector.shape_cast %84 : vector<1x1x256x3xbf16> to vector<256x3xbf16>
    %c3_97 = arith.constant 3 : index
    %c0_98 = arith.constant 0 : index
    %c0_99 = arith.constant 0 : index
    %86 = vector.load %arg2[%c3_97, %c0_98, %c0_99] : memref<9x3x128xbf16, #tpu.memory_space<vmem>>, vector<1x3x128xbf16>
    %87 = vector.shape_cast %86 : vector<1x3x128xbf16> to vector<3x128xbf16>
    %cst_100 = arith.constant dense<0.000000e+00> : vector<256x128xf32>
    %88 = tpu.matmul %85, %87, %cst_100 {dimension_numbers = #tpu.dot_dimension_numbers<[1], [0], [0], [1], [0, 0, 1, 1], [], []>} : vector<256x3xbf16>, vector<3x128xbf16>, vector<256x128xf32> -> vector<256x128xf32>
    %89 = arith.addf %83, %88 : vector<256x128xf32>
    %c1_101 = arith.constant 1 : index
    %c1_102 = arith.constant 1 : index
    %c16_103 = arith.constant 16 : index
    %c0_104 = arith.constant 0 : index
    %90 = vector.load %arg1[%c1_101, %c1_102, %c16_103, %c0_104] : memref<2x3x288x3xbf16, #tpu.memory_space<vmem>>, vector<1x1x256x3xbf16>
    %91 = vector.shape_cast %90 : vector<1x1x256x3xbf16> to vector<256x3xbf16>
    %c4_105 = arith.constant 4 : index
    %c0_106 = arith.constant 0 : index
    %c0_107 = arith.constant 0 : index
    %92 = vector.load %arg2[%c4_105, %c0_106, %c0_107] : memref<9x3x128xbf16, #tpu.memory_space<vmem>>, vector<1x3x128xbf16>
    %93 = vector.shape_cast %92 : vector<1x3x128xbf16> to vector<3x128xbf16>
    %cst_108 = arith.constant dense<0.000000e+00> : vector<256x128xf32>
    %94 = tpu.matmul %91, %93, %cst_108 {dimension_numbers = #tpu.dot_dimension_numbers<[1], [0], [0], [1], [0, 0, 1, 1], [], []>} : vector<256x3xbf16>, vector<3x128xbf16>, vector<256x128xf32> -> vector<256x128xf32>
    %95 = arith.addf %89, %94 : vector<256x128xf32>
    %c1_109 = arith.constant 1 : index
    %c2_110 = arith.constant 2 : index
    %c16_111 = arith.constant 16 : index
    %c0_112 = arith.constant 0 : index
    %96 = vector.load %arg1[%c1_109, %c2_110, %c16_111, %c0_112] : memref<2x3x288x3xbf16, #tpu.memory_space<vmem>>, vector<1x1x256x3xbf16>
    %97 = vector.shape_cast %96 : vector<1x1x256x3xbf16> to vector<256x3xbf16>
    %c5_113 = arith.constant 5 : index
    %c0_114 = arith.constant 0 : index
    %c0_115 = arith.constant 0 : index
    %98 = vector.load %arg2[%c5_113, %c0_114, %c0_115] : memref<9x3x128xbf16, #tpu.memory_space<vmem>>, vector<1x3x128xbf16>
    %99 = vector.shape_cast %98 : vector<1x3x128xbf16> to vector<3x128xbf16>
    %cst_116 = arith.constant dense<0.000000e+00> : vector<256x128xf32>
    %100 = tpu.matmul %97, %99, %cst_116 {dimension_numbers = #tpu.dot_dimension_numbers<[1], [0], [0], [1], [0, 0, 1, 1], [], []>} : vector<256x3xbf16>, vector<3x128xbf16>, vector<256x128xf32> -> vector<256x128xf32>
    %101 = arith.addf %95, %100 : vector<256x128xf32>
    %c1_117 = arith.constant 1 : index
    %c0_118 = arith.constant 0 : index
    %c32_119 = arith.constant 32 : index
    %c0_120 = arith.constant 0 : index
    %102 = vector.load %arg1[%c1_117, %c0_118, %c32_119, %c0_120] : memref<2x3x288x3xbf16, #tpu.memory_space<vmem>>, vector<1x1x256x3xbf16>
    %103 = vector.shape_cast %102 : vector<1x1x256x3xbf16> to vector<256x3xbf16>
    %c6_121 = arith.constant 6 : index
    %c0_122 = arith.constant 0 : index
    %c0_123 = arith.constant 0 : index
    %104 = vector.load %arg2[%c6_121, %c0_122, %c0_123] : memref<9x3x128xbf16, #tpu.memory_space<vmem>>, vector<1x3x128xbf16>
    %105 = vector.shape_cast %104 : vector<1x3x128xbf16> to vector<3x128xbf16>
    %cst_124 = arith.constant dense<0.000000e+00> : vector<256x128xf32>
    %106 = tpu.matmul %103, %105, %cst_124 {dimension_numbers = #tpu.dot_dimension_numbers<[1], [0], [0], [1], [0, 0, 1, 1], [], []>} : vector<256x3xbf16>, vector<3x128xbf16>, vector<256x128xf32> -> vector<256x128xf32>
    %107 = arith.addf %101, %106 : vector<256x128xf32>
    %c1_125 = arith.constant 1 : index
    %c1_126 = arith.constant 1 : index
    %c32_127 = arith.constant 32 : index
    %c0_128 = arith.constant 0 : index
    %108 = vector.load %arg1[%c1_125, %c1_126, %c32_127, %c0_128] : memref<2x3x288x3xbf16, #tpu.memory_space<vmem>>, vector<1x1x256x3xbf16>
    %109 = vector.shape_cast %108 : vector<1x1x256x3xbf16> to vector<256x3xbf16>
    %c7_129 = arith.constant 7 : index
    %c0_130 = arith.constant 0 : index
    %c0_131 = arith.constant 0 : index
    %110 = vector.load %arg2[%c7_129, %c0_130, %c0_131] : memref<9x3x128xbf16, #tpu.memory_space<vmem>>, vector<1x3x128xbf16>
    %111 = vector.shape_cast %110 : vector<1x3x128xbf16> to vector<3x128xbf16>
    %cst_132 = arith.constant dense<0.000000e+00> : vector<256x128xf32>
    %112 = tpu.matmul %109, %111, %cst_132 {dimension_numbers = #tpu.dot_dimension_numbers<[1], [0], [0], [1], [0, 0, 1, 1], [], []>} : vector<256x3xbf16>, vector<3x128xbf16>, vector<256x128xf32> -> vector<256x128xf32>
    %113 = arith.addf %107, %112 : vector<256x128xf32>
    %c1_133 = arith.constant 1 : index
    %c2_134 = arith.constant 2 : index
    %c32_135 = arith.constant 32 : index
    %c0_136 = arith.constant 0 : index
    %114 = vector.load %arg1[%c1_133, %c2_134, %c32_135, %c0_136] : memref<2x3x288x3xbf16, #tpu.memory_space<vmem>>, vector<1x1x256x3xbf16>
    %115 = vector.shape_cast %114 : vector<1x1x256x3xbf16> to vector<256x3xbf16>
    %c8_137 = arith.constant 8 : index
    %c0_138 = arith.constant 0 : index
    %c0_139 = arith.constant 0 : index
    %116 = vector.load %arg2[%c8_137, %c0_138, %c0_139] : memref<9x3x128xbf16, #tpu.memory_space<vmem>>, vector<1x3x128xbf16>
    %117 = vector.shape_cast %116 : vector<1x3x128xbf16> to vector<3x128xbf16>
    %cst_140 = arith.constant dense<0.000000e+00> : vector<256x128xf32>
    %118 = tpu.matmul %115, %117, %cst_140 {dimension_numbers = #tpu.dot_dimension_numbers<[1], [0], [0], [1], [0, 0, 1, 1], [], []>} : vector<256x3xbf16>, vector<3x128xbf16>, vector<256x128xf32> -> vector<256x128xf32>
    %119 = arith.addf %113, %118 : vector<256x128xf32>
    %c0_141 = arith.constant 0 : index
    %c0_142 = arith.constant 0 : index
    %120 = vector.load %arg3[%c0_141, %c0_142] : memref<1x128xf32, #tpu.memory_space<vmem>>, vector<1x128xf32>
    %121 = vector.broadcast %120 : vector<1x128xf32> to vector<256x128xf32>
    %122 = arith.addf %119, %121 : vector<256x128xf32>
    %cst_143 = arith.constant 0.000000e+00 : f32
    %123 = vector.broadcast %cst_143 : f32 to vector<256x128xf32>
    %124 = arith.maximumf %122, %123 : vector<256x128xf32>
    %cst_144 = arith.constant dense<0.000000e+00> : vector<128xf32>
    %125 = vector.multi_reduction <add>, %124, %cst_144 [0] : vector<256x128xf32> to vector<128xf32>
    %126 = vector.shape_cast %125 : vector<128xf32> to vector<1x128xf32>
    %cst_145 = arith.constant 3.906250e-03 : f32
    %127 = vector.broadcast %cst_145 : f32 to vector<1x128xf32>
    %128 = arith.mulf %126, %127 : vector<1x128xf32>
    %c1_146 = arith.constant 1 : index
    %c0_147 = arith.constant 0 : index
    %129 = vector.load %arg10[%c1_146, %c0_147] : memref<2x128xf32, #tpu.memory_space<vmem>>, vector<1x128xf32>
    tpu.vector_store %arg10[%c1_146, %c0_147], %128 {strides = array<i32>} : memref<2x128xf32, #tpu.memory_space<vmem>>, vector<1x128xf32>,
    %c0_148 = arith.constant 0 : index
    %c0_149 = arith.constant 0 : index
    %130 = vector.load %arg10[%c0_148, %c0_149] : memref<2x128xf32, #tpu.memory_space<vmem>>, vector<2x128xf32>
    %131 = arith.truncf %130 : vector<2x128xf32> to vector<2x128xbf16>
    %c0_150 = arith.constant 0 : index
    %c0_151 = arith.constant 0 : index
    %132 = vector.load %arg4[%c0_150, %c0_151] : memref<128x128xbf16, #tpu.memory_space<vmem>>, vector<128x128xbf16>
    %cst_152 = arith.constant dense<0.000000e+00> : vector<2x128xf32>
    %133 = tpu.matmul %131, %132, %cst_152 {dimension_numbers = #tpu.dot_dimension_numbers<[1], [0], [0], [1], [0, 0, 1, 1], [], []>} : vector<2x128xbf16>, vector<128x128xbf16>, vector<2x128xf32> -> vector<2x128xf32>
    %c0_153 = arith.constant 0 : index
    %c0_154 = arith.constant 0 : index
    %134 = vector.load %arg5[%c0_153, %c0_154] : memref<1x128xf32, #tpu.memory_space<vmem>>, vector<1x128xf32>
    %135 = vector.broadcast %134 : vector<1x128xf32> to vector<2x128xf32>
    %136 = arith.addf %133, %135 : vector<2x128xf32>
    %cst_155 = arith.constant dense<0xFF800000> : vector<2xf32>
    %137 = vector.multi_reduction <maximumf>, %136, %cst_155 [1] : vector<2x128xf32> to vector<2xf32>
    %138 = vector.shape_cast %137 : vector<2xf32> to vector<2x1xf32>
    %139 = vector.broadcast %138 : vector<2x1xf32> to vector<2x128xf32>
    %140 = arith.subf %136, %139 : vector<2x128xf32>
    %141 = math.exp %140 : vector<2x128xf32>
    %cst_156 = arith.constant dense<0.000000e+00> : vector<2xf32>
    %142 = vector.multi_reduction <add>, %141, %cst_156 [1] : vector<2x128xf32> to vector<2xf32>
    %143 = vector.shape_cast %142 : vector<2xf32> to vector<2x1xf32>
    %144 = tpu.reciprocal %143 {approx = true} : vector<2x1xf32> -> vector<2x1xf32>
    %145 = vector.broadcast %144 : vector<2x1xf32> to vector<2x128xf32>
    %146 = arith.mulf %141, %145 : vector<2x128xf32>
    %c0_157 = arith.constant 0 : index
    %c0_158 = arith.constant 0 : index
    %147 = vector.load %arg8[%c0_157, %c0_158] : memref<2x128xf32, #tpu.memory_space<vmem>>, vector<2x128xf32>
    tpu.vector_store %arg8[%c0_157, %c0_158], %146 {strides = array<i32>} : memref<2x128xf32, #tpu.memory_space<vmem>>, vector<2x128xf32>,
    %c0_159 = arith.constant 0 : index
    %c0_160 = arith.constant 0 : index
    %148 = vector.load %arg6[%c0_159, %c0_160] : memref<128x128xf32, #tpu.memory_space<vmem>>, vector<128x128xf32>
    %cst_161 = arith.constant dense<0.000000e+00> : vector<2x128xf32>
    %149 = tpu.matmul %146, %148, %cst_161 {dimension_numbers = #tpu.dot_dimension_numbers<[1], [0], [0], [1], [0, 0, 1, 1], [], []>} : vector<2x128xf32>, vector<128x128xf32>, vector<2x128xf32> -> vector<2x128xf32>
    %c0_162 = arith.constant 0 : index
    %c0_163 = arith.constant 0 : index
    %150 = vector.load %arg7[%c0_162, %c0_163] : memref<1x128xf32, #tpu.memory_space<vmem>>, vector<1x128xf32>
    %151 = vector.broadcast %150 : vector<1x128xf32> to vector<2x128xf32>
    %152 = arith.addf %149, %151 : vector<2x128xf32>
    %c0_164 = arith.constant 0 : index
    %c0_165 = arith.constant 0 : index
    %153 = vector.load %arg9[%c0_164, %c0_165] : memref<2x128xf32, #tpu.memory_space<vmem>>, vector<2x128xf32>
    tpu.vector_store %arg9[%c0_164, %c0_165], %152 {strides = array<i32>} : memref<2x128xf32, #tpu.memory_space<vmem>>, vector<2x128xf32>,
    return
  }
  func.func @transform_0(%arg0: i32) -> (i32, i32, i32, i32) {
    %c0_i32 = arith.constant 0 : i32
    %c0_i32_0 = arith.constant 0 : i32
    %c0_i32_1 = arith.constant 0 : i32
    %c0_i32_2 = arith.constant 0 : i32
    return %arg0, %c0_i32, %c0_i32_0, %c0_i32_1 : i32, i32, i32, i32
  }
  func.func @transform_1(%arg0: i32) -> (i32, i32, i32) {
    %c0_i32 = arith.constant 0 : i32
    %c0_i32_0 = arith.constant 0 : i32
    %c0_i32_1 = arith.constant 0 : i32
    %c0_i32_2 = arith.constant 0 : i32
    return %c0_i32, %c0_i32_0, %c0_i32_1 : i32, i32, i32
  }
  func.func @transform_2(%arg0: i32) -> (i32, i32) {
    %c0_i32 = arith.constant 0 : i32
    %c0_i32_0 = arith.constant 0 : i32
    %c0_i32_1 = arith.constant 0 : i32
    return %c0_i32, %c0_i32_0 : i32, i32
  }
  func.func @transform_3(%arg0: i32) -> (i32, i32) {
    %c0_i32 = arith.constant 0 : i32
    %c0_i32_0 = arith.constant 0 : i32
    %c0_i32_1 = arith.constant 0 : i32
    return %c0_i32, %c0_i32_0 : i32, i32
  }
  func.func @transform_4(%arg0: i32) -> (i32, i32) {
    %c0_i32 = arith.constant 0 : i32
    %c0_i32_0 = arith.constant 0 : i32
    %c0_i32_1 = arith.constant 0 : i32
    return %c0_i32, %c0_i32_0 : i32, i32
  }
  func.func @transform_5(%arg0: i32) -> (i32, i32) {
    %c0_i32 = arith.constant 0 : i32
    %c0_i32_0 = arith.constant 0 : i32
    %c0_i32_1 = arith.constant 0 : i32
    return %c0_i32, %c0_i32_0 : i32, i32
  }
  func.func @transform_6(%arg0: i32) -> (i32, i32) {
    %c0_i32 = arith.constant 0 : i32
    %c0_i32_0 = arith.constant 0 : i32
    %c0_i32_1 = arith.constant 0 : i32
    return %c0_i32, %c0_i32_0 : i32, i32
  }
  func.func @transform_7(%arg0: i32) -> (i32, i32) {
    %c0_i32 = arith.constant 0 : i32
    %c0_i32_0 = arith.constant 0 : i32
    return %arg0, %c0_i32 : i32, i32
  }
  func.func @transform_8(%arg0: i32) -> (i32, i32) {
    %c0_i32 = arith.constant 0 : i32
    %c0_i32_0 = arith.constant 0 : i32
    return %arg0, %c0_i32 : i32, i32
  }
}

</mosaic_0001>

<bundles_post_ra>
// kernel: dld2_forward_impl.1
= control target key start
LH: loop header
LB: loop body
LE: loop exit
PB: predicated region body
PF: predicated region fallthrough
CT: control target
= control target key end

     0   :  { %14 = vsyncpa [#allocation4], 0  ;;  %vm228_vm0 = vcmask 1040384   ;;  %vm229_vm1 = vcmask 1041408   ;;  %v9246_v2 = vmov 65535   ;;  %vm179_vm2 = vcmask 23552   ;;  %s11621_s0 = inlined_call_operand.vmem [shape: bf16[2,3,288,3], index: 0, kind: input, shape index: {}]   ;;  %s11622_s1 = inlined_call_operand.vmem [shape: bf16[9,3,128], index: 1, kind: input, shape index: {}]   ;;  %s11623_s2 = inlined_call_operand.vmem [shape: f32[1,128], index: 2, kind: input, shape index: {}]   ;;  %s11624_s3 = inlined_call_operand.vmem [shape: bf16[128,128], index: 3, kind: input, shape index: {}]   ;;  %s11625_s4 = inlined_call_operand.vmem [shape: f32[1,128], index: 4, kind: input, shape index: {}]   ;;  %s11626_s5 = inlined_call_operand.vmem [shape: f32[128,128], index: 5, kind: input, shape index: {}]   ;;  %s11627_s6 = inlined_call_operand.vmem [shape: f32[1,128], index: 6, kind: input, shape index: {}]   ;;  %s11628_s7 = inlined_call_operand.hbm [shape: f32[2,128], index: 7, kind: output, shape index: {0}]   ;;  %s11629_s8 = inlined_call_operand.hbm [shape: f32[2,128], index: 8, kind: output, shape index: {1}]  }
   0x1   :  { %v6846_v0 = vld [vmem:[%s11622_s1 + $0x2] sm:$0x3]  ;;  %v8902_v1 = vld [vmem:[%s11621_s0 + $0x90] sm:$0xff]   ;;  %v230_v3 = vsel %vm228_vm0, 4294967295, %v9246_v2  ;;  %v63_v4 = vld [vmem:[%s11622_s1] sm:$0x3] }
   0x2   :  { %v9306_v5 = vsel %vm229_vm1, %v230_v3, 0  ;;  %8232 = vmatprep.mubr.msk.bf16.mxu0 %vm179_vm2, %v8902_v1  ;;  %v8903_v6 = vld [vmem:[%s11621_s0] sm:$0xff]   ;;  %v8904_v9 = vld [vmem:[%s11621_s0 + $0x98] sm:$0xff]   ;;  %v8905_v10 = vld [vmem:[%s11621_s0 + $0x8] sm:$0xff]  }
   0x3   :  { %v233_v7 = vand.u32 %v6846_v0, %v9306_v5  ;;  %v525_v8 = vand.u32 %v9306_v5, %v63_v4  ;;  %8266 = vmatprep.mubr.msk.bf16.mxu1 %vm179_vm2, %v8903_v6  ;;  %v6943_v11 = vld [vmem:[%s11622_s1 + $0x4] sm:$0x3]  ;;  %v6976_v12 = vld [vmem:[%s11622_s1 + $0x6] sm:$0x3]  ;;  %v8907_v16 = vld [vmem:[%s11621_s0 + $0x10] sm:$0xff]  }
   0x4   :  { %v852_v13 = vand.u32 %v6943_v11, %v9306_v5  ;;  %v1210_v14 = vand.u32 %v6976_v12, %v9306_v5  ;;  %v8906_v15 = vld [vmem:[%s11621_s0 + $0xa0] sm:$0xff]   ;;  %v8908_v17 = vld [vmem:[%s11621_s0 + $0xa8] sm:$0xff]   ;;  %v8909_v18 = vld [vmem:[%s11621_s0 + $0x18] sm:$0xff]  }
   0x5   :  { %8230 = vmatprep.subr.bf16.mxu0 %v233_v7  ;;  %8264 = vmatprep.subr.bf16.mxu1 %v525_v8  ;;  %v8910_v19 = vld [vmem:[%s11621_s0 + $0xb0] sm:$0xff]   ;;  %v8911_v20 = vld [vmem:[%s11621_s0 + $0x20] sm:$0xff]   ;;  %v8912_v21 = vld [vmem:[%s11621_s0 + $0xb8] sm:$0xff]  }
   0x6   :  { %8231 = vmatpush3.bf16.msra.mxu0 %v233_v7  ;;  %8265 = vmatpush3.bf16.msra.mxu1 %v525_v8  ;;  %v8913_v22 = vld [vmem:[%s11621_s0 + $0x28] sm:$0xff]   ;;  %v8914_v23 = vld [vmem:[%s11621_s0 + $0xc0] sm:$0xff]   ;;  %v8915_v24 = vld [vmem:[%s11621_s0 + $0x30] sm:$0xff]  }
   0x7   :  { %8298 = vmatprep.subr.bf16.mxu0 %v852_v13  ;;  %8332 = vmatprep.subr.bf16.mxu1 %v1210_v14  ;;  %v8916_v25 = vld [vmem:[%s11621_s0 + $0xc8] sm:$0xff]   ;;  %v8917_v26 = vld [vmem:[%s11621_s0 + $0x38] sm:$0xff]   ;;  %v8918_v27 = vld [vmem:[%s11621_s0 + $0xd0] sm:$0xff]  }
   0x8   :  { %v8919_v28 = vld [vmem:[%s11621_s0 + $0x40] sm:$0xff]   ;;  %v8920_v29 = vld [vmem:[%s11621_s0 + $0xd8] sm:$0xff]   ;;  %v8921_v30 = vld [vmem:[%s11621_s0 + $0x48] sm:$0xff]  }
   0x9   :  { %8233 = vmatmul.mubr.msk.bf16.vlgmr.msra.gmra.mxu0 %vm179_vm2, %v8904_v9  ;;  %8267 = vmatmul.mubr.msk.bf16.vlgmr.msra.gmra.mxu1 %vm179_vm2, %v8905_v10  ;;  %v8922_v31 = vld [vmem:[%s11621_s0 + $0xe0] sm:$0xff]   ;;  %v8923_v32 = vld [vmem:[%s11621_s0 + $0x50] sm:$0xff]   ;;  %v7041_v33 = vld [vmem:[%s11622_s1 + $0x8] sm:$0x3] }
   0xa   :  { %8299 = vmatpush3.bf16.msra.mxu0 %v852_v13  ;;  %8333 = vmatpush3.bf16.msra.mxu1 %v1210_v14  ;;  %v7106_v34 = vld [vmem:[%s11622_s1 + $0xa] sm:$0x3]  ;;  %v1568_v35 = vand.u32 %v7041_v33, %v9306_v5  ;;  %v8925_v38 = vld [vmem:[%s11621_s0 + $0x58] sm:$0xff]   ;;  %v8926_v39 = vld [vmem:[%s11621_s0 + $0xf0] sm:$0xff]  }
   0xb   :  { %8236 = vmatprep.mubr.msk.bf16.mxu0 %vm179_vm2, %v8906_v15  ;;  %8270 = vmatprep.mubr.msk.bf16.mxu1 %vm179_vm2, %v8907_v16  ;;  %v1926_v36 = vand.u32 %v7106_v34, %v9306_v5  ;;  %v8924_v37 = vld [vmem:[%s11621_s0 + $0xe8] sm:$0xff]   ;;  %v8927_v40 = vld [vmem:[%s11621_s0 + $0x60] sm:$0xff]   ;;  %v8928_v41 = vld [vmem:[%s11621_s0 + $0xf8] sm:$0xff]  }
   0xc   :  { %8366 = vmatprep.subr.bf16.mxu0 %v1568_v35  ;;  %v8929_v42 = vld [vmem:[%s11621_s0 + $0x68] sm:$0xff]   ;;  %v8930_v43 = vld [vmem:[%s11621_s0 + $0x100] sm:$0xff]   ;;  %v8931_v44 = vld [vmem:[%s11621_s0 + $0x70] sm:$0xff]  }
   0xd   :  { %8400 = vmatprep.subr.bf16.mxu1 %v1926_v36  ;;  %v8932_v45 = vld [vmem:[%s11621_s0 + $0x108] sm:$0xff]   ;;  %v8933_v46 = vld [vmem:[%s11621_s0 + $0x78] sm:$0xff]   ;;  %v8934_v47 = vld [vmem:[%s11621_s0 + $0x120] sm:$0xff]  }
   0xe   :  { %v8935_v48 = vld [vmem:[%s11621_s0 + $0x8] sm:$0xff]   ;;  %v8937_v50 = vld [vmem:[%s11621_s0 + $0x10] sm:$0xff]   ;;  %v8939_v52 = vld [vmem:[%s11621_s0 + $0x18] sm:$0xff]  }
   0xf   :  { %v8936_v49 = vld [vmem:[%s11621_s0 + $0x128] sm:$0xff]   ;;  %v8938_v51 = vld [vmem:[%s11621_s0 + $0x130] sm:$0xff]   ;;  %v8940_v57 = vld [vmem:[%s11621_s0 + $0x138] sm:$0xff]  }
  0x10   :  { %v7139_v53 = vld [vmem:[%s11622_s1 + $0xc] sm:$0x3]  ;;  %v7204_v54 = vld [vmem:[%s11622_s1 + $0xe] sm:$0x3]  ;;  %v8941_v58 = vld [vmem:[%s11621_s0 + $0x20] sm:$0xff]  }
  0x11   :  { %8237 = vmatmul.mubr.msk.bf16.gmra.mxu0 %vm179_vm2, %v8908_v17  ;;  %8271 = vmatmul.mubr.msk.bf16.gmra.mxu1 %vm179_vm2, %v8909_v18  ;;  %v9478_v55 = vand.u32 %v7139_v53, %v9306_v5  ;;  %v9481_v56 = vand.u32 %v7204_v54, %v9306_v5  ;;  %v8942_v59 = vld [vmem:[%s11621_s0 + $0x140] sm:$0xff]   ;;  %v8943_v60 = vld [vmem:[%s11621_s0 + $0x28] sm:$0xff]   ;;  %v8945_v62 = vld [vmem:[%s11621_s0 + $0x30] sm:$0xff]  }
  0x12   :  { %8240 = vmatprep.mubr.msk.bf16.mxu0 %vm179_vm2, %v8910_v19  ;;  %8274 = vmatprep.mubr.msk.bf16.mxu1 %vm179_vm2, %v8911_v20  ;;  %v8944_v61 = vld [vmem:[%s11621_s0 + $0x148] sm:$0xff]   ;;  %v8946_v63 = vld [vmem:[%s11621_s0 + $0x150] sm:$0xff]   ;;  %v8947_v0 = vld [vmem:[%s11621_s0 + $0x38] sm:$0xff]  }
  0x13   :  { %v8948_v1 = vld [vmem:[%s11621_s0 + $0x158] sm:$0xff]   ;;  %v8949_v2 = vld [vmem:[%s11621_s0 + $0x40] sm:$0xff]   ;;  %v8951_v4 = vld [vmem:[%s11621_s0 + $0x48] sm:$0xff]  }
  0x14   :  { %v8950_v3 = vld [vmem:[%s11621_s0 + $0x160] sm:$0xff]   ;;  %v8952_v6 = vld [vmem:[%s11621_s0 + $0x168] sm:$0xff]   ;;  %v8953_v7 = vld [vmem:[%s11621_s0 + $0x50] sm:$0xff]  }
  0x15   :  { %v8954_v8 = vld [vmem:[%s11621_s0 + $0x170] sm:$0xff]   ;;  %v8955_v9 = vld [vmem:[%s11621_s0 + $0x58] sm:$0xff]   ;;  %v8957_v11 = vld [vmem:[%s11621_s0 + $0x60] sm:$0xff]  }
  0x16   :  { %v8956_v10 = vld [vmem:[%s11621_s0 + $0x178] sm:$0xff]   ;;  %v8958_v12 = vld [vmem:[%s11621_s0 + $0x180] sm:$0xff]   ;;  %v8959_v13 = vld [vmem:[%s11621_s0 + $0x68] sm:$0xff]  }
  0x17   :  { %v8960_v14 = vld [vmem:[%s11621_s0 + $0x188] sm:$0xff]   ;;  %v8961_v15 = vld [vmem:[%s11621_s0 + $0x70] sm:$0xff]   ;;  %v8963_v17 = vld [vmem:[%s11621_s0 + $0x78] sm:$0xff]  }
  0x18   :  { %v8962_v16 = vld [vmem:[%s11621_s0 + $0x190] sm:$0xff]   ;;  %v8964_v18 = vld [vmem:[%s11621_s0 + $0x198] sm:$0xff]   ;;  %v8965_v19 = vld [vmem:[%s11621_s0 + $0x80] sm:$0xff]  }
  0x19   :  { %8241 = vmatmul.mubr.msk.bf16.gmra.mxu0 %vm179_vm2, %v8912_v21  ;;  %8275 = vmatmul.mubr.msk.bf16.gmra.mxu1 %vm179_vm2, %v8913_v22  ;;  %v8966_v20 = vld [vmem:[%s11621_s0 + $0x98] sm:$0xff]   ;;  %v8967_v21 = vld [vmem:[%s11621_s0 + $0x128] sm:$0xff]   ;;  %v8968_v22 = vld [vmem:[%s11621_s0 + $0xa0] sm:$0xff]  }
  0x1a   :  { %8244 = vmatprep.mubr.msk.bf16.mxu0 %vm179_vm2, %v8914_v23  ;;  %8278 = vmatprep.mubr.msk.bf16.mxu1 %vm179_vm2, %v8915_v24  ;;  %v8969_v23 = vld [vmem:[%s11621_s0 + $0x130] sm:$0xff]   ;;  %v8975_v33 = vld [vmem:[%s11621_s0 + $0x148] sm:$0xff]   ;;  %v8976_v34 = vld [vmem:[%s11621_s0 + $0xc0] sm:$0xff]  }
  0x1b   :  { %v7269_v24 = vld [vmem:[%s11622_s1 + $0x10] sm:$0x3]  ;;  %v8995_v53 = vld [vmem:[%s11621_s0 + $0x198] sm:$0xff]  }
  0x1c   :  { %v8996_v54 = vld [vmem:[%s11621_s0 + $0x110] sm:$0xff]  }
  0x21   :  { %8245 = vmatmul.mubr.msk.bf16.gmra.mxu0 %vm179_vm2, %v8916_v25  ;;  %8279 = vmatmul.mubr.msk.bf16.gmra.mxu1 %vm179_vm2, %v8917_v26  ;;  %v7367_v25 = vld [vmem:[%s11622_s1 + $0x2] sm:$0x3]  ;;  %v8970_v26 = vld [vmem:[%s11621_s0 + $0xa8] sm:$0xff]  }
  0x22   :  { %8248 = vmatprep.mubr.msk.bf16.mxu0 %vm179_vm2, %v8918_v27  ;;  %8282 = vmatprep.mubr.msk.bf16.mxu1 %vm179_vm2, %v8919_v28  ;;  %v8971_v27 = vld [vmem:[%s11621_s0 + $0x138] sm:$0xff]   ;;  %v9620_v28 = vand.u32 %v7269_v24, %v9306_v5 }
  0x23   :  { %v9008_v24 = vld [vmem:[%s11621_s0 + $0x38] sm:$0xff]  }
  0x29   :  { %8249 = vmatmul.mubr.msk.bf16.gmra.mxu0 %vm179_vm2, %v8920_v29  ;;  %8283 = vmatmul.mubr.msk.bf16.gmra.mxu1 %vm179_vm2, %v8921_v30  ;;  %v9623_v29 = vand.u32 %v7367_v25, %v9306_v5  ;;  %v8972_v30 = vld [vmem:[%s11621_s0 + $0xb0] sm:$0xff]   ;;  %v9009_v25 = vld [vmem:[%s11621_s0 + $0xc8] sm:$0xff]  }
  0x2a   :  { %8252 = vmatprep.mubr.msk.bf16.mxu0 %vm179_vm2, %v8922_v31  ;;  %8286 = vmatprep.mubr.msk.bf16.mxu1 %vm179_vm2, %v8923_v32  ;;  %v8973_v31 = vld [vmem:[%s11621_s0 + $0x140] sm:$0xff]   ;;  %v8974_v32 = vld [vmem:[%s11621_s0 + $0xb8] sm:$0xff]  }
  0x31   :  { %8253 = vmatmul.mubr.msk.bf16.gmra.mxu0 %vm179_vm2, %v8924_v37  ;;  %8287 = vmatmul.mubr.msk.bf16.gmra.mxu1 %vm179_vm2, %v8925_v38  ;;  %v8979_v37 = vld [vmem:[%s11621_s0 + $0x158] sm:$0xff]   ;;  %v8980_v38 = vld [vmem:[%s11621_s0 + $0xd0] sm:$0xff]  }
  0x32   :  { %8256 = vmatprep.mubr.msk.bf16.mxu0 %vm179_vm2, %v8926_v39  ;;  %8290 = vmatprep.mubr.msk.bf16.mxu1 %vm179_vm2, %v8927_v40  ;;  %v8981_v39 = vld [vmem:[%s11621_s0 + $0x160] sm:$0xff]   ;;  %v8982_v40 = vld [vmem:[%s11621_s0 + $0xd8] sm:$0xff]  }
  0x39   :  { %8257 = vmatmul.mubr.msk.bf16.gmra.mxu0 %vm179_vm2, %v8928_v41  ;;  %8291 = vmatmul.mubr.msk.bf16.gmra.mxu1 %vm179_vm2, %v8929_v42  ;;  %v8983_v41 = vld [vmem:[%s11621_s0 + $0x168] sm:$0xff]   ;;  %v8984_v42 = vld [vmem:[%s11621_s0 + $0xe0] sm:$0xff]  }
  0x3a   :  { %8260 = vmatprep.mubr.msk.bf16.mxu0 %vm179_vm2, %v8930_v43  ;;  %8294 = vmatprep.mubr.msk.bf16.mxu1 %vm179_vm2, %v8931_v44  ;;  %v8985_v43 = vld [vmem:[%s11621_s0 + $0x170] sm:$0xff]   ;;  %v8986_v44 = vld [vmem:[%s11621_s0 + $0xe8] sm:$0xff]  }
  0x41   :  { %8261 = vmatmul.mubr.msk.bf16.gmra.mxu0 %vm179_vm2, %v8932_v45  ;;  %8295 = vmatmul.mubr.msk.bf16.gmra.mxu1 %vm179_vm2, %v8933_v46  ;;  %v8987_v45 = vld [vmem:[%s11621_s0 + $0x178] sm:$0xff]   ;;  %v8988_v46 = vld [vmem:[%s11621_s0 + $0xf0] sm:$0xff]  }
  0x42   :  { %8300 = vmatprep.mubr.msk.bf16.mxu0 %vm179_vm2, %v8934_v47  ;;  %8334 = vmatprep.mubr.msk.bf16.mxu1 %vm179_vm2, %v8935_v48  ;;  %v8989_v47 = vld [vmem:[%s11621_s0 + $0x180] sm:$0xff]   ;;  %v8990_v48 = vld [vmem:[%s11621_s0 + $0xf8] sm:$0xff]  }
  0x49   :  { %8301 = vmatmul.mubr.msk.bf16.vlgmr.msra.gmra.mxu0 %vm179_vm2, %v8936_v49  ;;  %8335 = vmatmul.mubr.msk.bf16.vlgmr.msra.gmra.mxu1 %vm179_vm2, %v8937_v50  ;;  %v8991_v49 = vld [vmem:[%s11621_s0 + $0x188] sm:$0xff]   ;;  %v8992_v50 = vld [vmem:[%s11621_s0 + $0x100] sm:$0xff]  }
  0x4a   :  { %8367 = vmatpush3.bf16.msra.mxu0 %v1568_v35  ;;  %8401 = vmatpush3.bf16.msra.mxu1 %v1926_v36  ;;  %v8977_v35 = vld [vmem:[%s11621_s0 + $0x150] sm:$0xff]   ;;  %v8978_v36 = vld [vmem:[%s11621_s0 + $0xc8] sm:$0xff]  }
  0x4b   :  { %8304 = vmatprep.mubr.msk.bf16.mxu0 %vm179_vm2, %v8938_v51  ;;  %8338 = vmatprep.mubr.msk.bf16.mxu1 %vm179_vm2, %v8939_v52  ;;  %v8993_v51 = vld [vmem:[%s11621_s0 + $0x190] sm:$0xff]   ;;  %v8994_v52 = vld [vmem:[%s11621_s0 + $0x108] sm:$0xff]  }
  0x4c   :  { %8434 = vmatprep.subr.bf16.mxu0 %v9478_v55  ;;  %8468 = vmatprep.subr.bf16.mxu1 %v9481_v56 }
  0x51   :  { %8305 = vmatmul.mubr.msk.bf16.gmra.mxu0 %vm179_vm2, %v8940_v57  ;;  %8339 = vmatmul.mubr.msk.bf16.gmra.mxu1 %vm179_vm2, %v8941_v58  ;;  %v8999_v57 = vld [vmem:[%s11621_s0 + $0xa0] sm:$0xff]   ;;  %v9000_v58 = vld [vmem:[%s11621_s0 + $0x18] sm:$0xff]  }
  0x52   :  { %8308 = vmatprep.mubr.msk.bf16.mxu0 %vm179_vm2, %v8942_v59  ;;  %8342 = vmatprep.mubr.msk.bf16.mxu1 %vm179_vm2, %v8943_v60  ;;  %v9001_v59 = vld [vmem:[%s11621_s0 + $0xa8] sm:$0xff]   ;;  %v3338_v60 = vld [vmem:[%s11622_s1] sm:$0x3] }
  0x59   :  { %8309 = vmatmul.mubr.msk.bf16.gmra.mxu0 %vm179_vm2, %v8944_v61  ;;  %8343 = vmatmul.mubr.msk.bf16.gmra.mxu1 %vm179_vm2, %v8945_v62  ;;  %v7464_v61 = vld [vmem:[%s11622_s1 + $0x4] sm:$0x3] }
  0x5a   :  { %8312 = vmatprep.mubr.msk.bf16.mxu0 %vm179_vm2, %v8946_v63  ;;  %8346 = vmatprep.mubr.msk.bf16.mxu1 %vm179_vm2, %v8947_v0  ;;  %v9002_v62 = vld [vmem:[%s11621_s0 + $0x20] sm:$0xff]   ;;  %v9003_v63 = vld [vmem:[%s11621_s0 + $0xb0] sm:$0xff]   ;;  %v9764_v0 = vand.u32 %v3338_v60, %v9306_v5 }
  0x61   :  { %8313 = vmatmul.mubr.msk.bf16.gmra.mxu0 %vm179_vm2, %v8948_v1  ;;  %8347 = vmatmul.mubr.msk.bf16.gmra.mxu1 %vm179_vm2, %v8949_v2  ;;  %v9767_v1 = vand.u32 %v7464_v61, %v9306_v5 }
  0x62   :  { %8316 = vmatprep.mubr.msk.bf16.mxu0 %vm179_vm2, %v8950_v3  ;;  %8350 = vmatprep.mubr.msk.bf16.mxu1 %vm179_vm2, %v8951_v4 }
  0x69   :  { %8317 = vmatmul.mubr.msk.bf16.gmra.mxu0 %vm179_vm2, %v8952_v6  ;;  %8351 = vmatmul.mubr.msk.bf16.gmra.mxu1 %vm179_vm2, %v8953_v7 }
  0x6a   :  { %8320 = vmatprep.mubr.msk.bf16.mxu0 %vm179_vm2, %v8954_v8  ;;  %8354 = vmatprep.mubr.msk.bf16.mxu1 %vm179_vm2, %v8955_v9  ;;  %v9004_v8 = vld [vmem:[%s11621_s0 + $0x28] sm:$0xff]  }
  0x71   :  { %8321 = vmatmul.mubr.msk.bf16.gmra.mxu0 %vm179_vm2, %v8956_v10  ;;  %8355 = vmatmul.mubr.msk.bf16.gmra.mxu1 %vm179_vm2, %v8957_v11  ;;  %v9005_v10 = vld [vmem:[%s11621_s0 + $0xb8] sm:$0xff]  }
  0x72   :  { %8324 = vmatprep.mubr.msk.bf16.mxu0 %vm179_vm2, %v8958_v12  ;;  %8358 = vmatprep.mubr.msk.bf16.mxu1 %vm179_vm2, %v8959_v13 }
  0x79   :  { %8325 = vmatmul.mubr.msk.bf16.gmra.mxu0 %vm179_vm2, %v8960_v14  ;;  %8359 = vmatmul.mubr.msk.bf16.gmra.mxu1 %vm179_vm2, %v8961_v15  ;;  %v9006_v14 = vld [vmem:[%s11621_s0 + $0x30] sm:$0xff]   ;;  %v9007_v15 = vld [vmem:[%s11621_s0 + $0xc0] sm:$0xff]  }
  0x7a   :  { %8328 = vmatprep.mubr.msk.bf16.mxu0 %vm179_vm2, %v8962_v16  ;;  %8362 = vmatprep.mubr.msk.bf16.mxu1 %vm179_vm2, %v8963_v17 }
  0x81   :  { %8329 = vmatmul.mubr.msk.bf16.gmra.mxu0 %vm179_vm2, %v8964_v18  ;;  %8363 = vmatmul.mubr.msk.bf16.gmra.mxu1 %vm179_vm2, %v8965_v19 }
  0x82   :  { %8368 = vmatprep.mubr.msk.bf16.mxu0 %vm179_vm2, %v8966_v20  ;;  %8402 = vmatprep.mubr.msk.bf16.mxu1 %vm179_vm2, %v8967_v21 }
  0x89   :  { %8369 = vmatmul.mubr.msk.bf16.vlgmr.msra.gmra.mxu0 %vm179_vm2, %v8968_v22  ;;  %8403 = vmatmul.mubr.msk.bf16.vlgmr.msra.gmra.mxu1 %vm179_vm2, %v8969_v23 }
  0x8a   :  { %8435 = vmatpush3.bf16.msra.mxu0 %v9478_v55  ;;  %8469 = vmatpush3.bf16.msra.mxu1 %v9481_v56  ;;  %v8997_v55 = vld [vmem:[%s11621_s0 + $0x1a0] sm:$0xff]   ;;  %v8998_v56 = vld [vmem:[%s11621_s0 + $0x10] sm:$0xff]  }
  0x8b   :  { %8372 = vmatprep.mubr.msk.bf16.mxu0 %vm179_vm2, %v8970_v26  ;;  %8406 = vmatprep.mubr.msk.bf16.mxu1 %vm179_vm2, %v8971_v27 }
  0x8c   :  { %8502 = vmatprep.subr.bf16.mxu0 %v9620_v28  ;;  %8536 = vmatprep.subr.bf16.mxu1 %v9623_v29 }
  0x91   :  { %8373 = vmatmul.mubr.msk.bf16.gmra.mxu0 %vm179_vm2, %v8972_v30  ;;  %8407 = vmatmul.mubr.msk.bf16.gmra.mxu1 %vm179_vm2, %v8973_v31  ;;  %v9010_v30 = vld [vmem:[%s11621_s0 + $0x40] sm:$0xff]   ;;  %v9011_v31 = vld [vmem:[%s11621_s0 + $0xd0] sm:$0xff]  }
  0x92   :  { %8376 = vmatprep.mubr.msk.bf16.mxu0 %vm179_vm2, %v8974_v32  ;;  %8410 = vmatprep.mubr.msk.bf16.mxu1 %vm179_vm2, %v8975_v33 }
  0x99   :  { %8377 = vmatmul.mubr.msk.bf16.gmra.mxu0 %vm179_vm2, %v8976_v34  ;;  %8411 = vmatmul.mubr.msk.bf16.gmra.mxu1 %vm179_vm2, %v8977_v35 }
  0x9a   :  { %8380 = vmatprep.mubr.msk.bf16.mxu0 %vm179_vm2, %v8978_v36  ;;  %8414 = vmatprep.mubr.msk.bf16.mxu1 %vm179_vm2, %v8979_v37 }
  0xa1   :  { %8381 = vmatmul.mubr.msk.bf16.gmra.mxu0 %vm179_vm2, %v8980_v38  ;;  %8415 = vmatmul.mubr.msk.bf16.gmra.mxu1 %vm179_vm2, %v8981_v39 }
  0xa2   :  { %8384 = vmatprep.mubr.msk.bf16.mxu0 %vm179_vm2, %v8982_v40  ;;  %8418 = vmatprep.mubr.msk.bf16.mxu1 %vm179_vm2, %v8983_v41  ;;  %v9012_v40 = vld [vmem:[%s11621_s0 + $0x48] sm:$0xff]   ;;  %v9013_v41 = vld [vmem:[%s11621_s0 + $0xd8] sm:$0xff]  }
  0xa9   :  { %8385 = vmatmul.mubr.msk.bf16.gmra.mxu0 %vm179_vm2, %v8984_v42  ;;  %8419 = vmatmul.mubr.msk.bf16.gmra.mxu1 %vm179_vm2, %v8985_v43 }
  0xaa   :  { %8388 = vmatprep.mubr.msk.bf16.mxu0 %vm179_vm2, %v8986_v44  ;;  %8422 = vmatprep.mubr.msk.bf16.mxu1 %vm179_vm2, %v8987_v45 }
  0xb1   :  { %8389 = vmatmul.mubr.msk.bf16.gmra.mxu0 %vm179_vm2, %v8988_v46  ;;  %8423 = vmatmul.mubr.msk.bf16.gmra.mxu1 %vm179_vm2, %v8989_v47  ;;  %v9014_v46 = vld [vmem:[%s11621_s0 + $0x50] sm:$0xff]   ;;  %v9015_v47 = vld [vmem:[%s11621_s0 + $0xe0] sm:$0xff]  }
  0xb2   :  { %8392 = vmatprep.mubr.msk.bf16.mxu0 %vm179_vm2, %v8990_v48  ;;  %8426 = vmatprep.mubr.msk.bf16.mxu1 %vm179_vm2, %v8991_v49 }
  0xb9   :  { %8393 = vmatmul.mubr.msk.bf16.gmra.mxu0 %vm179_vm2, %v8992_v50  ;;  %8427 = vmatmul.mubr.msk.bf16.gmra.mxu1 %vm179_vm2, %v8993_v51 }
  0xba   :  { %8396 = vmatprep.mubr.msk.bf16.mxu0 %vm179_vm2, %v8994_v52  ;;  %8430 = vmatprep.mubr.msk.bf16.mxu1 %vm179_vm2, %v8995_v53 }
  0xc1   :  { %8397 = vmatmul.mubr.msk.bf16.gmra.mxu0 %vm179_vm2, %v8996_v54  ;;  %8431 = vmatmul.mubr.msk.bf16.gmra.mxu1 %vm179_vm2, %v8997_v55 }
  0xc2   :  { %8436 = vmatprep.mubr.msk.bf16.mxu0 %vm179_vm2, %v8998_v56  ;;  %8470 = vmatprep.mubr.msk.bf16.mxu1 %vm179_vm2, %v8999_v57  ;;  %v9016_v56 = vld [vmem:[%s11621_s0 + $0x58] sm:$0xff]   ;;  %v9017_v57 = vld [vmem:[%s11621_s0 + $0xe8] sm:$0xff]  }
  0xc9   :  { %v8234_v2 = vpop.f32.mrf.mxu0  ;;  %v8268_v3 = vpop.f32.mrf.mxu1  ;;  %8437 = vmatmul.mubr.msk.bf16.vlgmr.msra.gmra.mxu0 %vm179_vm2, %v9000_v58  ;;  %8471 = vmatmul.mubr.msk.bf16.vlgmr.msra.gmra.mxu1 %vm179_vm2, %v9001_v59 }
  0xca   :  { %v9771_v4 = vadd.f32 %v8268_v3, %v8234_v2  ;;  %8503 = vmatpush3.bf16.msra.mxu0 %v9620_v28  ;;  %8537 = vmatpush3.bf16.msra.mxu1 %v9623_v29 }
  0xcb   :  { %v269_v6 = vpop.f32.mrf.mxu0  ;;  %v561_v7 = vpop.f32.mrf.mxu1  ;;  %8440 = vmatprep.mubr.msk.bf16.mxu0 %vm179_vm2, %v9002_v62  ;;  %8474 = vmatprep.mubr.msk.bf16.mxu1 %vm179_vm2, %v9003_v63  ;;  %v9018_v62 = vld [vmem:[%s11621_s0 + $0x60] sm:$0xff]   ;;  %v9019_v63 = vld [vmem:[%s11621_s0 + $0xf0] sm:$0xff]  }
  0xcc   :  { %v9780_v9 = vadd.f32 %v561_v7, %v269_v6  ;;  %8570 = vmatprep.subr.bf16.mxu0 %v9764_v0  ;;  %8604 = vmatprep.subr.bf16.mxu1 %v9767_v1 }
  0xcd   :  { %v8235_v11 = vpop.f32.mrf.mxu0  ;;  %v8269_v12 = vpop.f32.mrf.mxu1 }
  0xce   :  { %v9787_v13 = vadd.f32 %v8269_v12, %v8235_v11 }
  0xcf   :  { %v272_v16 = vpop.f32.mrf.mxu0  ;;  %v564_v17 = vpop.f32.mrf.mxu1 }
  0xd0   :  { %v9795_v18 = vadd.f32 %v564_v17, %v272_v16 }
  0xd1   :  { %v8238_v19 = vpop.f32.mrf.mxu0  ;;  %v8272_v20 = vpop.f32.mrf.mxu1  ;;  %8441 = vmatmul.mubr.msk.bf16.gmra.mxu0 %vm179_vm2, %v9004_v8  ;;  %8475 = vmatmul.mubr.msk.bf16.gmra.mxu1 %vm179_vm2, %v9005_v10 }
  0xd2   :  { %v9799_v21 = vadd.f32 %v8272_v20, %v8238_v19  ;;  %8444 = vmatprep.mubr.msk.bf16.mxu0 %vm179_vm2, %v9006_v14  ;;  %8478 = vmatprep.mubr.msk.bf16.mxu1 %vm179_vm2, %v9007_v15  ;;  %v9020_v14 = vld [vmem:[%s11621_s0 + $0x68] sm:$0xff]   ;;  %v9021_v15 = vld [vmem:[%s11621_s0 + $0xf8] sm:$0xff]  }
  0xd3   :  { %v285_v22 = vpop.f32.mrf.mxu0  ;;  %v577_v23 = vpop.f32.mrf.mxu1 }
  0xd4   :  { %v9809_v26 = vadd.f32 %v577_v23, %v285_v22  ;;  %v9022_v22 = vld [vmem:[%s11621_s0 + $0x70] sm:$0xff]   ;;  %v9023_v23 = vld [vmem:[%s11621_s0 + $0x100] sm:$0xff]  }
  0xd5   :  { %v8239_v27 = vpop.f32.mrf.mxu0  ;;  %v8273_v28 = vpop.f32.mrf.mxu1 }
  0xd6   :  { %v9811_v29 = vadd.f32 %v8273_v28, %v8239_v27 }
  0xd7   :  { %v288_v32 = vpop.f32.mrf.mxu0  ;;  %v580_v33 = vpop.f32.mrf.mxu1 }
  0xd8   :  { %v9819_v34 = vadd.f32 %v580_v33, %v288_v32 }
  0xd9   :  { %v8242_v35 = vpop.f32.mrf.mxu0  ;;  %v8276_v36 = vpop.f32.mrf.mxu1  ;;  %8445 = vmatmul.mubr.msk.bf16.gmra.mxu0 %vm179_vm2, %v9008_v24  ;;  %8479 = vmatmul.mubr.msk.bf16.gmra.mxu1 %vm179_vm2, %v9009_v25 }
  0xda   :  { %v9823_v37 = vadd.f32 %v8276_v36, %v8242_v35  ;;  %8448 = vmatprep.mubr.msk.bf16.mxu0 %vm179_vm2, %v9010_v30  ;;  %8482 = vmatprep.mubr.msk.bf16.mxu1 %vm179_vm2, %v9011_v31  ;;  %v9024_v35 = vld [vmem:[%s11621_s0 + $0x78] sm:$0xff]   ;;  %v9025_v36 = vld [vmem:[%s11621_s0 + $0x108] sm:$0xff]  }
  0xdb   :  { %v301_v38 = vpop.f32.mrf.mxu0  ;;  %v593_v39 = vpop.f32.mrf.mxu1 }
  0xdc   :  { %v9833_v42 = vadd.f32 %v593_v39, %v301_v38 }
  0xdd   :  { %v8243_v43 = vpop.f32.mrf.mxu0  ;;  %v8277_v44 = vpop.f32.mrf.mxu1 }
  0xde   :  { %v9835_v45 = vadd.f32 %v8277_v44, %v8243_v43  ;;  %v9026_v43 = vld [vmem:[%s11621_s0 + $0x80] sm:$0xff]   ;;  %v9027_v44 = vld [vmem:[%s11621_s0 + $0x110] sm:$0xff]  }
  0xdf   :  { %v304_v48 = vpop.f32.mrf.mxu0  ;;  %v596_v49 = vpop.f32.mrf.mxu1 }
  0xe0   :  { %v9843_v50 = vadd.f32 %v596_v49, %v304_v48 }
  0xe1   :  { %v8246_v51 = vpop.f32.mrf.mxu0  ;;  %v8280_v52 = vpop.f32.mrf.mxu1  ;;  %8449 = vmatmul.mubr.msk.bf16.gmra.mxu0 %vm179_vm2, %v9012_v40  ;;  %8483 = vmatmul.mubr.msk.bf16.gmra.mxu1 %vm179_vm2, %v9013_v41 }
  0xe2   :  { %v9847_v53 = vadd.f32 %v8280_v52, %v8246_v51  ;;  %8452 = vmatprep.mubr.msk.bf16.mxu0 %vm179_vm2, %v9014_v46  ;;  %8486 = vmatprep.mubr.msk.bf16.mxu1 %vm179_vm2, %v9015_v47 }
  0xe3   :  { %v317_v54 = vpop.f32.mrf.mxu0  ;;  %v609_v55 = vpop.f32.mrf.mxu1 }
  0xe4   :  { %v9857_v58 = vadd.f32 %v609_v55, %v317_v54 }
  0xe5   :  { %v8247_v59 = vpop.f32.mrf.mxu0  ;;  %v8281_v60 = vpop.f32.mrf.mxu1 }
  0xe6   :  { %v9859_v61 = vadd.f32 %v8281_v60, %v8247_v59 }
  0xe7   :  { %v320_v2 = vpop.f32.mrf.mxu0  ;;  %v612_v3 = vpop.f32.mrf.mxu1 }
  0xe8   :  { %v9867_v6 = vadd.f32 %v612_v3, %v320_v2  ;;  %v9030_v2 = vld [vmem:[%s11621_s0 + $0x130] sm:$0xff]   ;;  %v9031_v3 = vld [vmem:[%s11621_s0 + $0x240] sm:$0xff]  }
  0xe9   :  { %v8250_v7 = vpop.f32.mrf.mxu0  ;;  %v8284_v8 = vpop.f32.mrf.mxu1  ;;  %8453 = vmatmul.mubr.msk.bf16.gmra.mxu0 %vm179_vm2, %v9016_v56  ;;  %8487 = vmatmul.mubr.msk.bf16.gmra.mxu1 %vm179_vm2, %v9017_v57  ;;  %v9028_v56 = vld [vmem:[%s11621_s0 + $0x88] sm:$0xff]   ;;  %v9029_v57 = vld [vmem:[%s11621_s0 + $0x118] sm:$0xff]  }
  0xea   :  { %v9871_v10 = vadd.f32 %v8284_v8, %v8250_v7  ;;  %8456 = vmatprep.mubr.msk.bf16.mxu0 %vm179_vm2, %v9018_v62  ;;  %8490 = vmatprep.mubr.msk.bf16.mxu1 %vm179_vm2, %v9019_v63 }
  0xeb   :  { %v333_v11 = vpop.f32.mrf.mxu0  ;;  %v625_v12 = vpop.f32.mrf.mxu1 }
  0xec   :  { %v9881_v16 = vadd.f32 %v625_v12, %v333_v11 }
  0xed   :  { %v8251_v17 = vpop.f32.mrf.mxu0  ;;  %v8285_v19 = vpop.f32.mrf.mxu1 }
  0xee   :  { %v9883_v20 = vadd.f32 %v8285_v19, %v8251_v17 }
  0xef   :  { %v336_v24 = vpop.f32.mrf.mxu0  ;;  %v628_v25 = vpop.f32.mrf.mxu1 }
  0xf0   :  { %v9891_v27 = vadd.f32 %v628_v25, %v336_v24  ;;  %v7529_v24 = vld [vmem:[%s11622_s1 + $0x6] sm:$0x3]  ;;  %v7594_v25 = vld [vmem:[%s11622_s1 + $0x8] sm:$0x3] }
  0xf1   :  { %v8254_v28 = vpop.f32.mrf.mxu0  ;;  %v8288_v30 = vpop.f32.mrf.mxu1  ;;  %8457 = vmatmul.mubr.msk.bf16.gmra.mxu0 %vm179_vm2, %v9020_v14  ;;  %8491 = vmatmul.mubr.msk.bf16.gmra.mxu1 %vm179_vm2, %v9021_v15 }
  0xf2   :  { %v9895_v31 = vadd.f32 %v8288_v30, %v8254_v28  ;;  %8460 = vmatprep.mubr.msk.bf16.mxu0 %vm179_vm2, %v9022_v22  ;;  %8494 = vmatprep.mubr.msk.bf16.mxu1 %vm179_vm2, %v9023_v23  ;;  %v9032_v22 = vld [vmem:[%s11621_s0 + $0x138] sm:$0xff]   ;;  %v9033_v23 = vld [vmem:[%s11621_s0 + $0x248] sm:$0xff]  }
  0xf3   :  { %v349_v32 = vpop.f32.mrf.mxu0  ;;  %v641_v33 = vpop.f32.mrf.mxu1 }
  0xf4   :  { %v9905_v38 = vadd.f32 %v641_v33, %v349_v32 }
  0xf5   :  { %v8255_v39 = vpop.f32.mrf.mxu0  ;;  %v8289_v40 = vpop.f32.mrf.mxu1 }
  0xf6   :  { %v9907_v41 = vadd.f32 %v8289_v40, %v8255_v39  ;;  %v9034_v39 = vld [vmem:[%s11621_s0 + $0x140] sm:$0xff]   ;;  %v9035_v40 = vld [vmem:[%s11621_s0 + $0x250] sm:$0xff]  }
  0xf7   :  { %v352_v46 = vpop.f32.mrf.mxu0  ;;  %v644_v47 = vpop.f32.mrf.mxu1 }
  0xf8   :  { %v9915_v48 = vadd.f32 %v644_v47, %v352_v46  ;;  %v9975_v46 = vand.u32 %v7594_v25, %v9306_v5 }
  0xf9   :  { %v8258_v49 = vpop.f32.mrf.mxu0  ;;  %v8292_v51 = vpop.f32.mrf.mxu1  ;;  %8461 = vmatmul.mubr.msk.bf16.gmra.mxu0 %vm179_vm2, %v9024_v35  ;;  %8495 = vmatmul.mubr.msk.bf16.gmra.mxu1 %vm179_vm2, %v9025_v36 }
  0xfa   :  { %v9919_v52 = vadd.f32 %v8292_v51, %v8258_v49  ;;  %8464 = vmatprep.mubr.msk.bf16.mxu0 %vm179_vm2, %v9026_v43  ;;  %8498 = vmatprep.mubr.msk.bf16.mxu1 %vm179_vm2, %v9027_v44  ;;  %v9972_v44 = vand.u32 %v7529_v24, %v9306_v5 }
  0xfb   :  { %v365_v54 = vpop.f32.mrf.mxu0  ;;  %v657_v55 = vpop.f32.mrf.mxu1 }
  0xfc   :  { %v9929_v59 = vadd.f32 %v657_v55, %v365_v54 }
  0xfd   :  { %v8259_v60 = vpop.f32.mrf.mxu0  ;;  %v8293_v62 = vpop.f32.mrf.mxu1 }
  0xfe   :  { %v9931_v63 = vadd.f32 %v8293_v62, %v8259_v60 }
  0xff   :  { %v368_v7 = vpop.f32.mrf.mxu0  ;;  %v660_v8 = vpop.f32.mrf.mxu1 }
 0x100   :  { %v9939_v11 = vadd.f32 %v660_v8, %v368_v7 }
 0x101   :  { %v8262_v12 = vpop.f32.mrf.mxu0  ;;  %v8296_v14 = vpop.f32.mrf.mxu1  ;;  %8465 = vmatmul.mubr.msk.bf16.gmra.mxu0 %vm179_vm2, %v9028_v56  ;;  %8499 = vmatmul.mubr.msk.bf16.gmra.mxu1 %vm179_vm2, %v9029_v57 }
 0x102   :  { %v9943_v15 = vadd.f32 %v8296_v14, %v8262_v12  ;;  %8504 = vmatprep.mubr.msk.bf16.mxu0 %vm179_vm2, %v9030_v2  ;;  %8538 = vmatprep.mubr.msk.bf16.mxu1 %vm179_vm2, %v9031_v3 }
 0x103   :  { %v381_v17 = vpop.f32.mrf.mxu0  ;;  %v673_v19 = vpop.f32.mrf.mxu1 }
 0x104   :  { %v9959_v28 = vadd.f32 %v673_v19, %v381_v17 }
 0x105   :  { %v8263_v30 = vpop.f32.mrf.mxu0  ;;  %v8297_v32 = vpop.f32.mrf.mxu1 }
 0x106   :  { %v9961_v33 = vadd.f32 %v8297_v32, %v8263_v30 }
 0x107   :  { %v384_v35 = vpop.f32.mrf.mxu0  ;;  %v676_v36 = vpop.f32.mrf.mxu1 }
 0x108   :  { %v9969_v43 = vadd.f32 %v676_v36, %v384_v35 }
 0x109   :  { %v8302_v47 = vpop.f32.mrf.mxu0  ;;  %v8336_v49 = vpop.f32.mrf.mxu1  ;;  %8505 = vmatmul.mubr.msk.bf16.vlgmr.msra.gmra.mxu0 %vm179_vm2, %v9032_v22  ;;  %8539 = vmatmul.mubr.msk.bf16.vlgmr.msra.gmra.mxu1 %vm179_vm2, %v9033_v23 }
 0x10a   :  { %v1017_v51 = vadd.f32 %v8302_v47, %v9771_v4  ;;  %8571 = vmatpush3.bf16.msra.mxu0 %v9764_v0  ;;  %8605 = vmatpush3.bf16.msra.mxu1 %v9767_v1 }
 0x10b   :  { %v888_v54 = vpop.f32.mrf.mxu0  ;;  %v1246_v55 = vpop.f32.mrf.mxu1  ;;  %8508 = vmatprep.mubr.msk.bf16.mxu0 %vm179_vm2, %v9034_v39  ;;  %8542 = vmatprep.mubr.msk.bf16.mxu1 %vm179_vm2, %v9035_v40 }
 0x10c   :  { %v9984_v56 = vadd.f32 %v8336_v49, %v1017_v51  ;;  %v1015_v57 = vadd.f32 %v888_v54, %v9780_v9  ;;  %8638 = vmatprep.subr.bf16.mxu0 %v9972_v44  ;;  %8672 = vmatprep.subr.bf16.mxu1 %v9975_v46 }
 0x10d   :  { %15 = vsyncpa [#allocation6], 0  ;;  %v8303_v4 = vpop.f32.mrf.mxu0  ;;  %v8337_v60 = vpop.f32.mrf.mxu1  ;;  %v9036_v0 = vld [vmem:[%s11621_s0 + $0x148] sm:$0xff]   ;;  %v9037_v1 = vld [vmem:[%s11621_s0 + $0x258] sm:$0xff]   ;;  %vm9248_vm3 = vmmov 0   ;;  %s9249_s15 = smov [#allocation3]  }
 0x10e   :  { %v9995_v62 = vadd.f32 %v1246_v55, %v1015_v57  ;;  %v1018_v2 = vadd.f32 %v8303_v4, %v9787_v13  ;;  %v9038_v9 = vld [vmem:[%s11621_s0 + $0x150] sm:$0xff]   ;;  %v9039_v3 = vld [vmem:[%s11621_s0 + $0x260] sm:$0xff]   ;;  %v9040_v35 = vld [vmem:[%s11621_s0 + $0x158] sm:$0xff]   ;;  %s6792_s16 = sshll.u32 %s9249_s15, 4  ;;  %s6793_s16 = int_to_ptr.vmem [resolvable:$true] %s6792_s16 }
 0x10f   :  { %v891_v7 = vpop.f32.mrf.mxu0  ;;  %v1249_v8 = vpop.f32.mrf.mxu1  ;;  %v9042_v40 = vld [vmem:[%s11621_s0 + $0x160] sm:$0xff]   ;;  %p9207_p1 = scmp.lt.s32.totalorder %s6793_s16, %s6793_s16 }
 0x110   :  { %v10004_v12 = vadd.f32 %v8337_v60, %v1018_v2  ;;  %v1016_v14 = vadd.f32 %v891_v7, %v9795_v18 }
 0x111   :  { %v8306_v17 = vpop.f32.mrf.mxu0  ;;  %v8340_v19 = vpop.f32.mrf.mxu1  ;;  %8509 = vmatmul.mubr.msk.bf16.gmra.mxu0 %vm179_vm2, %v9036_v0  ;;  %8543 = vmatmul.mubr.msk.bf16.gmra.mxu1 %vm179_vm2, %v9037_v1 }
 0x112   :  { %v10009_v13 = vadd.f32 %v1249_v8, %v1016_v14  ;;  %v1021_v22 = vadd.f32 %v8306_v17, %v9799_v21  ;;  %8512 = vmatprep.mubr.msk.bf16.mxu0 %vm179_vm2, %v9038_v9  ;;  %8546 = vmatprep.mubr.msk.bf16.mxu1 %vm179_vm2, %v9039_v3  ;;  %v9041_v21 = vld [vmem:[%s11621_s0 + $0x268] sm:$0xff]   ;;  %v9046_v14 = vld [vmem:[%s11621_s0 + $0x170] sm:$0xff]  }
 0x113   :  { %v904_v23 = vpop.f32.mrf.mxu0  ;;  %v1262_v24 = vpop.f32.mrf.mxu1  ;;  %v9044_v3 = vld [vmem:[%s11621_s0 + $0x168] sm:$0xff]  }
 0x114   :  { %v10014_v25 = vadd.f32 %v8340_v19, %v1021_v22  ;;  %v1019_v18 = vadd.f32 %v904_v23, %v9809_v26  ;;  %v9043_v26 = vld [vmem:[%s11621_s0 + $0x270] sm:$0xff]  }
 0x115   :  { %v8307_v30 = vpop.f32.mrf.mxu0  ;;  %v8341_v32 = vpop.f32.mrf.mxu1 }
 0x116   :  { %v10023_v36 = vadd.f32 %v1262_v24, %v1019_v18  ;;  %v1022_v39 = vadd.f32 %v8307_v30, %v9811_v29 }
 0x117   :  { %v907_v47 = vpop.f32.mrf.mxu0  ;;  %v1265_v49 = vpop.f32.mrf.mxu1 }
 0x118   :  { %v10032_v51 = vadd.f32 %v8341_v32, %v1022_v39  ;;  %v1020_v54 = vadd.f32 %v907_v47, %v9819_v34 }
 0x119   :  { %v8310_v55 = vpop.f32.mrf.mxu0  ;;  %v8344_v57 = vpop.f32.mrf.mxu1  ;;  %8513 = vmatmul.mubr.msk.bf16.gmra.mxu0 %vm179_vm2, %v9040_v35  ;;  %8547 = vmatmul.mubr.msk.bf16.gmra.mxu1 %vm179_vm2, %v9041_v21 }
 0x11a   :  { %v10037_v29 = vadd.f32 %v1265_v49, %v1020_v54  ;;  %v1025_v4 = vadd.f32 %v8310_v55, %v9823_v37  ;;  %8516 = vmatprep.mubr.msk.bf16.mxu0 %vm179_vm2, %v9042_v40  ;;  %8550 = vmatprep.mubr.msk.bf16.mxu1 %vm179_vm2, %v9043_v26  ;;  %v9045_v37 = vld [vmem:[%s11621_s0 + $0x278] sm:$0xff]   ;;  %v9050_v54 = vld [vmem:[%s11621_s0 + $0x180] sm:$0xff]  }
 0x11b   :  { %v920_v60 = vpop.f32.mrf.mxu0  ;;  %v1278_v0 = vpop.f32.mrf.mxu1  ;;  %v9048_v26 = vld [vmem:[%s11621_s0 + $0x178] sm:$0xff]  }
 0x11c   :  { %v10042_v1 = vadd.f32 %v8344_v57, %v1025_v4  ;;  %v1023_v34 = vadd.f32 %v920_v60, %v9833_v42  ;;  %v9047_v42 = vld [vmem:[%s11621_s0 + $0x280] sm:$0xff]  }
 0x11d   :  { %v8311_v2 = vpop.f32.mrf.mxu0  ;;  %v8345_v9 = vpop.f32.mrf.mxu1 }
 0x11e   :  { %v10051_v7 = vadd.f32 %v1278_v0, %v1023_v34  ;;  %v1026_v8 = vadd.f32 %v8311_v2, %v9835_v45 }
 0x11f   :  { %v923_v17 = vpop.f32.mrf.mxu0  ;;  %v1281_v19 = vpop.f32.mrf.mxu1 }
 0x120   :  { %v10060_v22 = vadd.f32 %v8345_v9, %v1026_v8  ;;  %v1024_v23 = vadd.f32 %v923_v17, %v9843_v50 }
 0x121   :  { %v8314_v24 = vpop.f32.mrf.mxu0  ;;  %v8348_v18 = vpop.f32.mrf.mxu1  ;;  %8517 = vmatmul.mubr.msk.bf16.gmra.mxu0 %vm179_vm2, %v9044_v3  ;;  %8551 = vmatmul.mubr.msk.bf16.gmra.mxu1 %vm179_vm2, %v9045_v37 }
 0x122   :  { %v10065_v45 = vadd.f32 %v1281_v19, %v1024_v23  ;;  %v1029_v30 = vadd.f32 %v8314_v24, %v9847_v53  ;;  %8520 = vmatprep.mubr.msk.bf16.mxu0 %vm179_vm2, %v9046_v14  ;;  %8554 = vmatprep.mubr.msk.bf16.mxu1 %vm179_vm2, %v9047_v42  ;;  %v9049_v53 = vld [vmem:[%s11621_s0 + $0x288] sm:$0xff]   ;;  %v9054_v23 = vld [vmem:[%s11621_s0 + $0x190] sm:$0xff]  }
 0x123   :  { %v936_v32 = vpop.f32.mrf.mxu0  ;;  %v1294_v35 = vpop.f32.mrf.mxu1  ;;  %v9052_v42 = vld [vmem:[%s11621_s0 + $0x188] sm:$0xff]  }
 0x124   :  { %v10070_v21 = vadd.f32 %v8348_v18, %v1029_v30  ;;  %v1027_v50 = vadd.f32 %v936_v32, %v9857_v58  ;;  %v9051_v58 = vld [vmem:[%s11621_s0 + $0x290] sm:$0xff]  }
 0x125   :  { %v8315_v39 = vpop.f32.mrf.mxu0  ;;  %v8349_v40 = vpop.f32.mrf.mxu1 }
 0x126   :  { %v10079_v47 = vadd.f32 %v1294_v35, %v1027_v50  ;;  %v1030_v49 = vadd.f32 %v8315_v39, %v9859_v61 }
 0x127   :  { %v939_v55 = vpop.f32.mrf.mxu0  ;;  %v1297_v57 = vpop.f32.mrf.mxu1 }
 0x128   :  { %v10088_v4 = vadd.f32 %v8349_v40, %v1030_v49  ;;  %v1028_v60 = vadd.f32 %v939_v55, %v9867_v6 }
 0x129   :  { %v8318_v0 = vpop.f32.mrf.mxu0  ;;  %v8352_v34 = vpop.f32.mrf.mxu1  ;;  %8521 = vmatmul.mubr.msk.bf16.gmra.mxu0 %vm179_vm2, %v9048_v26  ;;  %8555 = vmatmul.mubr.msk.bf16.gmra.mxu1 %vm179_vm2, %v9049_v53 }
 0x12a   :  { %v10093_v61 = vadd.f32 %v1297_v57, %v1028_v60  ;;  %v1033_v2 = vadd.f32 %v8318_v0, %v9871_v10  ;;  %8524 = vmatprep.mubr.msk.bf16.mxu0 %vm179_vm2, %v9050_v54  ;;  %8558 = vmatprep.mubr.msk.bf16.mxu1 %vm179_vm2, %v9051_v58  ;;  %v9053_v10 = vld [vmem:[%s11621_s0 + $0x298] sm:$0xff]   ;;  %v9058_v60 = vld [vmem:[%s11621_s0 + $0x1a0] sm:$0xff]  }
 0x12b   :  { %v952_v9 = vpop.f32.mrf.mxu0  ;;  %v1310_v3 = vpop.f32.mrf.mxu1  ;;  %v9056_v58 = vld [vmem:[%s11621_s0 + $0x198] sm:$0xff]  }
 0x12c   :  { %v10098_v37 = vadd.f32 %v8352_v34, %v1033_v2  ;;  %v1031_v6 = vadd.f32 %v952_v9, %v9881_v16  ;;  %v9055_v16 = vld [vmem:[%s11621_s0 + $0x2a0] sm:$0xff]  }
 0x12d   :  { %v8319_v8 = vpop.f32.mrf.mxu0  ;;  %v8353_v14 = vpop.f32.mrf.mxu1 }
 0x12e   :  { %v10107_v17 = vadd.f32 %v1310_v3, %v1031_v6  ;;  %v1034_v19 = vadd.f32 %v8319_v8, %v9883_v20 }
 0x12f   :  { %v955_v24 = vpop.f32.mrf.mxu0  ;;  %v1313_v18 = vpop.f32.mrf.mxu1 }
 0x130   :  { %v10116_v30 = vadd.f32 %v8353_v14, %v1034_v19  ;;  %v1032_v32 = vadd.f32 %v955_v24, %v9891_v27 }
 0x131   :  { %v8322_v35 = vpop.f32.mrf.mxu0  ;;  %v8356_v50 = vpop.f32.mrf.mxu1  ;;  %8525 = vmatmul.mubr.msk.bf16.gmra.mxu0 %vm179_vm2, %v9052_v42  ;;  %8559 = vmatmul.mubr.msk.bf16.gmra.mxu1 %vm179_vm2, %v9053_v10 }
 0x132   :  { %v10121_v20 = vadd.f32 %v1313_v18, %v1032_v32  ;;  %v1037_v39 = vadd.f32 %v8322_v35, %v9895_v31  ;;  %8528 = vmatprep.mubr.msk.bf16.mxu0 %vm179_vm2, %v9054_v23  ;;  %8562 = vmatprep.mubr.msk.bf16.mxu1 %vm179_vm2, %v9055_v16  ;;  %v9057_v31 = vld [vmem:[%s11621_s0 + $0x2a8] sm:$0xff]   ;;  %v9062_v32 = vld [vmem:[%s11621_s0 + $0x1b0] sm:$0xff]  }
 0x133   :  { %v968_v40 = vpop.f32.mrf.mxu0  ;;  %v1326_v26 = vpop.f32.mrf.mxu1  ;;  %v9060_v16 = vld [vmem:[%s11621_s0 + $0x1a8] sm:$0xff]  }
 0x134   :  { %v10126_v53 = vadd.f32 %v8356_v50, %v1037_v39  ;;  %v1035_v27 = vadd.f32 %v968_v40, %v9905_v38  ;;  %v9059_v38 = vld [vmem:[%s11621_s0 + $0x2b0] sm:$0xff]  }
 0x135   :  { %v8323_v49 = vpop.f32.mrf.mxu0  ;;  %v8357_v54 = vpop.f32.mrf.mxu1 }
 0x136   :  { %v10135_v55 = vadd.f32 %v1326_v26, %v1035_v27  ;;  %v1038_v57 = vadd.f32 %v8323_v49, %v9907_v41 }
 0x137   :  { %v971_v0 = vpop.f32.mrf.mxu0  ;;  %v1329_v34 = vpop.f32.mrf.mxu1 }
 0x138   :  { %v10144_v2 = vadd.f32 %v8357_v54, %v1038_v57  ;;  %v1036_v9 = vadd.f32 %v971_v0, %v9915_v48  ;;  %v9064_v57 = vld [vmem:[%s11621_s0 + $0x1b8] sm:$0xff]   ;;  %v7659_v0 = vld [vmem:[%s11622_s1 + $0xa] sm:$0x3] }
 0x139   :  { %v8326_v3 = vpop.f32.mrf.mxu0  ;;  %v8360_v6 = vpop.f32.mrf.mxu1  ;;  %8529 = vmatmul.mubr.msk.bf16.gmra.mxu0 %vm179_vm2, %v9056_v58  ;;  %8563 = vmatmul.mubr.msk.bf16.gmra.mxu1 %vm179_vm2, %v9057_v31 }
 0x13a   :  { %v10149_v41 = vadd.f32 %v1329_v34, %v1036_v9  ;;  %v1041_v8 = vadd.f32 %v8326_v3, %v9919_v52  ;;  %8532 = vmatprep.mubr.msk.bf16.mxu0 %vm179_vm2, %v9058_v60  ;;  %8566 = vmatprep.mubr.msk.bf16.mxu1 %vm179_vm2, %v9059_v38  ;;  %v9061_v52 = vld [vmem:[%s11621_s0 + $0x2b8] sm:$0xff]   ;;  %v7724_v34 = vld [vmem:[%s11622_s1 + $0xc] sm:$0x3] }
 0x13b   :  { %v984_v14 = vpop.f32.mrf.mxu0  ;;  %v1342_v42 = vpop.f32.mrf.mxu1 }
 0x13c   :  { %v10154_v10 = vadd.f32 %v8360_v6, %v1041_v8  ;;  %v1039_v48 = vadd.f32 %v984_v14, %v9929_v59  ;;  %v9063_v59 = vld [vmem:[%s11621_s0 + $0x2d0] sm:$0xff]   ;;  %v9066_v8 = vld [vmem:[%s11621_s0 + $0x1c0] sm:$0xff]  }
 0x13d   :  { %v8327_v19 = vpop.f32.mrf.mxu0  ;;  %v8361_v23 = vpop.f32.mrf.mxu1  ;;  %v9067_v14 = vld [vmem:[%s11621_s0 + $0x2e0] sm:$0xff]  }
 0x13e   :  { %v10163_v24 = vadd.f32 %v1342_v42, %v1039_v48  ;;  %v1042_v18 = vadd.f32 %v8327_v19, %v9931_v63  ;;  %v10210_v19 = vand.u32 %v7659_v0, %v9306_v5 }
 0x13f   :  { %v987_v35 = vpop.f32.mrf.mxu0  ;;  %v1345_v50 = vpop.f32.mrf.mxu1 }
 0x140   :  { %v10172_v39 = vadd.f32 %v8361_v23, %v1042_v18  ;;  %v1040_v40 = vadd.f32 %v987_v35, %v9939_v11  ;;  %v10213_v23 = vand.u32 %v7724_v34, %v9306_v5 }
 0x141   :  { %v8330_v26 = vpop.f32.mrf.mxu0  ;;  %v8364_v27 = vpop.f32.mrf.mxu1  ;;  %8533 = vmatmul.mubr.msk.bf16.gmra.mxu0 %vm179_vm2, %v9060_v16  ;;  %8567 = vmatmul.mubr.msk.bf16.gmra.mxu1 %vm179_vm2, %v9061_v52 }
 0x142   :  { %v10177_v63 = vadd.f32 %v1345_v50, %v1040_v40  ;;  %v1045_v49 = vadd.f32 %v8330_v26, %v9943_v15  ;;  %8572 = vmatprep.mubr.msk.bf16.mxu0 %vm179_vm2, %v9062_v32  ;;  %8606 = vmatprep.mubr.msk.bf16.mxu1 %vm179_vm2, %v9063_v59  ;;  %v9065_v15 = vld [vmem:[%s11621_s0 + $0x2d8] sm:$0xff]  }
 0x143   :  { %v1000_v54 = vpop.f32.mrf.mxu0  ;;  %v1358_v58 = vpop.f32.mrf.mxu1 }
 0x144   :  { %v10182_v31 = vadd.f32 %v8364_v27, %v1045_v49  ;;  %v1043_v11 = vadd.f32 %v1000_v54, %v9959_v28  ;;  %v9071_v27 = vld [vmem:[%s11621_s0 + $0x2f0] sm:$0xff]  }
 0x145   :  { %v8331_v60 = vpop.f32.mrf.mxu0  ;;  %v8365_v38 = vpop.f32.mrf.mxu1 }
 0x146   :  { %v10197_v9 = vadd.f32 %v1358_v58, %v1043_v11  ;;  %v1046_v28 = vadd.f32 %v8331_v60, %v9961_v33 }
 0x147   :  { %v1003_v3 = vpop.f32.mrf.mxu0  ;;  %v1361_v6 = vpop.f32.mrf.mxu1 }
 0x148   :  { %v10206_v42 = vadd.f32 %v8365_v38, %v1046_v28  ;;  %v1044_v48 = vadd.f32 %v1003_v3, %v9969_v43 }
 0x149   :  { %v8370_v33 = vpop.f32.mrf.mxu0  ;;  %v8404_v16 = vpop.f32.mrf.mxu1  ;;  %8573 = vmatmul.mubr.msk.bf16.vlgmr.msra.gmra.mxu0 %vm179_vm2, %v9064_v57  ;;  %8607 = vmatmul.mubr.msk.bf16.vlgmr.msra.gmra.mxu1 %vm179_vm2, %v9065_v15 }
 0x14a   :  { %v10217_v52 = vadd.f32 %v1361_v6, %v1044_v48  ;;  %v1733_v18 = vadd.f32 %v8370_v33, %v9984_v56  ;;  %8639 = vmatpush3.bf16.msra.mxu0 %v9972_v44  ;;  %8673 = vmatpush3.bf16.msra.mxu1 %v9975_v46  ;;  %v9068_v44 = vld [vmem:[%s11621_s0 + $0x1c8] sm:$0xff]   ;;  %v9072_v6 = vld [vmem:[%s11621_s0 + $0x1d8] sm:$0xff]   ;;  %v9074_v48 = vld [vmem:[%s11621_s0 + $0x1e0] sm:$0xff]  }
 0x14b   :  { %v1604_v43 = vpop.f32.mrf.mxu0  ;;  %v1962_v32 = vpop.f32.mrf.mxu1  ;;  %8576 = vmatprep.mubr.msk.bf16.mxu0 %vm179_vm2, %v9066_v8  ;;  %8610 = vmatprep.mubr.msk.bf16.mxu1 %vm179_vm2, %v9067_v14  ;;  %v9069_v46 = vld [vmem:[%s11621_s0 + $0x2e8] sm:$0xff]  }
 0x14c   :  { %v10224_v59 = vadd.f32 %v8404_v16, %v1733_v18  ;;  %v1731_v35 = vadd.f32 %v1604_v43, %v9995_v62  ;;  %8706 = vmatprep.subr.bf16.mxu0 %v10210_v19  ;;  %8740 = vmatprep.subr.bf16.mxu1 %v10213_v23  ;;  %v9070_v62 = vld [vmem:[%s11621_s0 + $0x1d0] sm:$0xff]  }
 0x14d   :  { %v8371_v50 = vpop.f32.mrf.mxu0  ;;  %v8405_v56 = vpop.f32.mrf.mxu1 }
 0x14e   :  { %v10235_v40 = vadd.f32 %v1962_v32, %v1731_v35  ;;  %v1734_v26 = vadd.f32 %v8371_v50, %v10004_v12 }
 0x14f   :  { %v1607_v49 = vpop.f32.mrf.mxu0  ;;  %v1965_v54 = vpop.f32.mrf.mxu1 }
 0x150   :  { %v10244_v58 = vadd.f32 %v8405_v56, %v1734_v26  ;;  %v1732_v11 = vadd.f32 %v1607_v49, %v10009_v13 }
 0x151   :  { %v8374_v57 = vpop.f32.mrf.mxu0  ;;  %v8408_v60 = vpop.f32.mrf.mxu1  ;;  %8577 = vmatmul.mubr.msk.bf16.gmra.mxu0 %vm179_vm2, %v9068_v44  ;;  %8611 = vmatmul.mubr.msk.bf16.gmra.mxu1 %vm179_vm2, %v9069_v46 }
 0x152   :  { %v10249_v12 = vadd.f32 %v1965_v54, %v1732_v11  ;;  %v1737_v38 = vadd.f32 %v8374_v57, %v10014_v25  ;;  %8580 = vmatprep.mubr.msk.bf16.mxu0 %vm179_vm2, %v9070_v62  ;;  %8614 = vmatprep.mubr.msk.bf16.mxu1 %vm179_vm2, %v9071_v27  ;;  %v9073_v25 = vld [vmem:[%s11621_s0 + $0x2f8] sm:$0xff]   ;;  %v9076_v27 = vld [vmem:[%s11621_s0 + $0x1e8] sm:$0xff]   ;;  %v9078_v11 = vld [vmem:[%s11621_s0 + $0x1f0] sm:$0xff]  }
 0x153   :  { %v1620_v15 = vpop.f32.mrf.mxu0  ;;  %v1978_v0 = vpop.f32.mrf.mxu1 }
 0x154   :  { %v10254_v34 = vadd.f32 %v8408_v60, %v1737_v38  ;;  %v1735_v13 = vadd.f32 %v1620_v15, %v10023_v36  ;;  %v9075_v36 = vld [vmem:[%s11621_s0 + $0x300] sm:$0xff]  }
 0x155   :  { %v8375_v28 = vpop.f32.mrf.mxu0  ;;  %v8409_v3 = vpop.f32.mrf.mxu1 }
 0x156   :  { %v10263_v8 = vadd.f32 %v1978_v0, %v1735_v13  ;;  %v1738_v14 = vadd.f32 %v8375_v28, %v10032_v51 }
 0x157   :  { %v1623_v33 = vpop.f32.mrf.mxu0  ;;  %v1981_v16 = vpop.f32.mrf.mxu1 }
 0x158   :  { %v10272_v18 = vadd.f32 %v8409_v3, %v1738_v14  ;;  %v1736_v43 = vadd.f32 %v1623_v33, %v10037_v29 }
 0x159   :  { %v8378_v32 = vpop.f32.mrf.mxu0  ;;  %v8412_v35 = vpop.f32.mrf.mxu1  ;;  %8581 = vmatmul.mubr.msk.bf16.gmra.mxu0 %vm179_vm2, %v9072_v6  ;;  %8615 = vmatmul.mubr.msk.bf16.gmra.mxu1 %vm179_vm2, %v9073_v25 }
 0x15a   :  { %v10277_v51 = vadd.f32 %v1981_v16, %v1736_v43  ;;  %v1741_v50 = vadd.f32 %v8378_v32, %v10042_v1  ;;  %8584 = vmatprep.mubr.msk.bf16.mxu0 %vm179_vm2, %v9074_v48  ;;  %8618 = vmatprep.mubr.msk.bf16.mxu1 %vm179_vm2, %v9075_v36  ;;  %v9077_v1 = vld [vmem:[%s11621_s0 + $0x308] sm:$0xff]   ;;  %v9080_v36 = vld [vmem:[%s11621_s0 + $0x1f8] sm:$0xff]   ;;  %v9082_v43 = vld [vmem:[%s11621_s0 + $0x200] sm:$0xff]  }
 0x15b   :  { %v1636_v56 = vpop.f32.mrf.mxu0  ;;  %v1994_v44 = vpop.f32.mrf.mxu1 }
 0x15c   :  { %v10282_v46 = vadd.f32 %v8412_v35, %v1741_v50  ;;  %v1739_v29 = vadd.f32 %v1636_v56, %v10051_v7  ;;  %v9079_v7 = vld [vmem:[%s11621_s0 + $0x310] sm:$0xff]  }
 0x15d   :  { %v8379_v26 = vpop.f32.mrf.mxu0  ;;  %v8413_v62 = vpop.f32.mrf.mxu1 }
 0x15e   :  { %v10291_v49 = vadd.f32 %v1994_v44, %v1739_v29  ;;  %v1742_v54 = vadd.f32 %v8379_v26, %v10060_v22 }
 0x15f   :  { %v1639_v57 = vpop.f32.mrf.mxu0  ;;  %v1997_v60 = vpop.f32.mrf.mxu1 }
 0x160   :  { %v10300_v38 = vadd.f32 %v8413_v62, %v1742_v54  ;;  %v1740_v15 = vadd.f32 %v1639_v57, %v10065_v45 }
 0x161   :  { %v8382_v0 = vpop.f32.mrf.mxu0  ;;  %v8416_v13 = vpop.f32.mrf.mxu1  ;;  %8585 = vmatmul.mubr.msk.bf16.gmra.mxu0 %vm179_vm2, %v9076_v27  ;;  %8619 = vmatmul.mubr.msk.bf16.gmra.mxu1 %vm179_vm2, %v9077_v1 }
 0x162   :  { %v10305_v22 = vadd.f32 %v1997_v60, %v1740_v15  ;;  %v1745_v28 = vadd.f32 %v8382_v0, %v10070_v21  ;;  %8588 = vmatprep.mubr.msk.bf16.mxu0 %vm179_vm2, %v9078_v11  ;;  %8622 = vmatprep.mubr.msk.bf16.mxu1 %vm179_vm2, %v9079_v7  ;;  %v9081_v21 = vld [vmem:[%s11621_s0 + $0x318] sm:$0xff]   ;;  %v9084_v7 = vld [vmem:[%s11621_s0 + $0x208] sm:$0xff]   ;;  %v9086_v15 = vld [vmem:[%s11621_s0 + $0x210] sm:$0xff]  }
 0x163   :  { %v1652_v3 = vpop.f32.mrf.mxu0  ;;  %v2010_v6 = vpop.f32.mrf.mxu1 }
 0x164   :  { %v10310_v25 = vadd.f32 %v8416_v13, %v1745_v28  ;;  %v1743_v45 = vadd.f32 %v1652_v3, %v10079_v47  ;;  %v9083_v47 = vld [vmem:[%s11621_s0 + $0x320] sm:$0xff]  }
 0x165   :  { %v8383_v14 = vpop.f32.mrf.mxu0  ;;  %v8417_v48 = vpop.f32.mrf.mxu1 }
 0x166   :  { %v10319_v33 = vadd.f32 %v2010_v6, %v1743_v45  ;;  %v1746_v16 = vadd.f32 %v8383_v14, %v10088_v4 }
 0x167   :  { %v1655_v32 = vpop.f32.mrf.mxu0  ;;  %v2013_v35 = vpop.f32.mrf.mxu1 }
 0x168   :  { %v10328_v50 = vadd.f32 %v8417_v48, %v1746_v16  ;;  %v1744_v56 = vadd.f32 %v1655_v32, %v10093_v61 }
 0x169   :  { %v8386_v44 = vpop.f32.mrf.mxu0  ;;  %v8420_v29 = vpop.f32.mrf.mxu1  ;;  %8589 = vmatmul.mubr.msk.bf16.gmra.mxu0 %vm179_vm2, %v9080_v36  ;;  %8623 = vmatmul.mubr.msk.bf16.gmra.mxu1 %vm179_vm2, %v9081_v21 }
 0x16a   :  { %v10333_v4 = vadd.f32 %v2013_v35, %v1744_v56  ;;  %v1749_v26 = vadd.f32 %v8386_v44, %v10098_v37  ;;  %8592 = vmatprep.mubr.msk.bf16.mxu0 %vm179_vm2, %v9082_v43  ;;  %8626 = vmatprep.mubr.msk.bf16.mxu1 %vm179_vm2, %v9083_v47  ;;  %v9085_v37 = vld [vmem:[%s11621_s0 + $0x328] sm:$0xff]   ;;  %v9088_v47 = vld [vmem:[%s11621_s0 + $0x218] sm:$0xff]   ;;  %v9090_v56 = vld [vmem:[%s11621_s0 + $0x220] sm:$0xff]  }
 0x16b   :  { %v1668_v62 = vpop.f32.mrf.mxu0  ;;  %v2026_v27 = vpop.f32.mrf.mxu1 }
 0x16c   :  { %v10338_v1 = vadd.f32 %v8420_v29, %v1749_v26  ;;  %v1747_v61 = vadd.f32 %v1668_v62, %v10107_v17  ;;  %v9087_v17 = vld [vmem:[%s11621_s0 + $0x330] sm:$0xff]  }
 0x16d   :  { %v8387_v54 = vpop.f32.mrf.mxu0  ;;  %v8421_v11 = vpop.f32.mrf.mxu1 }
 0x16e   :  { %v10347_v57 = vadd.f32 %v2026_v27, %v1747_v61  ;;  %v1750_v60 = vadd.f32 %v8387_v54, %v10116_v30 }
 0x16f   :  { %v1671_v0 = vpop.f32.mrf.mxu0  ;;  %v2029_v13 = vpop.f32.mrf.mxu1 }
 0x170   :  { %v10356_v28 = vadd.f32 %v8421_v11, %v1750_v60  ;;  %v1748_v3 = vadd.f32 %v1671_v0, %v10121_v20 }
 0x171   :  { %v8390_v6 = vpop.f32.mrf.mxu0  ;;  %v8424_v45 = vpop.f32.mrf.mxu1  ;;  %8593 = vmatmul.mubr.msk.bf16.gmra.mxu0 %vm179_vm2, %v9084_v7  ;;  %8627 = vmatmul.mubr.msk.bf16.gmra.mxu1 %vm179_vm2, %v9085_v37 }
 0x172   :  { %v10361_v30 = vadd.f32 %v2029_v13, %v1748_v3  ;;  %v1753_v14 = vadd.f32 %v8390_v6, %v10126_v53  ;;  %8596 = vmatprep.mubr.msk.bf16.mxu0 %vm179_vm2, %v9086_v15  ;;  %8630 = vmatprep.mubr.msk.bf16.mxu1 %vm179_vm2, %v9087_v17  ;;  %v9089_v53 = vld [vmem:[%s11621_s0 + $0x338] sm:$0xff]   ;;  %v9092_v17 = vld [vmem:[%s11621_s0 + $0x228] sm:$0xff]  }
 0x173   :  { %v1684_v48 = vpop.f32.mrf.mxu0  ;;  %v2042_v36 = vpop.f32.mrf.mxu1  ;;  %v9094_v3 = vld [vmem:[%s11621_s0 + $0x1b8] sm:$0xff]  }
 0x174   :  { %v10366_v21 = vadd.f32 %v8424_v45, %v1753_v14  ;;  %v1751_v20 = vadd.f32 %v1684_v48, %v10135_v55  ;;  %v9091_v55 = vld [vmem:[%s11621_s0 + $0x340] sm:$0xff]  }
 0x175   :  { %v8391_v16 = vpop.f32.mrf.mxu0  ;;  %v8425_v43 = vpop.f32.mrf.mxu1 }
 0x176   :  { %v10375_v32 = vadd.f32 %v2042_v36, %v1751_v20  ;;  %v1754_v35 = vadd.f32 %v8391_v16, %v10144_v2 }
 0x177   :  { %v1687_v44 = vpop.f32.mrf.mxu0  ;;  %v2045_v29 = vpop.f32.mrf.mxu1 }
 0x178   :  { %v10384_v26 = vadd.f32 %v8425_v43, %v1754_v35  ;;  %v1752_v62 = vadd.f32 %v1687_v44, %v10149_v41  ;;  %v9096_v35 = vld [vmem:[%s11621_s0 + $0x1c0] sm:$0xff]   ;;  %v7789_v44 = vld [vmem:[%s11622_s1 + $0xe] sm:$0x3] }
 0x179   :  { %v8394_v27 = vpop.f32.mrf.mxu0  ;;  %v8428_v61 = vpop.f32.mrf.mxu1  ;;  %8597 = vmatmul.mubr.msk.bf16.gmra.mxu0 %vm179_vm2, %v9088_v47  ;;  %8631 = vmatmul.mubr.msk.bf16.gmra.mxu1 %vm179_vm2, %v9089_v53 }
 0x17a   :  { %v10389_v2 = vadd.f32 %v2045_v29, %v1752_v62  ;;  %v1757_v54 = vadd.f32 %v8394_v27, %v10154_v10  ;;  %8600 = vmatprep.mubr.msk.bf16.mxu0 %vm179_vm2, %v9090_v56  ;;  %8634 = vmatprep.mubr.msk.bf16.mxu1 %vm179_vm2, %v9091_v55  ;;  %v9093_v10 = vld [vmem:[%s11621_s0 + $0x348] sm:$0xff]   ;;  %v7854_v29 = vld [vmem:[%s11622_s1 + $0x10] sm:$0x3] }
 0x17b   :  { %v1700_v11 = vpop.f32.mrf.mxu0  ;;  %v2058_v7 = vpop.f32.mrf.mxu1 }
 0x17c   :  { %v10394_v37 = vadd.f32 %v8428_v61, %v1757_v54  ;;  %v1755_v41 = vadd.f32 %v1700_v11, %v10163_v24  ;;  %v9095_v24 = vld [vmem:[%s11621_s0 + $0x248] sm:$0xff]   ;;  %v9099_v11 = vld [vmem:[%s11621_s0 + $0x258] sm:$0xff]  }
 0x17d   :  { %v8395_v60 = vpop.f32.mrf.mxu0  ;;  %v8429_v15 = vpop.f32.mrf.mxu1  ;;  %v9098_v54 = vld [vmem:[%s11621_s0 + $0x1c8] sm:$0xff]  }
 0x17e   :  { %v10403_v0 = vadd.f32 %v2058_v7, %v1755_v41  ;;  %v1758_v13 = vadd.f32 %v8395_v60, %v10172_v39  ;;  %v10450_v60 = vand.u32 %v7789_v44, %v9306_v5  ;;  %v9104_v44 = vld [vmem:[%s11621_s0 + $0x1e0] sm:$0xff]  }
 0x17f   :  { %v1703_v6 = vpop.f32.mrf.mxu0  ;;  %v2061_v45 = vpop.f32.mrf.mxu1 }
 0x180   :  { %11632 = vst [vmem:[#allocation9_spill] sm:$0xff] %v10403_v0  ;;  %v10412_v14 = vadd.f32 %v8429_v15, %v1758_v13  ;;  %v1756_v48 = vadd.f32 %v1703_v6, %v10177_v63  ;;  %v10453_v15 = vand.u32 %v7854_v29, %v9306_v5  ;;  %v9101_v6 = vld [vmem:[%s11621_s0 + $0x260] sm:$0xff]  }
 0x181   :  { %v8398_v36 = vpop.f32.mrf.mxu0  ;;  %v8432_v20 = vpop.f32.mrf.mxu1  ;;  %8601 = vmatmul.mubr.msk.bf16.gmra.mxu0 %vm179_vm2, %v9092_v17  ;;  %8635 = vmatmul.mubr.msk.bf16.gmra.mxu1 %vm179_vm2, %v9093_v10 }
 0x182   :  { %v10417_v39 = vadd.f32 %v2061_v45, %v1756_v48  ;;  %v1761_v16 = vadd.f32 %v8398_v36, %v10182_v31  ;;  %8640 = vmatprep.mubr.msk.bf16.mxu0 %vm179_vm2, %v9094_v3  ;;  %8674 = vmatprep.mubr.msk.bf16.mxu1 %vm179_vm2, %v9095_v24  ;;  %v9097_v31 = vld [vmem:[%s11621_s0 + $0x250] sm:$0xff]   ;;  %v9103_v48 = vld [vmem:[%s11621_s0 + $0x268] sm:$0xff]  }
 0x183   :  { %v1716_v43 = vpop.f32.mrf.mxu0  ;;  %v2074_v47 = vpop.f32.mrf.mxu1 }
 0x184   :  { %11633 = vst [vmem:[#allocation10_spill] sm:$0xff] %v10417_v39  ;;  %v10422_v53 = vadd.f32 %v8432_v20, %v1761_v16  ;;  %v1759_v63 = vadd.f32 %v1716_v43, %v10197_v9 }
 0x185   :  { %v8399_v56 = vpop.f32.mrf.mxu0  ;;  %v8433_v55 = vpop.f32.mrf.mxu1 }
 0x186   :  { %v10437_v62 = vadd.f32 %v2074_v47, %v1759_v63  ;;  %v1762_v9 = vadd.f32 %v8399_v56, %v10206_v42 }
 0x187   :  { %v1719_v27 = vpop.f32.mrf.mxu0  ;;  %v2077_v61 = vpop.f32.mrf.mxu1 }
 0x188   :  { %11634 = vst [vmem:[#allocation11_spill] sm:$0xff] %v10437_v62  ;;  %v10446_v7 = vadd.f32 %v8433_v55, %v1762_v9  ;;  %v1760_v41 = vadd.f32 %v1719_v27, %v10217_v52  ;;  %v9106_v9 = vld [vmem:[%s11621_s0 + $0x1e8] sm:$0xff]   ;;  %v9107_v27 = vld [vmem:[%s11621_s0 + $0x278] sm:$0xff]  }
 0x189   :  { %v8438_v42 = vpop.f32.mrf.mxu0  ;;  %v8472_v17 = vpop.f32.mrf.mxu1  ;;  %8641 = vmatmul.mubr.msk.bf16.vlgmr.msra.gmra.mxu0 %vm179_vm2, %v9096_v35  ;;  %8675 = vmatmul.mubr.msk.bf16.vlgmr.msra.gmra.mxu1 %vm179_vm2, %v9097_v31 }
 0x18a   :  { %v10457_v10 = vadd.f32 %v2077_v61, %v1760_v41  ;;  %v2449_v13 = vadd.f32 %v8438_v42, %v10224_v59  ;;  %8707 = vmatpush3.bf16.msra.mxu0 %v10210_v19  ;;  %8741 = vmatpush3.bf16.msra.mxu1 %v10213_v23  ;;  %v9100_v23 = vld [vmem:[%s11621_s0 + $0x1d0] sm:$0xff]  }
 0x18b   :  { %v2320_v52 = vpop.f32.mrf.mxu0  ;;  %v10462_v3 = vpop.f32.mrf.mxu1  ;;  %8644 = vmatprep.mubr.msk.bf16.mxu0 %vm179_vm2, %v9098_v54  ;;  %8678 = vmatprep.mubr.msk.bf16.mxu1 %vm179_vm2, %v9099_v11 }
 0x18c   :  { %11635 = vst [vmem:[#allocation12_spill] sm:$0xff] %v10457_v10  ;;  %v10466_v5 = vadd.f32 %v8472_v17, %v2449_v13  ;;  %v10469_v24 = vadd.f32 %v2320_v52, %v10235_v40  ;;  %8774 = vmatprep.subr.bf16.mxu0 %v10450_v60  ;;  %8808 = vmatprep.subr.bf16.mxu1 %v10453_v15  ;;  %v9102_v40 = vld [vmem:[%s11621_s0 + $0x1d8] sm:$0xff]  }
 0x18d   :  { %v8439_v59 = vpop.f32.mrf.mxu0  ;;  %v8473_v19 = vpop.f32.mrf.mxu1 }
 0x18e   :  { %v2450_v45 = vadd.f32 %v8439_v59, %v10244_v58 }
 0x18f   :  { %v10486_v36 = vpop.f32.mrf.mxu0  ;;  %v10488_v20 = vpop.f32.mrf.mxu1 }
 0x190   :  { %v10490_v16 = vadd.f32 %v8473_v19, %v2450_v45  ;;  %v9110_v45 = vld [vmem:[%s11621_s0 + $0x1f8] sm:$0xff]  }
 0x191   :  { %v8442_v43 = vpop.f32.mrf.mxu0  ;;  %v8476_v47 = vpop.f32.mrf.mxu1  ;;  %8645 = vmatmul.mubr.msk.bf16.gmra.mxu0 %vm179_vm2, %v9100_v23  ;;  %8679 = vmatmul.mubr.msk.bf16.gmra.mxu1 %vm179_vm2, %v9101_v6  ;;  %v9108_v23 = vld [vmem:[%s11621_s0 + $0x1f0] sm:$0xff]  }
 0x192   :  { %v2453_v58 = vadd.f32 %v8442_v43, %v10254_v34  ;;  %8648 = vmatprep.mubr.msk.bf16.mxu0 %vm179_vm2, %v9102_v40  ;;  %8682 = vmatprep.mubr.msk.bf16.mxu1 %vm179_vm2, %v9103_v48  ;;  %v9105_v34 = vld [vmem:[%s11621_s0 + $0x270] sm:$0xff]   ;;  %v9111_v40 = vld [vmem:[%s11621_s0 + $0x288] sm:$0xff]  }
 0x193   :  { %v10497_v63 = vpop.f32.mrf.mxu0  ;;  %v10499_v35 = vpop.f32.mrf.mxu1 }
 0x194   :  { %v10501_v56 = vadd.f32 %v8476_v47, %v2453_v58 }
 0x195   :  { %v8443_v55 = vpop.f32.mrf.mxu0  ;;  %v8477_v31 = vpop.f32.mrf.mxu1 }
 0x196   :  { %v2454_v29 = vadd.f32 %v8443_v55, %v10272_v18 }
 0x197   :  { %v10516_v61 = vpop.f32.mrf.mxu0  ;;  %v10518_v54 = vpop.f32.mrf.mxu1 }
 0x198   :  { %v10520_v11 = vadd.f32 %v8477_v31, %v2454_v29 }
 0x199   :  { %v8446_v41 = vpop.f32.mrf.mxu0  ;;  %v8480_v42 = vpop.f32.mrf.mxu1  ;;  %8649 = vmatmul.mubr.msk.bf16.gmra.mxu0 %vm179_vm2, %v9104_v44  ;;  %8683 = vmatmul.mubr.msk.bf16.gmra.mxu1 %vm179_vm2, %v9105_v34 }
 0x19a   :  { %v2457_v18 = vadd.f32 %v8446_v41, %v10282_v46  ;;  %8652 = vmatprep.mubr.msk.bf16.mxu0 %vm179_vm2, %v9106_v9  ;;  %8686 = vmatprep.mubr.msk.bf16.mxu1 %vm179_vm2, %v9107_v27  ;;  %v9109_v46 = vld [vmem:[%s11621_s0 + $0x280] sm:$0xff]  }
 0x19b   :  { %v10527_v17 = vpop.f32.mrf.mxu0  ;;  %v10529_v13 = vpop.f32.mrf.mxu1  ;;  %v9112_v27 = vld [vmem:[%s11621_s0 + $0x200] sm:$0xff]  }
 0x19c   :  { %v10531_v52 = vadd.f32 %v8480_v42, %v2457_v18  ;;  %v9114_v42 = vld [vmem:[%s11621_s0 + $0x208] sm:$0xff]   ;;  %v9115_v18 = vld [vmem:[%s11621_s0 + $0x298] sm:$0xff]  }
 0x19d   :  { %v8447_v59 = vpop.f32.mrf.mxu0  ;;  %v8481_v19 = vpop.f32.mrf.mxu1 }
 0x19e   :  { %v2458_v6 = vadd.f32 %v8447_v59, %v10300_v38 }
 0x19f   :  { %v10546_v48 = vpop.f32.mrf.mxu0  ;;  %v10548_v43 = vpop.f32.mrf.mxu1 }
 0x1a0   :  { %v10550_v47 = vadd.f32 %v8481_v19, %v2458_v6 }
 0x1a1   :  { %v8450_v58 = vpop.f32.mrf.mxu0  ;;  %v8484_v55 = vpop.f32.mrf.mxu1  ;;  %8653 = vmatmul.mubr.msk.bf16.gmra.mxu0 %vm179_vm2, %v9108_v23  ;;  %8687 = vmatmul.mubr.msk.bf16.gmra.mxu1 %vm179_vm2, %v9109_v46 }
 0x1a2   :  { %v2461_v38 = vadd.f32 %v8450_v58, %v10310_v25  ;;  %8656 = vmatprep.mubr.msk.bf16.mxu0 %vm179_vm2, %v9110_v45  ;;  %8690 = vmatprep.mubr.msk.bf16.mxu1 %vm179_vm2, %v9111_v40  ;;  %v9113_v25 = vld [vmem:[%s11621_s0 + $0x290] sm:$0xff]  }
 0x1a3   :  { %v10557_v31 = vpop.f32.mrf.mxu0  ;;  %v10559_v44 = vpop.f32.mrf.mxu1 }
 0x1a4   :  { %v10561_v34 = vadd.f32 %v8484_v55, %v2461_v38 }
 0x1a5   :  { %v8451_v29 = vpop.f32.mrf.mxu0  ;;  %v8485_v9 = vpop.f32.mrf.mxu1 }
 0x1a6   :  { %v2462_v41 = vadd.f32 %v8451_v29, %v10328_v50  ;;  %v9116_v29 = vld [vmem:[%s11621_s0 + $0x210] sm:$0xff]  }
 0x1a7   :  { %v10576_v59 = vpop.f32.mrf.mxu0  ;;  %v10578_v19 = vpop.f32.mrf.mxu1 }
 0x1a8   :  { %v10580_v23 = vadd.f32 %v8485_v9, %v2462_v41 }
 0x1a9   :  { %v8454_v46 = vpop.f32.mrf.mxu0  ;;  %v8488_v6 = vpop.f32.mrf.mxu1  ;;  %8657 = vmatmul.mubr.msk.bf16.gmra.mxu0 %vm179_vm2, %v9112_v27  ;;  %8691 = vmatmul.mubr.msk.bf16.gmra.mxu1 %vm179_vm2, %v9113_v25  ;;  %v9118_v27 = vld [vmem:[%s11621_s0 + $0x218] sm:$0xff]   ;;  %v9119_v25 = vld [vmem:[%s11621_s0 + $0x2a8] sm:$0xff]  }
 0x1aa   :  { %v2465_v50 = vadd.f32 %v8454_v46, %v10338_v1  ;;  %8660 = vmatprep.mubr.msk.bf16.mxu0 %vm179_vm2, %v9114_v42  ;;  %8694 = vmatprep.mubr.msk.bf16.mxu1 %vm179_vm2, %v9115_v18  ;;  %v9117_v1 = vld [vmem:[%s11621_s0 + $0x2a0] sm:$0xff]  }
 0x1ab   :  { %v10587_v45 = vpop.f32.mrf.mxu0  ;;  %v10589_v40 = vpop.f32.mrf.mxu1 }
 0x1ac   :  { %v10591_v58 = vadd.f32 %v8488_v6, %v2465_v50 }
 0x1ad   :  { %v8455_v55 = vpop.f32.mrf.mxu0  ;;  %v8489_v38 = vpop.f32.mrf.mxu1 }
 0x1ae   :  { %v2466_v9 = vadd.f32 %v8455_v55, %v10356_v28 }
 0x1af   :  { %v10606_v41 = vpop.f32.mrf.mxu0  ;;  %v10608_v42 = vpop.f32.mrf.mxu1 }
 0x1b0   :  { %v10610_v18 = vadd.f32 %v8489_v38, %v2466_v9 }
 0x1b1   :  { %v8458_v46 = vpop.f32.mrf.mxu0  ;;  %v8492_v6 = vpop.f32.mrf.mxu1  ;;  %8661 = vmatmul.mubr.msk.bf16.gmra.mxu0 %vm179_vm2, %v9116_v29  ;;  %8695 = vmatmul.mubr.msk.bf16.gmra.mxu1 %vm179_vm2, %v9117_v1  ;;  %v9120_v29 = vld [vmem:[%s11621_s0 + $0x220] sm:$0xff]  }
 0x1b2   :  { %v2469_v28 = vadd.f32 %v8458_v46, %v10366_v21  ;;  %8664 = vmatprep.mubr.msk.bf16.mxu0 %vm179_vm2, %v9118_v27  ;;  %8698 = vmatprep.mubr.msk.bf16.mxu1 %vm179_vm2, %v9119_v25  ;;  %v9121_v21 = vld [vmem:[%s11621_s0 + $0x2b0] sm:$0xff]   ;;  %v9122_v27 = vld [vmem:[%s11621_s0 + $0x228] sm:$0xff]   ;;  %v9123_v25 = vld [vmem:[%s11621_s0 + $0x2b8] sm:$0xff]  }
 0x1b3   :  { %v10617_v50 = vpop.f32.mrf.mxu0  ;;  %v10619_v55 = vpop.f32.mrf.mxu1 }
 0x1b4   :  { %v10621_v10 = vadd.f32 %v8492_v6, %v2469_v28 }
 0x1b5   :  { %v8459_v38 = vpop.f32.mrf.mxu0  ;;  %v8493_v9 = vpop.f32.mrf.mxu1 }
 0x1b6   :  { %11636 = vst [vmem:[#allocation13_spill] sm:$0xff] %v10621_v10  ;;  %v2470_v1 = vadd.f32 %v8459_v38, %v10384_v26 }
 0x1b7   :  { %v10636_v46 = vpop.f32.mrf.mxu0  ;;  %v10638_v6 = vpop.f32.mrf.mxu1 }
 0x1b8   :  { %v10640_v28 = vadd.f32 %v8493_v9, %v2470_v1 }
 0x1b9   :  { %v8462_v62 = vpop.f32.mrf.mxu0  ;;  %v8496_v39 = vpop.f32.mrf.mxu1  ;;  %8665 = vmatmul.mubr.msk.bf16.gmra.mxu0 %vm179_vm2, %v9120_v29  ;;  %8699 = vmatmul.mubr.msk.bf16.gmra.mxu1 %vm179_vm2, %v9121_v21  ;;  %v9124_v29 = vld [vmem:[%s11621_s0 + $0x230] sm:$0xff]   ;;  %v9126_v21 = vld [vmem:[%s11621_s0 + $0x2d8] sm:$0xff]  }
 0x1ba   :  { %11637 = vst [vmem:[#allocation14_spill] sm:$0xff] %v10640_v28  ;;  %v2473_v26 = vadd.f32 %v8462_v62, %v10394_v37  ;;  %8668 = vmatprep.mubr.msk.bf16.mxu0 %vm179_vm2, %v9122_v27  ;;  %8702 = vmatprep.mubr.msk.bf16.mxu1 %vm179_vm2, %v9123_v25  ;;  %v9125_v37 = vld [vmem:[%s11621_s0 + $0x2c0] sm:$0xff]  }
 0x1bb   :  { %v10647_v38 = vpop.f32.mrf.mxu0  ;;  %v10649_v10 = vpop.f32.mrf.mxu1 }
 0x1bc   :  { %11638 = vst [vmem:[#allocation15_spill] sm:$0xff] %v10649_v10  ;;  %v10651_v0 = vadd.f32 %v8496_v39, %v2473_v26  ;;  %v9127_v39 = vld [vmem:[%s11621_s0 + $0x1c0] sm:$0xff]  }
 0x1bd   :  { %v8463_v9 = vpop.f32.mrf.mxu0  ;;  %v8497_v1 = vpop.f32.mrf.mxu1 }
 0x1be   :  { %11639 = vst [vmem:[#allocation16_spill] sm:$0xff] %v10651_v0  ;;  %v2474_v62 = vadd.f32 %v8463_v9, %v10412_v14 }
 0x1bf   :  { %v10666_v27 = vpop.f32.mrf.mxu0  ;;  %v10668_v25 = vpop.f32.mrf.mxu1 }
 0x1c0   :  { %11640 = vst [vmem:[#allocation17_spill] sm:$0xff] %v10666_v27  ;;  %v10670_v26 = vadd.f32 %v8497_v1, %v2474_v62 }
 0x1c1   :  { %v8466_v0 = vpop.f32.mrf.mxu0  ;;  %v8500_v10 = vpop.f32.mrf.mxu1  ;;  %8669 = vmatmul.mubr.msk.bf16.gmra.mxu0 %vm179_vm2, %v9124_v29  ;;  %8703 = vmatmul.mubr.msk.bf16.gmra.mxu1 %vm179_vm2, %v9125_v37  ;;  %v9128_v29 = vld [vmem:[%s11621_s0 + $0x2e0] sm:$0xff]  }
 0x1c2   :  { %v2477_v14 = vadd.f32 %v8466_v0, %v10422_v53  ;;  %8708 = vmatprep.mubr.msk.bf16.mxu0 %vm179_vm2, %v9126_v21  ;;  %8742 = vmatprep.mubr.msk.bf16.mxu1 %vm179_vm2, %v9127_v39  ;;  %v9129_v0 = vld [vmem:[%s11621_s0 + $0x1c8] sm:$0xff]   ;;  %v9131_v39 = vld [vmem:[%s11621_s0 + $0x1d0] sm:$0xff]  }
 0x1c3   :  { %v10677_v9 = vpop.f32.mrf.mxu0  ;;  %v10679_v28 = vpop.f32.mrf.mxu1 }
 0x1c4   :  { %11641 = vst [vmem:[#allocation18_spill] sm:$0xff] %v10679_v28  ;;  %v10681_v27 = vadd.f32 %v8500_v10, %v2477_v14  ;;  %v9130_v10 = vld [vmem:[%s11621_s0 + $0x2e8] sm:$0xff]  }
 0x1c5   :  { %v8467_v1 = vpop.f32.mrf.mxu0  ;;  %v8501_v62 = vpop.f32.mrf.mxu1 }
 0x1c6   :  { %11642 = vst [vmem:[#allocation19_spill] sm:$0xff] %v10681_v27  ;;  %v2478_v53 = vadd.f32 %v8467_v1, %v10446_v7  ;;  %v2805_v7 = vadd.f32 %v10462_v3, %v10469_v24  ;;  %v2448_v1 = vadd.f32 %v10486_v36, %v10249_v12  ;;  %v9132_v3 = vld [vmem:[%s11621_s0 + $0x2f0] sm:$0xff]   ;;  %v9133_v12 = vld [vmem:[%s11621_s0 + $0x1d8] sm:$0xff]  }
 0x1c7   :  { %v10690_v37 = vpop.f32.mrf.mxu0  ;;  %v10692_v21 = vpop.f32.mrf.mxu1  ;;  %v9134_v36 = vld [vmem:[%s11621_s0 + $0x2f8] sm:$0xff]  }
 0x1c8   :  { %11643 = vst [vmem:[#allocation20_spill] sm:$0xff] %v10692_v21  ;;  %v10700_v14 = vadd.f32 %v8501_v62, %v2478_v53 }
 0x1c9   :  { %v8506_v27 = vpop.f32.mrf.mxu0  ;;  %v10702_v28 = vpop.f32.mrf.mxu1  ;;  %8709 = vmatmul.mubr.msk.bf16.vlgmr.msra.gmra.mxu0 %vm179_vm2, %v9128_v29  ;;  %8743 = vmatmul.mubr.msk.bf16.vlgmr.msra.gmra.mxu1 %vm179_vm2, %v9129_v0 }
 0x1ca   :  { %8775 = vmatpush3.bf16.msra.mxu0 %v10450_v60  ;;  %8809 = vmatpush3.bf16.msra.mxu1 %v10453_v15  ;;  %v2806_v60 = vadd.f32 %v10488_v20, %v2448_v1  ;;  %v2451_v15 = vadd.f32 %v10497_v63, %v10263_v8  ;;  %v3165_v24 = vadd.f32 %v8506_v27, %v10466_v5 }
 0x1cb   :  { %v3036_v21 = vpop.f32.mrf.mxu0  ;;  %v10712_v62 = vpop.f32.mrf.mxu1  ;;  %8712 = vmatprep.mubr.msk.bf16.mxu0 %vm179_vm2, %v9130_v10  ;;  %8746 = vmatprep.mubr.msk.bf16.mxu1 %vm179_vm2, %v9131_v39  ;;  %v10737_v10 = vld [vmem:[%s11623_s2] ss:$0 sm:$0xff]  ;;  %v2452_v27 = vadd.f32 %v10516_v61, %v10277_v51 }
 0x1cc   :  { %11644 = vst [vmem:[#allocation21_spill] sm:$0xff] %v10712_v62  ;;  %v3163_v29 = vadd.f32 %v3036_v21, %v2805_v7  ;;  %v9135_v21 = vld [vmem:[%s11621_s0 + $0x1e0] sm:$0xff]   ;;  %v3204_v62 = vadd.f32 %v10737_v10, %v3165_v24 }
 0x1cd   :  { %v8507_v53 = vpop.f32.mrf.mxu0  ;;  %v10716_v0 = vpop.f32.mrf.mxu1  ;;  %v9136_v24 = vld [vmem:[%s11621_s0 + $0x300] sm:$0xff]  }
 0x1ce   :  { %11645 = vst [vmem:[#allocation22_spill] sm:$0xff] %v10716_v0  ;;  %v3202_v8 = vadd.f32 %v10737_v10, %v3163_v29  ;;  %v3166_v5 = vadd.f32 %v8507_v53, %v10490_v16  ;;  %v2809_v0 = vadd.f32 %v10499_v35, %v2451_v15  ;;  %v2455_v35 = vadd.f32 %v10527_v17, %v10291_v49  ;;  %v9138_v49 = vld [vmem:[%s11621_s0 + $0x308] sm:$0xff]   ;;  %v9139_v17 = vld [vmem:[%s11621_s0 + $0x1f0] sm:$0xff]  }
 0x1cf   :  { %v3039_v39 = vpop.f32.mrf.mxu0  ;;  %v10739_v20 = vpop.f32.mrf.mxu1 }
 0x1d0   :  { %11646 = vst [vmem:[#allocation23_spill] sm:$0xff] %v10739_v20  ;;  %v3164_v63 = vadd.f32 %v3039_v39, %v2806_v60  ;;  %v3234_v51 = vmax.f32 %v3202_v8, 0.0  ;;  %v3205_v61 = vadd.f32 %v10737_v10, %v3166_v5 }
 0x1d1   :  { %v8510_v7 = vpop.f32.mrf.mxu0  ;;  %v10745_v1 = vpop.f32.mrf.mxu1  ;;  %8713 = vmatmul.mubr.msk.bf16.gmra.mxu0 %vm179_vm2, %v9132_v3  ;;  %8747 = vmatmul.mubr.msk.bf16.gmra.mxu1 %vm179_vm2, %v9133_v12  ;;  %v2810_v12 = vadd.f32 %v10518_v54, %v2452_v27 }
 0x1d2   :  { %v3203_v20 = vadd.f32 %v10737_v10, %v3164_v63  ;;  %8716 = vmatprep.mubr.msk.bf16.mxu0 %vm179_vm2, %v9134_v36  ;;  %8750 = vmatprep.mubr.msk.bf16.mxu1 %vm179_vm2, %v9135_v21  ;;  %v9137_v36 = vld [vmem:[%s11621_s0 + $0x1e8] sm:$0xff]   ;;  %v3236_v21 = vmax.f32 %v3204_v62, 0.0  ;;  %v3237_v5 = vmax.f32 %v3205_v61, 0.0 }
 0x1d3   :  { %v3052_v16 = vpop.f32.mrf.mxu0  ;;  %v10754_v29 = vpop.f32.mrf.mxu1 }
 0x1d4   :  { %v3235_v53 = vmax.f32 %v3203_v20, 0.0  ;;  %v3167_v3 = vadd.f32 %v3052_v16, %v2809_v0  ;;  %v3169_v0 = vadd.f32 %v8510_v7, %v10501_v56  ;;  %v2813_v56 = vadd.f32 %v10529_v13, %v2455_v35 }
 0x1d5   :  { %v8511_v60 = vpop.f32.mrf.mxu0  ;;  %v10760_v15 = vpop.f32.mrf.mxu1  ;;  %v2456_v7 = vadd.f32 %v10546_v48, %v10305_v22 }
 0x1d6   :  { %v3266_v39 = vadd.f32 %v3235_v53, %v3234_v51  ;;  %v3206_v54 = vadd.f32 %v10737_v10, %v3167_v3  ;;  %v3170_v62 = vadd.f32 %v8511_v60, %v10520_v11  ;;  %v3208_v53 = vadd.f32 %v10737_v10, %v3169_v0  ;;  %v9140_v0 = vld [vmem:[%s11621_s0 + $0x310] sm:$0xff]  }
 0x1d7   :  { %v3055_v20 = vpop.f32.mrf.mxu0  ;;  %v10776_v8 = vpop.f32.mrf.mxu1  ;;  %v2814_v60 = vadd.f32 %v10548_v43, %v2456_v7 }
 0x1d8   :  { %v3267_v63 = vadd.f32 %v3266_v39, %v3236_v21  ;;  %v3168_v27 = vadd.f32 %v3055_v20, %v2810_v12  ;;  %v3238_v3 = vmax.f32 %v3206_v54, 0.0  ;;  %v3209_v48 = vadd.f32 %v10737_v10, %v3170_v62  ;;  %v9141_v54 = vld [vmem:[%s11621_s0 + $0x1f8] sm:$0xff]  }
 0x1d9   :  { %v8514_v16 = vpop.f32.mrf.mxu0  ;;  %v10782_v51 = vpop.f32.mrf.mxu1  ;;  %8717 = vmatmul.mubr.msk.bf16.gmra.mxu0 %vm179_vm2, %v9136_v24  ;;  %8751 = vmatmul.mubr.msk.bf16.gmra.mxu1 %vm179_vm2, %v9137_v36  ;;  %v2459_v24 = vadd.f32 %v10557_v31, %v10319_v33  ;;  %v9142_v33 = vld [vmem:[%s11621_s0 + $0x318] sm:$0xff]   ;;  %v9143_v31 = vld [vmem:[%s11621_s0 + $0x200] sm:$0xff]  }
 0x1da   :  { %v3268_v61 = vadd.f32 %v3267_v63, %v3237_v5  ;;  %v3207_v21 = vadd.f32 %v10737_v10, %v3168_v27  ;;  %8720 = vmatprep.mubr.msk.bf16.mxu0 %vm179_vm2, %v9138_v49  ;;  %8754 = vmatprep.mubr.msk.bf16.mxu1 %vm179_vm2, %v9139_v17  ;;  %v3240_v49 = vmax.f32 %v3208_v53, 0.0  ;;  %v3173_v20 = vadd.f32 %v8514_v16, %v10531_v52 }
 0x1db   :  { %v3068_v11 = vpop.f32.mrf.mxu0  ;;  %v10790_v13 = vpop.f32.mrf.mxu1  ;;  %v3241_v62 = vmax.f32 %v3209_v48, 0.0  ;;  %v2817_v52 = vadd.f32 %v10559_v44, %v2459_v24  ;;  %v2460_v16 = vadd.f32 %v10576_v59, %v10333_v4 }
 0x1dc   :  { %v3269_v22 = vadd.f32 %v3268_v61, %v3238_v3  ;;  %v3239_v12 = vmax.f32 %v3207_v21, 0.0  ;;  %v3171_v35 = vadd.f32 %v3068_v11, %v2813_v56  ;;  %v3212_v61 = vadd.f32 %v10737_v10, %v3173_v20 }
 0x1dd   :  { %v8515_v36 = vpop.f32.mrf.mxu0  ;;  %v10796_v39 = vpop.f32.mrf.mxu1 }
 0x1de   :  { %v3270_v17 = vadd.f32 %v3269_v22, %v3239_v12  ;;  %v3210_v43 = vadd.f32 %v10737_v10, %v3171_v35  ;;  %v3174_v56 = vadd.f32 %v8515_v36, %v10550_v47  ;;  %v2818_v35 = vadd.f32 %v10578_v19, %v2460_v16 }
 0x1df   :  { %v3071_v5 = vpop.f32.mrf.mxu0  ;;  %v10812_v63 = vpop.f32.mrf.mxu1 }
 0x1e0   :  { %v3271_v27 = vadd.f32 %v3270_v17, %v3240_v49  ;;  %v3172_v7 = vadd.f32 %v3071_v5, %v2814_v60  ;;  %v3242_v21 = vmax.f32 %v3210_v43, 0.0  ;;  %v3213_v59 = vadd.f32 %v10737_v10, %v3174_v56 }
 0x1e1   :  { %v8518_v53 = vpop.f32.mrf.mxu0  ;;  %v10818_v3 = vpop.f32.mrf.mxu1  ;;  %8721 = vmatmul.mubr.msk.bf16.gmra.mxu0 %vm179_vm2, %v9140_v0  ;;  %8755 = vmatmul.mubr.msk.bf16.gmra.mxu1 %vm179_vm2, %v9141_v54  ;;  %v2463_v60 = vadd.f32 %v10587_v45, %v10347_v57  ;;  %v9144_v0 = vld [vmem:[%s11621_s0 + $0x320] sm:$0xff]   ;;  %v9145_v54 = vld [vmem:[%s11621_s0 + $0x208] sm:$0xff]   ;;  %v3244_v49 = vmax.f32 %v3212_v61, 0.0  ;;  %v9147_v45 = vld [vmem:[%s11621_s0 + $0x210] sm:$0xff]   ;;  %v2464_v56 = vadd.f32 %v10606_v41, %v10361_v30 }
 0x1e2   :  { %v3272_v11 = vadd.f32 %v3271_v27, %v3241_v62  ;;  %v3211_v22 = vadd.f32 %v10737_v10, %v3172_v7  ;;  %8724 = vmatprep.mubr.msk.bf16.mxu0 %vm179_vm2, %v9142_v33  ;;  %8758 = vmatprep.mubr.msk.bf16.mxu1 %vm179_vm2, %v9143_v31  ;;  %v3177_v20 = vadd.f32 %v8518_v53, %v10561_v34  ;;  %v9146_v57 = vld [vmem:[%s11621_s0 + $0x328] sm:$0xff]   ;;  %v3245_v31 = vmax.f32 %v3213_v59, 0.0 }
 0x1e3   :  { %v3084_v47 = vpop.f32.mrf.mxu0  ;;  %v10826_v44 = vpop.f32.mrf.mxu1  ;;  %v2821_v34 = vadd.f32 %v10589_v40, %v2463_v60 }
 0x1e4   :  { %v3273_v4 = vadd.f32 %v3272_v11, %v3242_v21  ;;  %v3243_v48 = vmax.f32 %v3211_v22, 0.0  ;;  %v3175_v12 = vadd.f32 %v3084_v47, %v2817_v52  ;;  %v3216_v16 = vadd.f32 %v10737_v10, %v3177_v20 }
 0x1e5   :  { %v8519_v24 = vpop.f32.mrf.mxu0  ;;  %v10832_v36 = vpop.f32.mrf.mxu1  ;;  %v2822_v47 = vadd.f32 %v10608_v42, %v2464_v56 }
 0x1e6   :  { %v3274_v17 = vadd.f32 %v3273_v4, %v3243_v48  ;;  %v3214_v19 = vadd.f32 %v10737_v10, %v3175_v12  ;;  %v3178_v62 = vadd.f32 %v8519_v24, %v10580_v23  ;;  %v2467_v4 = vadd.f32 %v10617_v50, %v10375_v32  ;;  %v9148_v12 = vld [vmem:[%s11621_s0 + $0x330] sm:$0xff]   ;;  %v9150_v32 = vld [vmem:[%s11621_s0 + $0x338] sm:$0xff]   ;;  %v9151_v50 = vld [vmem:[%s11621_s0 + $0x220] sm:$0xff]  }
 0x1e7   :  { %v3087_v43 = vpop.f32.mrf.mxu0  ;;  %v10848_v33 = vpop.f32.mrf.mxu1  ;;  %v3248_v60 = vmax.f32 %v3216_v16, 0.0 }
 0x1e8   :  { %v3275_v5 = vadd.f32 %v3274_v17, %v3244_v49  ;;  %v3176_v27 = vadd.f32 %v3087_v43, %v2818_v35  ;;  %v3246_v53 = vmax.f32 %v3214_v19, 0.0  ;;  %v3217_v41 = vadd.f32 %v10737_v10, %v3178_v62  ;;  %v9149_v35 = vld [vmem:[%s11621_s0 + $0x218] sm:$0xff]  }
 0x1e9   :  { %v8522_v7 = vpop.f32.mrf.mxu0  ;;  %v10854_v52 = vpop.f32.mrf.mxu1  ;;  %8725 = vmatmul.mubr.msk.bf16.gmra.mxu0 %vm179_vm2, %v9144_v0  ;;  %8759 = vmatmul.mubr.msk.bf16.gmra.mxu1 %vm179_vm2, %v9145_v54 }
 0x1ea   :  { %v3276_v61 = vadd.f32 %v3275_v5, %v3245_v31  ;;  %v3215_v21 = vadd.f32 %v10737_v10, %v3176_v27  ;;  %8728 = vmatprep.mubr.msk.bf16.mxu0 %vm179_vm2, %v9146_v57  ;;  %8762 = vmatprep.mubr.msk.bf16.mxu1 %vm179_vm2, %v9147_v45  ;;  %v3181_v0 = vadd.f32 %v8522_v7, %v10591_v58  ;;  %v3249_v17 = vmax.f32 %v3217_v41, 0.0  ;;  %v9153_v41 = vld [vmem:[%s11621_s0 + $0x228] sm:$0xff]  }
 0x1eb   :  { %v3100_v23 = vpop.f32.mrf.mxu0  ;;  %v10862_v40 = vpop.f32.mrf.mxu1  ;;  %v2825_v58 = vadd.f32 %v10619_v55, %v2467_v4  ;;  %v2468_v45 = vadd.f32 %v10636_v46, %v10389_v2 }
 0x1ec   :  { %v3277_v30 = vadd.f32 %v3276_v61, %v3246_v53  ;;  %v3247_v11 = vmax.f32 %v3215_v21, 0.0  ;;  %v3179_v22 = vadd.f32 %v3100_v23, %v2821_v34  ;;  %v3220_v5 = vadd.f32 %v10737_v10, %v3181_v0  ;;  %v11647_v53 = vld [vmem:[#allocation9_spill] sm:$0xff]  ;;  %v11649_v0 = vld [vmem:[#allocation14_spill] sm:$0xff] }
 0x1ed   :  { %v8523_v59 = vpop.f32.mrf.mxu0  ;;  %v10868_v48 = vpop.f32.mrf.mxu1  ;;  %v2826_v16 = vadd.f32 %v10638_v6, %v2468_v45  ;;  %v2471_v61 = vadd.f32 %v10647_v38, %v11647_v53  ;;  %v9154_v38 = vld [vmem:[%s11621_s0 + $0x348] sm:$0xff]  }
 0x1ee   :  { %v3278_v24 = vadd.f32 %v3277_v30, %v3247_v11  ;;  %v3218_v42 = vadd.f32 %v10737_v10, %v3179_v22  ;;  %v3182_v19 = vadd.f32 %v8523_v59, %v10610_v18  ;;  %v9152_v30 = vld [vmem:[%s11621_s0 + $0x340] sm:$0xff]   ;;  %v3252_v11 = vmax.f32 %v3220_v5, 0.0  ;;  %v9155_v59 = vld [vmem:[%s11621_s0 + $0x230] sm:$0xff]  }
 0x1ef   :  { %v3103_v54 = vpop.f32.mrf.mxu0  ;;  %v10884_v49 = vpop.f32.mrf.mxu1 }
 0x1f0   :  { %v3279_v20 = vadd.f32 %v3278_v24, %v3248_v60  ;;  %v3180_v57 = vadd.f32 %v3103_v54, %v2822_v47  ;;  %v3250_v62 = vmax.f32 %v3218_v42, 0.0  ;;  %v3221_v46 = vadd.f32 %v10737_v10, %v3182_v19  ;;  %v11648_v47 = vld [vmem:[#allocation13_spill] sm:$0xff] }
 0x1f1   :  { %v8526_v43 = vpop.f32.mrf.mxu0  ;;  %v10890_v31 = vpop.f32.mrf.mxu1  ;;  %8729 = vmatmul.mubr.msk.bf16.gmra.mxu0 %vm179_vm2, %v9148_v12  ;;  %8763 = vmatmul.mubr.msk.bf16.gmra.mxu1 %vm179_vm2, %v9149_v35 }
 0x1f2   :  { %v3280_v27 = vadd.f32 %v3279_v20, %v3249_v17  ;;  %v3219_v34 = vadd.f32 %v10737_v10, %v3180_v57  ;;  %8732 = vmatprep.mubr.msk.bf16.mxu0 %vm179_vm2, %v9150_v32  ;;  %8766 = vmatprep.mubr.msk.bf16.mxu1 %vm179_vm2, %v9151_v50  ;;  %v3185_v4 = vadd.f32 %v8526_v43, %v11648_v47  ;;  %v3253_v60 = vmax.f32 %v3221_v46, 0.0  ;;  %v11650_v50 = vld [vmem:[#allocation15_spill] sm:$0xff]  ;;  %v11651_v17 = vld [vmem:[#allocation10_spill] sm:$0xff]  ;;  %v11652_v20 = vld [vmem:[#allocation17_spill] sm:$0xff] }
 0x1f3   :  { %v3116_v18 = vpop.f32.mrf.mxu0  ;;  %v10898_v55 = vpop.f32.mrf.mxu1  ;;  %v2829_v54 = vadd.f32 %v11650_v50, %v2471_v61  ;;  %v2472_v19 = vadd.f32 %v11652_v20, %v11651_v17  ;;  %v11654_v47 = vld [vmem:[#allocation16_spill] sm:$0xff] }
 0x1f4   :  { %v3281_v2 = vadd.f32 %v3280_v27, %v3250_v62  ;;  %v3251_v56 = vmax.f32 %v3219_v34, 0.0  ;;  %v3183_v7 = vadd.f32 %v3116_v18, %v2825_v58  ;;  %v3224_v45 = vadd.f32 %v10737_v10, %v3185_v4  ;;  %v11656_v50 = vld [vmem:[#allocation12_spill] sm:$0xff] }
 0x1f5   :  { %v8527_v21 = vpop.f32.mrf.mxu0  ;;  %v10904_v23 = vpop.f32.mrf.mxu1 }
 0x1f6   :  { %v3282_v22 = vadd.f32 %v3281_v2, %v3251_v56  ;;  %v3222_v6 = vadd.f32 %v10737_v10, %v3183_v7  ;;  %v3186_v42 = vadd.f32 %v8527_v21, %v11649_v0  ;;  %v2830_v7 = vadd.f32 %v10668_v25, %v2472_v19 }
 0x1f7   :  { %v3119_v12 = vpop.f32.mrf.mxu0  ;;  %v10920_v35 = vpop.f32.mrf.mxu1 }
 0x1f8   :  { %v3283_v24 = vadd.f32 %v3282_v22, %v3252_v11  ;;  %v3184_v32 = vadd.f32 %v3119_v12, %v2826_v16  ;;  %v3254_v43 = vmax.f32 %v3222_v6, 0.0  ;;  %v3225_v2 = vadd.f32 %v10737_v10, %v3186_v42  ;;  %v11653_v16 = vld [vmem:[#allocation11_spill] sm:$0xff]  ;;  %v9159_v6 = vld [vmem:[%s11621_s0 + $0x2e0] sm:$0xff]   ;;  %v11655_v42 = vld [vmem:[#allocation18_spill] sm:$0xff] }
 0x1f9   :  { %v8530_v57 = vpop.f32.mrf.mxu0  ;;  %v10926_v58 = vpop.f32.mrf.mxu1  ;;  %8733 = vmatmul.mubr.msk.bf16.gmra.mxu0 %vm179_vm2, %v9152_v30  ;;  %8767 = vmatmul.mubr.msk.bf16.gmra.mxu1 %vm179_vm2, %v9153_v41  ;;  %v2475_v53 = vadd.f32 %v10677_v9, %v11653_v16  ;;  %v9156_v30 = vld [vmem:[%s11621_s0 + $0x350] sm:$0xff]   ;;  %v9157_v41 = vld [vmem:[%s11621_s0 + $0x238] sm:$0xff]   ;;  %v3256_v11 = vmax.f32 %v3224_v45, 0.0 }
 0x1fa   :  { %v3284_v5 = vadd.f32 %v3283_v24, %v3253_v60  ;;  %v3223_v62 = vadd.f32 %v10737_v10, %v3184_v32  ;;  %8736 = vmatprep.mubr.msk.bf16.mxu0 %vm179_vm2, %v9154_v38  ;;  %8770 = vmatprep.mubr.msk.bf16.mxu1 %vm179_vm2, %v9155_v59  ;;  %v3189_v4 = vadd.f32 %v8530_v57, %v11654_v47  ;;  %v9158_v9 = vld [vmem:[%s11621_s0 + $0x250] sm:$0xff]   ;;  %v3257_v12 = vmax.f32 %v3225_v2, 0.0  ;;  %v9160_v16 = vld [vmem:[%s11621_s0 + $0x258] sm:$0xff]   ;;  %v9162_v47 = vld [vmem:[%s11621_s0 + $0x260] sm:$0xff]  }
 0x1fb   :  { %v3132_v27 = vpop.f32.mrf.mxu0  ;;  %v10934_v34 = vpop.f32.mrf.mxu1  ;;  %v2833_v32 = vadd.f32 %v11655_v42, %v2475_v53  ;;  %v11657_v2 = vld [vmem:[#allocation19_spill] sm:$0xff]  ;;  %v9161_v53 = vld [vmem:[%s11621_s0 + $0x2e8] sm:$0xff]  }
 0x1fc   :  { %v3285_v18 = vadd.f32 %v3284_v5, %v3254_v43  ;;  %v3255_v46 = vmax.f32 %v3223_v62, 0.0  ;;  %v3187_v56 = vadd.f32 %v3132_v27, %v2829_v54  ;;  %v2476_v54 = vadd.f32 %v10690_v37, %v11656_v50 }
 0x1fd   :  { %v8531_v61 = vpop.f32.mrf.mxu0  ;;  %v10940_v21 = vpop.f32.mrf.mxu1  ;;  %v3228_v19 = vadd.f32 %v10737_v10, %v3189_v4  ;;  %v9163_v4 = vld [vmem:[%s11621_s0 + $0x2f0] sm:$0xff]  }
 0x1fe   :  { %v3286_v22 = vadd.f32 %v3285_v18, %v3255_v46  ;;  %v3226_v25 = vadd.f32 %v10737_v10, %v3187_v56  ;;  %v3190_v24 = vadd.f32 %v8531_v61, %v10670_v26  ;;  %v11658_v61 = vld [vmem:[#allocation20_spill] sm:$0xff] }
 0x1ff   :  { %v3135_v38 = vpop.f32.mrf.mxu0  ;;  %v10956_v59 = vpop.f32.mrf.mxu1 }
 0x200   :  { %v3287_v60 = vadd.f32 %v3286_v22, %v3256_v11  ;;  %v3188_v0 = vadd.f32 %v3135_v38, %v2830_v7  ;;  %v3258_v57 = vmax.f32 %v3226_v25, 0.0  ;;  %v3229_v62 = vadd.f32 %v10737_v10, %v3190_v24 }
 0x201   :  { %v8534_v17 = vpop.f32.mrf.mxu0  ;;  %v10962_v20 = vpop.f32.mrf.mxu1  ;;  %8737 = vmatmul.mubr.msk.bf16.gmra.mxu0 %vm179_vm2, %v9156_v30  ;;  %8771 = vmatmul.mubr.msk.bf16.gmra.mxu1 %vm179_vm2, %v9157_v41  ;;  %v2834_v30 = vadd.f32 %v11658_v61, %v2476_v54  ;;  %v3260_v41 = vmax.f32 %v3228_v19, 0.0  ;;  %v9166_v61 = vld [vmem:[%s11621_s0 + $0x270] sm:$0xff]  }
 0x202   :  { %v3288_v45 = vadd.f32 %v3287_v60, %v3257_v12  ;;  %v3227_v43 = vadd.f32 %v10737_v10, %v3188_v0  ;;  %8776 = vmatprep.mubr.msk.bf16.mxu0 %vm179_vm2, %v9158_v9  ;;  %8810 = vmatprep.mubr.msk.bf16.mxu1 %vm179_vm2, %v9159_v6  ;;  %v3193_v46 = vadd.f32 %v8534_v17, %v11657_v2  ;;  %v3261_v38 = vmax.f32 %v3229_v62, 0.0  ;;  %v9165_v2 = vld [vmem:[%s11621_s0 + $0x2f8] sm:$0xff]  }
 0x203   :  { %v3148_v26 = vpop.f32.mrf.mxu0  ;;  %v10970_v5 = vpop.f32.mrf.mxu1 }
 0x204   :  { %v3289_v37 = vadd.f32 %v3288_v45, %v3258_v57  ;;  %v3259_v27 = vmax.f32 %v3227_v43, 0.0  ;;  %v3191_v18 = vadd.f32 %v3148_v26, %v2833_v32  ;;  %v3232_v24 = vadd.f32 %v10737_v10, %v3193_v46 }
 0x205   :  { %v8535_v56 = vpop.f32.mrf.mxu0  ;;  %v10974_v7 = vpop.f32.mrf.mxu1 }
 0x206   :  { %v3290_v11 = vadd.f32 %v3289_v37, %v3259_v27  ;;  %v3230_v22 = vadd.f32 %v10737_v10, %v3191_v18  ;;  %v3194_v25 = vadd.f32 %v8535_v56, %v10700_v14  ;;  %v11659_v37 = vld [vmem:[#allocation21_spill] sm:$0xff]  ;;  %v3264_v46 = vmax.f32 %v3232_v24, 0.0 }
 0x207   :  { %v3151_v9 = vpop.f32.mrf.mxu0  ;;  %v10991_v6 = vpop.f32.mrf.mxu1 }
 0x208   :  { %v3291_v12 = vadd.f32 %v3290_v11, %v3260_v41  ;;  %v3192_v60 = vadd.f32 %v3151_v9, %v2834_v30  ;;  %v3262_v32 = vmax.f32 %v3230_v22, 0.0  ;;  %v3233_v17 = vadd.f32 %v10737_v10, %v3194_v25  ;;  %v9167_v30 = vld [vmem:[%s11621_s0 + $0x300] sm:$0xff]   ;;  %v11661_v25 = vld [vmem:[#allocation23_spill] sm:$0xff] }
 0x209   :  { %v8574_v0 = vpop.f32.mrf.mxu0  ;;  %v8608_v42 = vpop.f32.mrf.mxu1  ;;  %8777 = vmatmul.mubr.msk.bf16.vlgmr.msra.gmra.mxu0 %vm179_vm2, %v9160_v16  ;;  %8811 = vmatmul.mubr.msk.bf16.vlgmr.msra.gmra.mxu1 %vm179_vm2, %v9161_v53  ;;  %v11660_v16 = vld [vmem:[#allocation22_spill] sm:$0xff] }
 0x20a   :  { %v3292_v50 = vadd.f32 %v3291_v12, %v3261_v38  ;;  %v3231_v54 = vadd.f32 %v10737_v10, %v3192_v60  ;;  %v3839_v14 = vadd.f32 %v8574_v0, %v10702_v28  ;;  %8780 = vmatprep.mubr.msk.bf16.mxu0 %vm179_vm2, %v9162_v47  ;;  %8814 = vmatprep.mubr.msk.bf16.mxu1 %vm179_vm2, %v9163_v4  ;;  %v9164_v28 = vld [vmem:[%s11621_s0 + $0x268] sm:$0xff]   ;;  %v3265_v22 = vmax.f32 %v3233_v17, 0.0 }
 0x20b   :  { %v3830_v19 = vpop.f32.mrf.mxu0  ;;  %v4156_v57 = vpop.f32.mrf.mxu1 }
 0x20c   :  { %v3293_v45 = vadd.f32 %v3292_v50, %v3262_v32  ;;  %v3263_v43 = vmax.f32 %v3231_v54, 0.0  ;;  %v11001_v26 = vadd.f32 %v8608_v42, %v3839_v14  ;;  %v3831_v62 = vadd.f32 %v3830_v19, %v11659_v37 }
 0x20d   :  { %v8575_v27 = vpop.f32.mrf.mxu0  ;;  %v8609_v18 = vpop.f32.mrf.mxu1 }
 0x20e   :  { %v3294_v10 = vadd.f32 %v3293_v45, %v3263_v43  ;;  %v11010_v56 = vadd.f32 %v4156_v57, %v3831_v62  ;;  %v3842_v53 = vadd.f32 %v8575_v27, %v11660_v16  ;;  %v9168_v57 = vld [vmem:[%s11621_s0 + $0x278] sm:$0xff]   ;;  %v9170_v62 = vld [vmem:[%s11621_s0 + $0x280] sm:$0xff]  }
 0x20f   :  { %v3833_v41 = vpop.f32.mrf.mxu0  ;;  %v4159_v11 = vpop.f32.mrf.mxu1 }
 0x210   :  { %v3295_v47 = vadd.f32 %v3294_v10, %v3264_v46  ;;  %v11019_v4 = vadd.f32 %v8609_v18, %v3842_v53  ;;  %v3834_v9 = vadd.f32 %v3833_v41, %v11661_v25 }
 0x211   :  { %v8578_v38 = vpop.f32.mrf.mxu0  ;;  %v8612_v12 = vpop.f32.mrf.mxu1  ;;  %8781 = vmatmul.mubr.msk.bf16.gmra.mxu0 %vm179_vm2, %v9164_v28  ;;  %8815 = vmatmul.mubr.msk.bf16.gmra.mxu1 %vm179_vm2, %v9165_v2 }
 0x212   :  { %v3296_v60 = vadd.f32 %v3295_v47, %v3265_v22  ;;  %v11024_v24 = vadd.f32 %v4159_v11, %v3834_v9  ;;  %v3855_v0 = vadd.f32 %v8578_v38, %v10745_v1  ;;  %8784 = vmatprep.mubr.msk.bf16.mxu0 %vm179_vm2, %v9166_v61  ;;  %8818 = vmatprep.mubr.msk.bf16.mxu1 %vm179_vm2, %v9167_v30  ;;  %v9169_v1 = vld [vmem:[%s11621_s0 + $0x308] sm:$0xff]  }
 0x213   :  { %v3846_v42 = vpop.f32.mrf.mxu0  ;;  %v4172_v32 = vpop.f32.mrf.mxu1  ;;  %v9172_v9 = vld [vmem:[%s11621_s0 + $0x288] sm:$0xff]  }
 0x214   :  { %v3297_v50 = vrot.slane %v3296_v60, 4  ;;  %v11029_v54 = vadd.f32 %v8612_v12, %v3855_v0  ;;  %v3847_v14 = vadd.f32 %v3846_v42, %v10754_v29  ;;  %v9171_v29 = vld [vmem:[%s11621_s0 + $0x310] sm:$0xff]  }
 0x215   :  { %v8579_v17 = vpop.f32.mrf.mxu0  ;;  %v8613_v19 = vpop.f32.mrf.mxu1  ;;  %v9174_v0 = vld [vmem:[%s11621_s0 + $0x290] sm:$0xff]  }
 0x216   :  { %v3298_v45 = vadd.f32 %v3297_v50, %v3296_v60  ;;  %v11038_v43 = vadd.f32 %v4172_v32, %v3847_v14  ;;  %v3858_v37 = vadd.f32 %v8579_v17, %v10760_v15 }
 0x217   :  { %v3849_v27 = vpop.f32.mrf.mxu0  ;;  %v4175_v18 = vpop.f32.mrf.mxu1 }
 0x218   :  { %v3299_v28 = vrot.slane %v3298_v45, 2  ;;  %v11047_v2 = vadd.f32 %v8613_v19, %v3858_v37  ;;  %v3850_v46 = vadd.f32 %v3849_v27, %v10776_v8 }
 0x219   :  { %v8582_v10 = vpop.f32.mrf.mxu0  ;;  %v8616_v16 = vpop.f32.mrf.mxu1  ;;  %8785 = vmatmul.mubr.msk.bf16.gmra.mxu0 %vm179_vm2, %v9168_v57  ;;  %8819 = vmatmul.mubr.msk.bf16.gmra.mxu1 %vm179_vm2, %v9169_v1 }
 0x21a   :  { %v3300_v15 = vadd.f32 %v3299_v28, %v3298_v45  ;;  %v11052_v53 = vadd.f32 %v4175_v18, %v3850_v46  ;;  %v3871_v61 = vadd.f32 %v8582_v10, %v10782_v51  ;;  %8788 = vmatprep.mubr.msk.bf16.mxu0 %vm179_vm2, %v9170_v62  ;;  %8822 = vmatprep.mubr.msk.bf16.mxu1 %vm179_vm2, %v9171_v29  ;;  %v9173_v51 = vld [vmem:[%s11621_s0 + $0x318] sm:$0xff]   ;;  %v9178_v10 = vld [vmem:[%s11621_s0 + $0x2a0] sm:$0xff]  }
 0x21b   :  { %v3862_v30 = vpop.f32.mrf.mxu0  ;;  %v4188_v41 = vpop.f32.mrf.mxu1  ;;  %v9176_v18 = vld [vmem:[%s11621_s0 + $0x298] sm:$0xff]  }
 0x21c   :  { %v3301_v11 = vrot.slane %v3300_v15, 1  ;;  %v11057_v22 = vadd.f32 %v8616_v16, %v3871_v61  ;;  %v3863_v8 = vadd.f32 %v3862_v30, %v10790_v13  ;;  %v9175_v13 = vld [vmem:[%s11621_s0 + $0x320] sm:$0xff]  }
 0x21d   :  { %v8583_v47 = vpop.f32.mrf.mxu0  ;;  %v8617_v25 = vpop.f32.mrf.mxu1 }
 0x21e   :  { %v3302_v38 = vadd.f32 %v3301_v11, %v3300_v15  ;;  %v11066_v12 = vadd.f32 %v4188_v41, %v3863_v8  ;;  %v3874_v60 = vadd.f32 %v8583_v47, %v10796_v39 }
 0x21f   :  { %v3865_v42 = vpop.f32.mrf.mxu0  ;;  %v4191_v32 = vpop.f32.mrf.mxu1 }
 0x220   :  { %v3303_v50 = vmul.f32 0.00390625, %v3302_v38  ;;  %v11075_v14 = vadd.f32 %v8617_v25, %v3874_v60  ;;  %v3866_v17 = vadd.f32 %v3865_v42, %v10812_v63  ;;  %v9180_v60 = vld [vmem:[%s11621_s0 + $0x2a8] sm:$0xff]  }
 0x221   :  { %v8586_v19 = vpop.f32.mrf.mxu0  ;;  %v8620_v57 = vpop.f32.mrf.mxu1  ;;  %8789 = vmatmul.mubr.msk.bf16.gmra.mxu0 %vm179_vm2, %v9172_v9  ;;  %8823 = vmatmul.mubr.msk.bf16.gmra.mxu1 %vm179_vm2, %v9173_v51 }
 0x222   :  { %3304 = vst [vmem:[#allocation2] sm:$0x1] %v3303_v50  ;;  %v11080_v39 = vadd.f32 %v4191_v32, %v3866_v17  ;;  %v3887_v1 = vadd.f32 %v8586_v19, %v10818_v3  ;;  %8792 = vmatprep.mubr.msk.bf16.mxu0 %vm179_vm2, %v9174_v0  ;;  %8826 = vmatprep.mubr.msk.bf16.mxu1 %vm179_vm2, %v9175_v13  ;;  %v9177_v3 = vld [vmem:[%s11621_s0 + $0x328] sm:$0xff]   ;;  %v9182_v13 = vld [vmem:[%s11621_s0 + $0x2b0] sm:$0xff]  }
 0x223   :  { %v3878_v45 = vpop.f32.mrf.mxu0  ;;  %v4204_v37 = vpop.f32.mrf.mxu1 }
 0x224   :  { %v11085_v62 = vadd.f32 %v8620_v57, %v3887_v1  ;;  %v3879_v63 = vadd.f32 %v3878_v45, %v10826_v44  ;;  %v9179_v44 = vld [vmem:[%s11621_s0 + $0x330] sm:$0xff]  }
 0x225   :  { %v8587_v29 = vpop.f32.mrf.mxu0  ;;  %v8621_v27 = vpop.f32.mrf.mxu1 }
 0x226   :  { %v11094_v28 = vadd.f32 %v4204_v37, %v3879_v63  ;;  %v3890_v46 = vadd.f32 %v8587_v29, %v10832_v36 }
 0x227   :  { %v3881_v16 = vpop.f32.mrf.mxu0  ;;  %v4207_v15 = vpop.f32.mrf.mxu1 }
 0x228   :  { %v11103_v61 = vadd.f32 %v8621_v27, %v3890_v46  ;;  %v3882_v30 = vadd.f32 %v3881_v16, %v10848_v33 }
 0x229   :  { %v8590_v41 = vpop.f32.mrf.mxu0  ;;  %v8624_v11 = vpop.f32.mrf.mxu1  ;;  %8793 = vmatmul.mubr.msk.bf16.gmra.mxu0 %vm179_vm2, %v9176_v18  ;;  %8827 = vmatmul.mubr.msk.bf16.gmra.mxu1 %vm179_vm2, %v9177_v3  ;;  %v9184_v18 = vld [vmem:[%s11621_s0 + $0x2b8] sm:$0xff]  }
 0x22a   :  { %v11108_v36 = vadd.f32 %v4207_v15, %v3882_v30  ;;  %v3903_v8 = vadd.f32 %v8590_v41, %v10854_v52  ;;  %8796 = vmatprep.mubr.msk.bf16.mxu0 %vm179_vm2, %v9178_v10  ;;  %8830 = vmatprep.mubr.msk.bf16.mxu1 %vm179_vm2, %v9179_v44  ;;  %v9181_v52 = vld [vmem:[%s11621_s0 + $0x338] sm:$0xff]   ;;  %v9186_v10 = vld [vmem:[%s11621_s0 + $0x2c0] sm:$0xff]  }
 0x22b   :  { %v3894_v47 = vpop.f32.mrf.mxu0  ;;  %v11113_v25 = vpop.f32.mrf.mxu1 }
 0x22c   :  { %v11115_v9 = vadd.f32 %v8624_v11, %v3903_v8  ;;  %v11118_v33 = vadd.f32 %v3894_v47, %v10862_v40  ;;  %v9183_v40 = vld [vmem:[%s11621_s0 + $0x340] sm:$0xff]  }
 0x22d   :  { %v8591_v51 = vpop.f32.mrf.mxu0  ;;  %v8625_v38 = vpop.f32.mrf.mxu1 }
 0x22e   :  { %v3906_v0 = vadd.f32 %v8591_v51, %v10868_v48 }
 0x22f   :  { %v3897_v42 = vpop.f32.mrf.mxu0  ;;  %v4223_v32 = vpop.f32.mrf.mxu1 }
 0x230   :  { %v11133_v50 = vadd.f32 %v8625_v38, %v3906_v0  ;;  %v3898_v17 = vadd.f32 %v3897_v42, %v10884_v49  ;;  %v9188_v0 = vld [vmem:[%s11621_s0 + $0x2c8] sm:$0xff]  }
 0x231   :  { %v8594_v19 = vpop.f32.mrf.mxu0  ;;  %v8628_v57 = vpop.f32.mrf.mxu1  ;;  %8797 = vmatmul.mubr.msk.bf16.gmra.mxu0 %vm179_vm2, %v9180_v60  ;;  %8831 = vmatmul.mubr.msk.bf16.gmra.mxu1 %vm179_vm2, %v9181_v52 }
 0x232   :  { %v11138_v48 = vadd.f32 %v4223_v32, %v3898_v17  ;;  %v3919_v1 = vadd.f32 %v8594_v19, %v10890_v31  ;;  %8800 = vmatprep.mubr.msk.bf16.mxu0 %vm179_vm2, %v9182_v13  ;;  %8834 = vmatprep.mubr.msk.bf16.mxu1 %vm179_vm2, %v9183_v40  ;;  %v9185_v31 = vld [vmem:[%s11621_s0 + $0x348] sm:$0xff]  }
 0x233   :  { %v3910_v45 = vpop.f32.mrf.mxu0  ;;  %v4236_v37 = vpop.f32.mrf.mxu1 }
 0x234   :  { %v11143_v63 = vadd.f32 %v8628_v57, %v3919_v1  ;;  %v3911_v49 = vadd.f32 %v3910_v45, %v10898_v55  ;;  %v9187_v55 = vld [vmem:[%s11621_s0 + $0x350] sm:$0xff]  }
 0x235   :  { %v8595_v29 = vpop.f32.mrf.mxu0  ;;  %v8629_v27 = vpop.f32.mrf.mxu1 }
 0x236   :  { %v11152_v3 = vadd.f32 %v4236_v37, %v3911_v49  ;;  %v3922_v46 = vadd.f32 %v8595_v29, %v10904_v23 }
 0x237   :  { %v3913_v44 = vpop.f32.mrf.mxu0  ;;  %v4239_v16 = vpop.f32.mrf.mxu1 }
 0x238   :  { %v11161_v15 = vadd.f32 %v8629_v27, %v3922_v46  ;;  %v3914_v30 = vadd.f32 %v3913_v44, %v10920_v35 }
 0x239   :  { %v8598_v41 = vpop.f32.mrf.mxu0  ;;  %v8632_v11 = vpop.f32.mrf.mxu1  ;;  %8801 = vmatmul.mubr.msk.bf16.gmra.mxu0 %vm179_vm2, %v9184_v18  ;;  %8835 = vmatmul.mubr.msk.bf16.gmra.mxu1 %vm179_vm2, %v9185_v31 }
 0x23a   :  { %v11166_v23 = vadd.f32 %v4239_v16, %v3914_v30  ;;  %v3935_v8 = vadd.f32 %v8598_v41, %v10926_v58  ;;  %8804 = vmatprep.mubr.msk.bf16.mxu0 %vm179_vm2, %v9186_v10  ;;  %8838 = vmatprep.mubr.msk.bf16.mxu1 %vm179_vm2, %v9187_v55  ;;  %v9189_v58 = vld [vmem:[%s11621_s0 + $0x358] sm:$0xff]   ;;  %s9202_s0 = scalar_lea.vmem %s6793_s16, 32 }
 0x23b   :  { %v3926_v47 = vpop.f32.mrf.mxu0  ;;  %v4252_v51 = vpop.f32.mrf.mxu1  ;;  %p9203_p0 = scmp.ne.s32.totalorder %s6793_s16, %s9202_s0  ;;  %p9208_p2 = scmp.lt.s32.totalorder %s9202_s0, %s9202_s0 }
 0x23c   :  { %v11171_v38 = vadd.f32 %v8632_v11, %v3935_v8  ;;  %v3927_v35 = vadd.f32 %v3926_v47, %v10934_v34 }
 0x23d   :  { %v8599_v60 = vpop.f32.mrf.mxu0  ;;  %v8633_v52 = vpop.f32.mrf.mxu1  ;;  %p9209_p3 = por %p9208_p2, %p9207_p1 }
 0x23e   :  { %v11180_v13 = vadd.f32 %v4252_v51, %v3927_v35  ;;  %v3938_v40 = vadd.f32 %v8599_v60, %v10940_v21 }
 0x23f   :  { %v3929_v42 = vpop.f32.mrf.mxu0  ;;  %v4255_v32 = vpop.f32.mrf.mxu1  ;;  %p9210_p4 = pnand %p9209_p3, %p9203_p0 }
 0x240   :  { %v11183_v17 = vadd.f32 %v8633_v52, %v3938_v40  ;;  %v3930_v34 = vadd.f32 %v3929_v42, %v10956_v59 }
 0x241   :  { %v8602_v19 = vpop.f32.mrf.mxu0  ;;  %v8636_v57 = vpop.f32.mrf.mxu1  ;;  %8805 = vmatmul.mubr.msk.bf16.gmra.mxu0 %vm179_vm2, %v9188_v0  ;;  %8839 = vmatmul.mubr.msk.bf16.gmra.mxu1 %vm179_vm2, %v9189_v58 }
 0x242   :  { %v11188_v1 = vadd.f32 %v4255_v32, %v3930_v34  ;;  %v3951_v45 = vadd.f32 %v8602_v19, %v10962_v20 }
 0x243   :  { %v3942_v37 = vpop.f32.mrf.mxu0  ;;  %v4268_v49 = vpop.f32.mrf.mxu1 }
 0x244   :  { %v11191_v29 = vadd.f32 %v8636_v57, %v3951_v45  ;;  %v3943_v21 = vadd.f32 %v3942_v37, %v10970_v5 }
 0x245   :  { %v8603_v27 = vpop.f32.mrf.mxu0  ;;  %v8637_v18 = vpop.f32.mrf.mxu1 }
 0x246   :  { %v11194_v31 = vadd.f32 %v4268_v49, %v3943_v21  ;;  %v3954_v59 = vadd.f32 %v8603_v27, %v10974_v7 }
 0x247   :  { %v3945_v46 = vpop.f32.mrf.mxu0  ;;  %v4271_v10 = vpop.f32.mrf.mxu1 }
 0x248   :  { %v11197_v55 = vadd.f32 %v8637_v18, %v3954_v59  ;;  %v3946_v44 = vadd.f32 %v3945_v46, %v10991_v6 }
 0x249   :  { %v8642_v16 = vpop.f32.mrf.mxu0  ;;  %v8676_v20 = vpop.f32.mrf.mxu1 }
 0x24a   :  { %v11200_v30 = vadd.f32 %v4271_v10, %v3946_v44  ;;  %v4642_v41 = vadd.f32 %v8642_v16, %v11001_v26 }
 0x24b   :  { %v4513_v11 = vpop.f32.mrf.mxu0  ;;  %v4870_v5 = vpop.f32.mrf.mxu1 }
 0x24c   :  { %v11203_v8 = vadd.f32 %v8676_v20, %v4642_v41  ;;  %v4640_v47 = vadd.f32 %v4513_v11, %v11010_v56 }
 0x24d   :  { %v8643_v51 = vpop.f32.mrf.mxu0  ;;  %v8677_v7 = vpop.f32.mrf.mxu1 }
 0x24e   :  { %v11206_v35 = vadd.f32 %v4870_v5, %v4640_v47  ;;  %v4643_v60 = vadd.f32 %v8643_v51, %v11019_v4 }
 0x24f   :  { %v4516_v52 = vpop.f32.mrf.mxu0  ;;  %v4873_v6 = vpop.f32.mrf.mxu1 }
 0x250   :  { %v11209_v0 = vadd.f32 %v8677_v7, %v4643_v60  ;;  %v4641_v58 = vadd.f32 %v4516_v52, %v11024_v24 }
 0x251   :  { %v8646_v40 = vpop.f32.mrf.mxu0  ;;  %v8680_v26 = vpop.f32.mrf.mxu1 }
 0x252   :  { %v11212_v42 = vadd.f32 %v4873_v6, %v4641_v58  ;;  %v4646_v32 = vadd.f32 %v8646_v40, %v11029_v54 }
 0x253   :  { %v4529_v34 = vpop.f32.mrf.mxu0  ;;  %v4886_v56 = vpop.f32.mrf.mxu1 }
 0x254   :  { %v11215_v19 = vadd.f32 %v8680_v26, %v4646_v32  ;;  %v4644_v57 = vadd.f32 %v4529_v34, %v11038_v43 }
 0x255   :  { %v8647_v45 = vpop.f32.mrf.mxu0  ;;  %v8681_v4 = vpop.f32.mrf.mxu1 }
 0x256   :  { %v11218_v37 = vadd.f32 %v4886_v56, %v4644_v57  ;;  %v4647_v49 = vadd.f32 %v8647_v45, %v11047_v2 }
 0x257   :  { %v4532_v21 = vpop.f32.mrf.mxu0  ;;  %v4889_v24 = vpop.f32.mrf.mxu1 }
 0x258   :  { %v11221_v27 = vadd.f32 %v8681_v4, %v4647_v49  ;;  %v4645_v18 = vadd.f32 %v4532_v21, %v11052_v53  ;;  %v4299_v21 = vadd.f32 %v11113_v25, %v11118_v33 }
 0x259   :  { %v8650_v59 = vpop.f32.mrf.mxu0  ;;  %v8684_v54 = vpop.f32.mrf.mxu1 }
 0x25a   :  { %v11224_v46 = vadd.f32 %v4889_v24, %v4645_v18  ;;  %v4650_v10 = vadd.f32 %v8650_v59, %v11057_v22 }
 0x25b   :  { %v4545_v44 = vpop.f32.mrf.mxu0  ;;  %v4902_v43 = vpop.f32.mrf.mxu1 }
 0x25c   :  { %v11227_v16 = vadd.f32 %v8684_v54, %v4650_v10  ;;  %v4648_v20 = vadd.f32 %v4545_v44, %v11066_v12 }
 0x25d   :  { %v8651_v41 = vpop.f32.mrf.mxu0  ;;  %v8685_v2 = vpop.f32.mrf.mxu1 }
 0x25e   :  { %v11230_v11 = vadd.f32 %v4902_v43, %v4648_v20  ;;  %v4651_v5 = vadd.f32 %v8651_v41, %v11075_v14 }
 0x25f   :  { %v4548_v47 = vpop.f32.mrf.mxu0  ;;  %v4905_v53 = vpop.f32.mrf.mxu1 }
 0x260   :  { %v11233_v51 = vadd.f32 %v8685_v2, %v4651_v5  ;;  %v4649_v7 = vadd.f32 %v4548_v47, %v11080_v39 }
 0x261   :  { %v8654_v60 = vpop.f32.mrf.mxu0  ;;  %v8688_v22 = vpop.f32.mrf.mxu1 }
 0x262   :  { %v11236_v52 = vadd.f32 %v4905_v53, %v4649_v7  ;;  %v4654_v6 = vadd.f32 %v8654_v60, %v11085_v62 }
 0x263   :  { %v4561_v58 = vpop.f32.mrf.mxu0  ;;  %v4918_v12 = vpop.f32.mrf.mxu1 }
 0x264   :  { %v11239_v40 = vadd.f32 %v8688_v22, %v4654_v6  ;;  %v4652_v26 = vadd.f32 %v4561_v58, %v11094_v28 }
 0x265   :  { %v8655_v32 = vpop.f32.mrf.mxu0  ;;  %v8689_v14 = vpop.f32.mrf.mxu1 }
 0x266   :  { %v11242_v34 = vadd.f32 %v4918_v12, %v4652_v26  ;;  %v4655_v56 = vadd.f32 %v8655_v32, %v11103_v61 }
 0x267   :  { %v4564_v57 = vpop.f32.mrf.mxu0  ;;  %v4921_v39 = vpop.f32.mrf.mxu1 }
 0x268   :  { %v11245_v45 = vadd.f32 %v8689_v14, %v4655_v56  ;;  %v4653_v4 = vadd.f32 %v4564_v57, %v11108_v36  ;;  %v11630_v56 = vmov 0.0  }
 0x269   :  { %v8658_v49 = vpop.f32.mrf.mxu0  ;;  %v8692_v62 = vpop.f32.mrf.mxu1  ;;  %8842 = vmatprep.subr.bf16.mxu0 %v11630_v56  ;;  %8862 = vmatprep.subr.mxu1 %v11630_v56 }
 0x26a   :  { %v11250_v24 = vadd.f32 %v4921_v39, %v4653_v4  ;;  %v4658_v28 = vadd.f32 %v8658_v49, %v11115_v9  ;;  %8858 = vmatprep.mubr.msk.bf16.mxu0 %vm9248_vm3, %v11630_v56  ;;  %8894 = vmatprep.mubr.msk.f32.mxu1 %vm9248_vm3, %v11630_v56 }
 0x26b   :  { %v4577_v18 = vpop.f32.mrf.mxu0  ;;  %v4934_v59 = vpop.f32.mrf.mxu1 }
 0x26c   :  { %v11253_v54 = vadd.f32 %v8692_v62, %v4658_v28  ;;  %v4656_v61 = vadd.f32 %v4577_v18, %v4299_v21 }
 0x26d   :  { %v8659_v10 = vpop.f32.mrf.mxu0  ;;  %v8693_v44 = vpop.f32.mrf.mxu1 }
 0x26e   :  { %v11255_v43 = vadd.f32 %v4934_v59, %v4656_v61  ;;  %v4659_v36 = vadd.f32 %v8659_v10, %v11133_v50 }
 0x26f   :  { %v4580_v20 = vpop.f32.mrf.mxu0  ;;  %v4937_v41 = vpop.f32.mrf.mxu1 }
 0x270   :  { %v11258_v2 = vadd.f32 %v8693_v44, %v4659_v36  ;;  %v4657_v25 = vadd.f32 %v4580_v20, %v11138_v48 }
 0x271   :  { %v8662_v33 = vpop.f32.mrf.mxu0  ;;  %v8696_v5 = vpop.f32.mrf.mxu1 }
 0x272   :  { %v11261_v9 = vadd.f32 %v4937_v41, %v4657_v25  ;;  %v4662_v47 = vadd.f32 %v8662_v33, %v11143_v63 }
 0x273   :  { %v4593_v53 = vpop.f32.mrf.mxu0  ;;  %v4950_v7 = vpop.f32.mrf.mxu1 }
 0x274   :  { %v11264_v60 = vadd.f32 %v8696_v5, %v4662_v47  ;;  %v4660_v22 = vadd.f32 %v4593_v53, %v11152_v3 }
 0x275   :  { %v8663_v6 = vpop.f32.mrf.mxu0  ;;  %v8697_v50 = vpop.f32.mrf.mxu1 }
 0x276   :  { %v11267_v58 = vadd.f32 %v4950_v7, %v4660_v22  ;;  %v4663_v12 = vadd.f32 %v8663_v6, %v11161_v15  ;;  %v9190_v15 = vld [vmem:[%s11624_s3 + $0x38] sm:$0xff]  }
 0x277   :  { %v4596_v26 = vpop.f32.mrf.mxu0  ;;  %v4953_v48 = vpop.f32.mrf.mxu1  ;;  %8843 = vmatpush3.bf16.msra.mxu0 %v9190_v15 }
 0x278   :  { %v11270_v32 = vadd.f32 %v8697_v50, %v4663_v12  ;;  %v4661_v14 = vadd.f32 %v4596_v26, %v11166_v23  ;;  %8844 = vmatprep.subr.bf16.mxu0 %v11630_v56 }
 0x279   :  { %v8666_v63 = vpop.f32.mrf.mxu0  ;;  %v8700_v57 = vpop.f32.mrf.mxu1 }
 0x27a   :  { %v11275_v3 = vadd.f32 %v4953_v48, %v4661_v14  ;;  %v4666_v39 = vadd.f32 %v8666_v63, %v11171_v38 }
 0x27b   :  { %v4609_v4 = vpop.f32.mrf.mxu0  ;;  %v4966_v49 = vpop.f32.mrf.mxu1 }
 0x27c   :  { %v11281_v62 = vadd.f32 %v8700_v57, %v4666_v39  ;;  %v4664_v23 = vadd.f32 %v4609_v4, %v11180_v13 }
 0x27d   :  { %v8667_v21 = vpop.f32.mrf.mxu0  ;;  %v8701_v28 = vpop.f32.mrf.mxu1 }
 0x27e   :  { %v11284_v18 = vadd.f32 %v4966_v49, %v4664_v23  ;;  %v4667_v59 = vadd.f32 %v8667_v21, %v11183_v17  ;;  %v9191_v17 = vld [vmem:[%s11624_s3 + $0x30] sm:$0xff]  }
 0x27f   :  { %v4612_v38 = vpop.f32.mrf.mxu0  ;;  %v4969_v61 = vpop.f32.mrf.mxu1  ;;  %8845 = vmatpush3.bf16.msra.mxu0 %v9191_v17 }
 0x280   :  { %v11288_v10 = vadd.f32 %v8701_v28, %v4667_v59  ;;  %v4665_v44 = vadd.f32 %v4612_v38, %v11188_v1  ;;  %8846 = vmatprep.subr.bf16.mxu0 %v11630_v56 }
 0x281   :  { %v8670_v36 = vpop.f32.mrf.mxu0  ;;  %v8704_v20 = vpop.f32.mrf.mxu1 }
 0x282   :  { %v11291_v41 = vadd.f32 %v4969_v61, %v4665_v44  ;;  %v4670_v13 = vadd.f32 %v8670_v36, %v11191_v29 }
 0x283   :  { %v4625_v25 = vpop.f32.mrf.mxu0  ;;  %v4982_v33 = vpop.f32.mrf.mxu1 }
 0x284   :  { %11662 = vst [vmem:[#allocation9_spill] sm:$0xff] %v11291_v41  ;;  %v11297_v5 = vadd.f32 %v8704_v20, %v4670_v13  ;;  %v4668_v47 = vadd.f32 %v4625_v25, %v11194_v31 }
 0x285   :  { %v8671_v53 = vpop.f32.mrf.mxu0  ;;  %v8705_v7 = vpop.f32.mrf.mxu1 }
 0x286   :  { %v11300_v1 = vadd.f32 %v4982_v33, %v4668_v47  ;;  %v4671_v22 = vadd.f32 %v8671_v53, %v11197_v55  ;;  %v9192_v55 = vld [vmem:[%s11624_s3 + $0x28] sm:$0xff]  }
 0x287   :  { %v4628_v29 = vpop.f32.mrf.mxu0  ;;  %v4985_v6 = vpop.f32.mrf.mxu1  ;;  %8847 = vmatpush3.bf16.msra.mxu0 %v9192_v55 }
 0x288   :  { %11663 = vst [vmem:[#allocation13_spill] sm:$0xff] %v11300_v1  ;;  %v11304_v50 = vadd.f32 %v8705_v7, %v4671_v22  ;;  %v4669_v12 = vadd.f32 %v4628_v29, %v11200_v30  ;;  %8848 = vmatprep.subr.bf16.mxu0 %v11630_v56  ;;  %v9193_v7 = vld [vmem:[%s11624_s3 + $0x20] sm:$0xff]  }
 0x289   :  { %v8710_v26 = vpop.f32.mrf.mxu0  ;;  %v8744_v48 = vpop.f32.mrf.mxu1 }
 0x28a   :  { %v11307_v14 = vadd.f32 %v4985_v6, %v4669_v12  ;;  %v5356_v31 = vadd.f32 %v8710_v26, %v11203_v8 }
 0x28b   :  { %v5227_v63 = vpop.f32.mrf.mxu0  ;;  %v5584_v57 = vpop.f32.mrf.mxu1  ;;  %8849 = vmatpush3.bf16.msra.mxu0 %v9193_v7 }
 0x28c   :  { %11664 = vst [vmem:[#allocation14_spill] sm:$0xff] %v11307_v14  ;;  %v11313_v39 = vadd.f32 %v8744_v48, %v5356_v31  ;;  %v5354_v4 = vadd.f32 %v5227_v63, %v11206_v35  ;;  %8850 = vmatprep.subr.bf16.mxu0 %v11630_v56 }
 0x28d   :  { %v8711_v49 = vpop.f32.mrf.mxu0  ;;  %v8745_v15 = vpop.f32.mrf.mxu1 }
 0x28e   :  { %v11316_v30 = vadd.f32 %v5584_v57, %v5354_v4  ;;  %v5357_v23 = vadd.f32 %v8711_v49, %v11209_v0 }
 0x28f   :  { %v11320_v8 = vpop.f32.mrf.mxu0  ;;  %v11322_v21 = vpop.f32.mrf.mxu1 }
 0x290   :  { %v11324_v28 = vadd.f32 %v8745_v15, %v5357_v23 }
 0x291   :  { %v8714_v59 = vpop.f32.mrf.mxu0  ;;  %v8748_v38 = vpop.f32.mrf.mxu1 }
 0x292   :  { %v5360_v61 = vadd.f32 %v8714_v59, %v11215_v19 }
 0x293   :  { %v11327_v35 = vpop.f32.mrf.mxu0  ;;  %v11329_v44 = vpop.f32.mrf.mxu1 }
 0x294   :  { %v11331_v36 = vadd.f32 %v8748_v38, %v5360_v61  ;;  %v9196_v61 = vld [vmem:[%s11624_s3 + $0x8] sm:$0xff]  }
 0x295   :  { %v8715_v20 = vpop.f32.mrf.mxu0  ;;  %v8749_v0 = vpop.f32.mrf.mxu1 }
 0x296   :  { %v5361_v13 = vadd.f32 %v8715_v20, %v11221_v27 }
 0x297   :  { %v11334_v25 = vpop.f32.mrf.mxu0  ;;  %v11336_v33 = vpop.f32.mrf.mxu1 }
 0x298   :  { %v11338_v17 = vadd.f32 %v8749_v0, %v5361_v13 }
 0x299   :  { %v8718_v47 = vpop.f32.mrf.mxu0  ;;  %v8752_v53 = vpop.f32.mrf.mxu1 }
 0x29a   :  { %v5364_v19 = vadd.f32 %v8718_v47, %v11227_v16  ;;  %v9194_v16 = vld [vmem:[%s11624_s3 + $0x18] sm:$0xff]   ;;  %v9197_v47 = vld [vmem:[%s11624_s3] sm:$0xff]  }
 0x29b   :  { %v11344_v22 = vpop.f32.mrf.mxu0  ;;  %v11346_v29 = vpop.f32.mrf.mxu1  ;;  %8851 = vmatpush3.bf16.msra.mxu0 %v9194_v16 }
 0x29c   :  { %v11348_v6 = vadd.f32 %v8752_v53, %v5364_v19  ;;  %8852 = vmatprep.subr.bf16.mxu0 %v11630_v56 }
 0x29d   :  { %v8719_v27 = vpop.f32.mrf.mxu0  ;;  %v8753_v12 = vpop.f32.mrf.mxu1 }
 0x29e   :  { %v5365_v26 = vadd.f32 %v8719_v27, %v11233_v51  ;;  %v9195_v51 = vld [vmem:[%s11624_s3 + $0x10] sm:$0xff]  }
 0x29f   :  { %v11355_v48 = vpop.f32.mrf.mxu0  ;;  %v11357_v31 = vpop.f32.mrf.mxu1  ;;  %8853 = vmatpush3.bf16.msra.mxu0 %v9195_v51 }
 0x2a0   :  { %v11359_v63 = vadd.f32 %v8753_v12, %v5365_v26  ;;  %8854 = vmatprep.subr.bf16.mxu0 %v11630_v56 }
 0x2a1   :  { %v8722_v57 = vpop.f32.mrf.mxu0  ;;  %v8756_v55 = vpop.f32.mrf.mxu1 }
 0x2a2   :  { %v5368_v4 = vadd.f32 %v8722_v57, %v11239_v40 }
 0x2a3   :  { %v11366_v49 = vpop.f32.mrf.mxu0  ;;  %v11368_v15 = vpop.f32.mrf.mxu1  ;;  %8855 = vmatpush3.bf16.msra.mxu0 %v9196_v61 }
 0x2a4   :  { %v11370_v23 = vadd.f32 %v8756_v55, %v5368_v4  ;;  %8856 = vmatprep.subr.bf16.mxu0 %v11630_v56 }
 0x2a5   :  { %v8723_v59 = vpop.f32.mrf.mxu0  ;;  %v8757_v38 = vpop.f32.mrf.mxu1 }
 0x2a6   :  { %v5369_v40 = vadd.f32 %v8723_v59, %v11245_v45 }
 0x2a7   :  { %v11379_v20 = vpop.f32.mrf.mxu0  ;;  %v11381_v0 = vpop.f32.mrf.mxu1  ;;  %8857 = vmatpush3.bf16.msra.mxu0 %v9197_v47 }
 0x2a8   :  { %v11383_v13 = vadd.f32 %v8757_v38, %v5369_v40 }
 0x2a9   :  { %v8726_v53 = vpop.f32.mrf.mxu0  ;;  %v8760_v19 = vpop.f32.mrf.mxu1 }
 0x2aa   :  { %v5372_v45 = vadd.f32 %v8726_v53, %v11253_v54 }
 0x2ab   :  { %v11390_v7 = vpop.f32.mrf.mxu0  ;;  %v11392_v27 = vpop.f32.mrf.mxu1 }
 0x2ac   :  { %v11394_v12 = vadd.f32 %v8760_v19, %v5372_v45 }
 0x2ad   :  { %v8727_v26 = vpop.f32.mrf.mxu0  ;;  %v8761_v16 = vpop.f32.mrf.mxu1 }
 0x2ae   :  { %v5373_v57 = vadd.f32 %v8727_v26, %v11258_v2 }
 0x2af   :  { %v11397_v55 = vpop.f32.mrf.mxu0  ;;  %v11399_v4 = vpop.f32.mrf.mxu1 }
 0x2b0   :  { %v11401_v51 = vadd.f32 %v8761_v16, %v5373_v57 }
 0x2b1   :  { %v8730_v59 = vpop.f32.mrf.mxu0  ;;  %v8764_v38 = vpop.f32.mrf.mxu1 }
 0x2b2   :  { %v5376_v54 = vadd.f32 %v8730_v59, %v11264_v60 }
 0x2b3   :  { %v11404_v61 = vpop.f32.mrf.mxu0  ;;  %v11406_v40 = vpop.f32.mrf.mxu1 }
 0x2b4   :  { %v11408_v53 = vadd.f32 %v8764_v38, %v5376_v54 }
 0x2b5   :  { %v8731_v47 = vpop.f32.mrf.mxu0  ;;  %v8765_v19 = vpop.f32.mrf.mxu1 }
 0x2b6   :  { %v5377_v2 = vadd.f32 %v8731_v47, %v11270_v32 }
 0x2b7   :  { %v11411_v45 = vpop.f32.mrf.mxu0  ;;  %v11413_v26 = vpop.f32.mrf.mxu1 }
 0x2b8   :  { %v11415_v16 = vadd.f32 %v8765_v19, %v5377_v2 }
 0x2b9   :  { %v8734_v57 = vpop.f32.mrf.mxu0  ;;  %v8768_v56 = vpop.f32.mrf.mxu1 }
 0x2ba   :  { %11665 = vst [vmem:[#allocation15_spill] sm:$0xff] %v11415_v16  ;;  %v5380_v60 = vadd.f32 %v8734_v57, %v11281_v62 }
 0x2bb   :  { %v11418_v59 = vpop.f32.mrf.mxu0  ;;  %v11420_v14 = vpop.f32.mrf.mxu1 }
 0x2bc   :  { %11666 = vst [vmem:[#allocation10_spill] sm:$0xff] %v11418_v59  ;;  %v11422_v38 = vadd.f32 %v8768_v56, %v5380_v60 }
 0x2bd   :  { %v8735_v54 = vpop.f32.mrf.mxu0  ;;  %v8769_v1 = vpop.f32.mrf.mxu1 }
 0x2be   :  { %11667 = vst [vmem:[#allocation17_spill] sm:$0xff] %v11422_v38  ;;  %v5381_v32 = vadd.f32 %v8735_v54, %v11288_v10 }
 0x2bf   :  { %v11425_v47 = vpop.f32.mrf.mxu0  ;;  %v11427_v41 = vpop.f32.mrf.mxu1 }
 0x2c0   :  { %11668 = vst [vmem:[#allocation11_spill] sm:$0xff] %v11425_v47  ;;  %v11429_v19 = vadd.f32 %v8769_v1, %v5381_v32 }
 0x2c1   :  { %v8738_v2 = vpop.f32.mrf.mxu0  ;;  %v8772_v16 = vpop.f32.mrf.mxu1 }
 0x2c2   :  { %11669 = vst [vmem:[#allocation16_spill] sm:$0xff] %v11429_v19  ;;  %v5384_v62 = vadd.f32 %v8738_v2, %v11297_v5  ;;  %v5355_v5 = vadd.f32 %v11320_v8, %v11212_v42 }
 0x2c3   :  { %v11432_v57 = vpop.f32.mrf.mxu0  ;;  %v11434_v59 = vpop.f32.mrf.mxu1 }
 0x2c4   :  { %11670 = vst [vmem:[#allocation18_spill] sm:$0xff] %v11432_v57  ;;  %11671 = vst [vmem:[#allocation12_spill] sm:$0xff] %v11434_v59  ;;  %v11436_v56 = vadd.f32 %v8772_v16, %v5384_v62 }
 0x2c5   :  { %v8739_v60 = vpop.f32.mrf.mxu0  ;;  %v8773_v38 = vpop.f32.mrf.mxu1 }
 0x2c6   :  { %11672 = vst [vmem:[#allocation19_spill] sm:$0xff] %v11436_v56  ;;  %v5385_v10 = vadd.f32 %v8739_v60, %v11304_v50  ;;  %v5712_v50 = vadd.f32 %v11322_v21, %v5355_v5  ;;  %v5358_v60 = vadd.f32 %v11327_v35, %v11218_v37 }
 0x2c7   :  { %v11439_v54 = vpop.f32.mrf.mxu0  ;;  %v11441_v47 = vpop.f32.mrf.mxu1 }
 0x2c8   :  { %11673 = vst [vmem:[#allocation20_spill] sm:$0xff] %v11439_v54  ;;  %11674 = vst [vmem:[#allocation21_spill] sm:$0xff] %v11441_v47  ;;  %v11443_v1 = vadd.f32 %v8773_v38, %v5385_v10 }
 0x2c9   :  { %v8778_v32 = vpop.f32.mrf.mxu0  ;;  %v8812_v19 = vpop.f32.mrf.mxu1 }
 0x2ca   :  { %11675 = vst [vmem:[#allocation22_spill] sm:$0xff] %v11443_v1  ;;  %v6070_v16 = vadd.f32 %v8778_v32, %v11313_v39  ;;  %v11456_v39 = vld [vmem:[%s11623_s2] ss:$0 sm:$0xff]  ;;  %v5715_v32 = vadd.f32 %v11329_v44, %v5358_v60 }
 0x2cb   :  { %v5941_v2 = vpop.f32.mrf.mxu0  ;;  %v6298_v57 = vpop.f32.mrf.mxu1 }
 0x2cc   :  { %v6068_v62 = vadd.f32 %v5941_v2, %v11316_v30  ;;  %v6427_v54 = vadd.f32 %v8812_v19, %v6070_v16  ;;  %v5362_v2 = vadd.f32 %v11344_v22, %v11230_v11 }
 0x2cd   :  { %v8779_v56 = vpop.f32.mrf.mxu0  ;;  %v8813_v59 = vpop.f32.mrf.mxu1 }
 0x2ce   :  { %v6425_v38 = vadd.f32 %v6298_v57, %v6068_v62  ;;  %v6071_v10 = vadd.f32 %v8779_v56, %v11324_v28  ;;  %v5359_v28 = vadd.f32 %v11334_v25, %v11224_v46  ;;  %v6466_v19 = vadd.f32 %v11456_v39, %v6427_v54 }
 0x2cf   :  { %v5944_v1 = vpop.f32.mrf.mxu0  ;;  %v6301_v47 = vpop.f32.mrf.mxu1 }
 0x2d0   :  { %v6069_v42 = vadd.f32 %v5944_v1, %v5712_v50  ;;  %v6464_v21 = vadd.f32 %v11456_v39, %v6425_v38  ;;  %v6428_v5 = vadd.f32 %v8813_v59, %v6071_v10  ;;  %v5716_v46 = vadd.f32 %v11336_v33, %v5359_v28 }
 0x2d1   :  { %v8782_v30 = vpop.f32.mrf.mxu0  ;;  %v8816_v8 = vpop.f32.mrf.mxu1  ;;  %v6498_v10 = vmax.f32 %v6466_v19, 0.0 }
 0x2d2   :  { %v6426_v37 = vadd.f32 %v6301_v47, %v6069_v42  ;;  %v6074_v16 = vadd.f32 %v8782_v30, %v11331_v36  ;;  %v6496_v50 = vmax.f32 %v6464_v21, 0.0  ;;  %v6467_v59 = vadd.f32 %v11456_v39, %v6428_v5 }
 0x2d3   :  { %v5957_v35 = vpop.f32.mrf.mxu0  ;;  %v6314_v57 = vpop.f32.mrf.mxu1  ;;  %v5719_v21 = vadd.f32 %v11346_v29, %v5362_v2  ;;  %v5363_v5 = vadd.f32 %v11355_v48, %v11236_v52  ;;  %v5366_v52 = vadd.f32 %v11366_v49, %v11242_v34  ;;  %v5367_v34 = vadd.f32 %v11379_v20, %v11250_v24 }
 0x2d4   :  { %v6465_v56 = vadd.f32 %v11456_v39, %v6426_v37  ;;  %v6072_v1 = vadd.f32 %v5957_v35, %v5715_v32  ;;  %v6431_v11 = vadd.f32 %v8816_v8, %v6074_v16  ;;  %v6499_v37 = vmax.f32 %v6467_v59, 0.0 }
 0x2d5   :  { %v8783_v44 = vpop.f32.mrf.mxu0  ;;  %v8817_v62 = vpop.f32.mrf.mxu1  ;;  %v5720_v2 = vadd.f32 %v11357_v31, %v5363_v5  ;;  %v5370_v24 = vadd.f32 %v11390_v7, %v11255_v43  ;;  %v5371_v43 = vadd.f32 %v11397_v55, %v11261_v9  ;;  %v5374_v9 = vadd.f32 %v11404_v61, %v11267_v58 }
 0x2d6   :  { %v6497_v47 = vmax.f32 %v6465_v56, 0.0  ;;  %v6429_v60 = vadd.f32 %v6314_v57, %v6072_v1  ;;  %v6075_v25 = vadd.f32 %v8783_v44, %v11338_v17  ;;  %v6470_v44 = vadd.f32 %v11456_v39, %v6431_v11 }
 0x2d7   :  { %v5960_v54 = vpop.f32.mrf.mxu0  ;;  %v6317_v38 = vpop.f32.mrf.mxu1  ;;  %v5723_v11 = vadd.f32 %v11368_v15, %v5366_v52  ;;  %v5375_v58 = vadd.f32 %v11411_v45, %v11275_v3  ;;  %v11676_v3 = vld [vmem:[#allocation10_spill] sm:$0xff] }
 0x2d8   :  { %v6528_v42 = vadd.f32 %v6497_v47, %v6496_v50  ;;  %v6468_v32 = vadd.f32 %v11456_v39, %v6429_v60  ;;  %v6073_v22 = vadd.f32 %v5960_v54, %v5716_v46  ;;  %v6432_v33 = vadd.f32 %v8817_v62, %v6075_v25 }
 0x2d9   :  { %v8786_v36 = vpop.f32.mrf.mxu0  ;;  %v8820_v30 = vpop.f32.mrf.mxu1  ;;  %v5378_v45 = vadd.f32 %v11676_v3, %v11284_v18  ;;  %v11678_v18 = vld [vmem:[#allocation9_spill] sm:$0xff] }
 0x2da   :  { %v6529_v35 = vadd.f32 %v6528_v42, %v6498_v10  ;;  %v6430_v28 = vadd.f32 %v6317_v38, %v6073_v22  ;;  %v6500_v56 = vmax.f32 %v6468_v32, 0.0  ;;  %v6078_v16 = vadd.f32 %v8786_v36, %v11348_v6 }
 0x2db   :  { %v5973_v17 = vpop.f32.mrf.mxu0  ;;  %v6330_v57 = vpop.f32.mrf.mxu1  ;;  %v6471_v59 = vadd.f32 %v11456_v39, %v6432_v33  ;;  %v6502_v38 = vmax.f32 %v6470_v44, 0.0 }
 0x2dc   :  { %v6530_v19 = vadd.f32 %v6529_v35, %v6499_v37  ;;  %v6076_v1 = vadd.f32 %v5973_v17, %v5719_v21  ;;  %v6469_v8 = vadd.f32 %v11456_v39, %v6430_v28  ;;  %v6435_v6 = vadd.f32 %v8820_v30, %v6078_v16 }
 0x2dd   :  { %v8787_v50 = vpop.f32.mrf.mxu0  ;;  %v8821_v29 = vpop.f32.mrf.mxu1  ;;  %v6503_v22 = vmax.f32 %v6471_v59, 0.0  ;;  %v5727_v59 = vadd.f32 %v11392_v27, %v5370_v24 }
 0x2de   :  { %v6531_v48 = vadd.f32 %v6530_v19, %v6500_v56  ;;  %v6433_v62 = vadd.f32 %v6330_v57, %v6076_v1  ;;  %v6501_v47 = vmax.f32 %v6469_v8, 0.0  ;;  %v6079_v60 = vadd.f32 %v8787_v50, %v11359_v63 }
 0x2df   :  { %v5976_v46 = vpop.f32.mrf.mxu0  ;;  %v6333_v25 = vpop.f32.mrf.mxu1  ;;  %v6474_v30 = vadd.f32 %v11456_v39, %v6435_v6  ;;  %v5724_v56 = vadd.f32 %v11381_v0, %v5367_v34 }
 0x2e0   :  { %v6077_v54 = vadd.f32 %v5976_v46, %v5720_v2  ;;  %v6532_v10 = vadd.f32 %v6531_v48, %v6501_v47  ;;  %v6472_v42 = vadd.f32 %v11456_v39, %v6433_v62  ;;  %v6436_v21 = vadd.f32 %v8821_v29, %v6079_v60 }
 0x2e1   :  { %v8790_v32 = vpop.f32.mrf.mxu0  ;;  %v8824_v31 = vpop.f32.mrf.mxu1  ;;  %v6506_v2 = vmax.f32 %v6474_v30, 0.0 }
 0x2e2   :  { %v6434_v49 = vadd.f32 %v6333_v25, %v6077_v54  ;;  %v6533_v36 = vadd.f32 %v6532_v10, %v6502_v38  ;;  %v6504_v33 = vmax.f32 %v6472_v42, 0.0  ;;  %v6082_v17 = vadd.f32 %v8790_v32, %v11370_v23 }
 0x2e3   :  { %v5989_v63 = vpop.f32.mrf.mxu0  ;;  %v6346_v5 = vpop.f32.mrf.mxu1  ;;  %v6475_v44 = vadd.f32 %v11456_v39, %v6436_v21 }
 0x2e4   :  { %v6473_v37 = vadd.f32 %v11456_v39, %v6434_v49  ;;  %v6080_v35 = vadd.f32 %v5989_v63, %v5723_v11  ;;  %v6534_v28 = vadd.f32 %v6533_v36, %v6503_v22  ;;  %v6439_v23 = vadd.f32 %v8824_v31, %v6082_v17 }
 0x2e5   :  { %v8791_v57 = vpop.f32.mrf.mxu0  ;;  %v8825_v15 = vpop.f32.mrf.mxu1  ;;  %v6507_v47 = vmax.f32 %v6475_v44, 0.0  ;;  %v5728_v11 = vadd.f32 %v11399_v4, %v5371_v43 }
 0x2e6   :  { %v6505_v20 = vmax.f32 %v6473_v37, 0.0  ;;  %v6437_v19 = vadd.f32 %v6346_v5, %v6080_v35  ;;  %v6535_v1 = vadd.f32 %v6534_v28, %v6504_v33  ;;  %v6083_v8 = vadd.f32 %v8791_v57, %v11383_v13 }
 0x2e7   :  { %v5992_v16 = vpop.f32.mrf.mxu0  ;;  %v6349_v50 = vpop.f32.mrf.mxu1  ;;  %v6478_v10 = vadd.f32 %v11456_v39, %v6439_v23  ;;  %v5731_v28 = vadd.f32 %v11406_v40, %v5374_v9 }
 0x2e8   :  { %v6081_v29 = vadd.f32 %v5992_v16, %v5724_v56  ;;  %v6536_v52 = vadd.f32 %v6535_v1, %v6505_v20  ;;  %v6476_v48 = vadd.f32 %v11456_v39, %v6437_v19  ;;  %v6440_v46 = vadd.f32 %v8825_v15, %v6083_v8 }
 0x2e9   :  { %v8794_v62 = vpop.f32.mrf.mxu0  ;;  %v8828_v0 = vpop.f32.mrf.mxu1  ;;  %v6510_v37 = vmax.f32 %v6478_v10, 0.0 }
 0x2ea   :  { %v6438_v7 = vadd.f32 %v6349_v50, %v6081_v29  ;;  %v6537_v60 = vadd.f32 %v6536_v52, %v6506_v2  ;;  %v6508_v6 = vmax.f32 %v6476_v48, 0.0  ;;  %v6086_v32 = vadd.f32 %v8794_v62, %v11394_v12  ;;  %v11677_v48 = vld [vmem:[#allocation15_spill] sm:$0xff] }
 0x2eb   :  { %v6005_v13 = vpop.f32.mrf.mxu0  ;;  %v6362_v25 = vpop.f32.mrf.mxu1  ;;  %v6479_v22 = vadd.f32 %v11456_v39, %v6440_v46  ;;  %v5732_v50 = vadd.f32 %v11413_v26, %v5375_v58 }
 0x2ec   :  { %v6477_v54 = vadd.f32 %v11456_v39, %v6438_v7  ;;  %v6084_v38 = vadd.f32 %v6005_v13, %v5727_v59  ;;  %v6538_v42 = vadd.f32 %v6537_v60, %v6507_v47  ;;  %v6443_v12 = vadd.f32 %v8828_v0, %v6086_v32 }
 0x2ed   :  { %v8795_v31 = vpop.f32.mrf.mxu0  ;;  %v8829_v27 = vpop.f32.mrf.mxu1  ;;  %v6511_v17 = vmax.f32 %v6479_v22, 0.0  ;;  %v5735_v13 = vadd.f32 %v11420_v14, %v5378_v45 }
 0x2ee   :  { %v6509_v55 = vmax.f32 %v6477_v54, 0.0  ;;  %v6441_v34 = vadd.f32 %v6362_v25, %v6084_v38  ;;  %v6539_v49 = vadd.f32 %v6538_v42, %v6508_v6  ;;  %v6087_v36 = vadd.f32 %v8795_v31, %v11401_v51  ;;  %v11679_v25 = vld [vmem:[#allocation11_spill] sm:$0xff] }
 0x2ef   :  { %v6008_v21 = vpop.f32.mrf.mxu0  ;;  %v6365_v63 = vpop.f32.mrf.mxu1  ;;  %v6482_v19 = vadd.f32 %v11456_v39, %v6443_v12  ;;  %v5379_v54 = vadd.f32 %v11679_v25, %v11678_v18  ;;  %v11689_v18 = vld [vmem:[#allocation22_spill] sm:$0xff] }
 0x2f0   :  { %v6085_v5 = vadd.f32 %v6008_v21, %v5728_v11  ;;  %v6540_v35 = vadd.f32 %v6539_v49, %v6509_v55  ;;  %v6480_v30 = vadd.f32 %v11456_v39, %v6441_v34  ;;  %v6444_v15 = vadd.f32 %v8829_v27, %v6087_v36  ;;  %v11680_v49 = vld [vmem:[#allocation17_spill] sm:$0xff] }
 0x2f1   :  { %v8798_v33 = vpop.f32.mrf.mxu0  ;;  %v8832_v4 = vpop.f32.mrf.mxu1  ;;  %v6514_v7 = vmax.f32 %v6482_v19, 0.0  ;;  %v5736_v21 = vadd.f32 %v11427_v41, %v5379_v54 }
 0x2f2   :  { %v6442_v61 = vadd.f32 %v6365_v63, %v6085_v5  ;;  %v6541_v57 = vadd.f32 %v6540_v35, %v6510_v37  ;;  %v6512_v1 = vmax.f32 %v6480_v30, 0.0  ;;  %v6090_v8 = vadd.f32 %v8798_v33, %v11408_v53  ;;  %v11681_v63 = vld [vmem:[#allocation13_spill] sm:$0xff]  ;;  %v11682_v5 = vld [vmem:[#allocation18_spill] sm:$0xff] }
 0x2f3   :  { %v6021_v51 = vpop.f32.mrf.mxu0  ;;  %v6378_v56 = vpop.f32.mrf.mxu1  ;;  %v6483_v23 = vadd.f32 %v11456_v39, %v6444_v15  ;;  %v5382_v37 = vadd.f32 %v11682_v5, %v11681_v63 }
 0x2f4   :  { %v6481_v24 = vadd.f32 %v11456_v39, %v6442_v61  ;;  %v6088_v20 = vadd.f32 %v6021_v51, %v5731_v28  ;;  %v6542_v44 = vadd.f32 %v6541_v57, %v6511_v17  ;;  %v6447_v53 = vadd.f32 %v8832_v4, %v6090_v8  ;;  %v11683_v4 = vld [vmem:[#allocation16_spill] sm:$0xff] }
 0x2f5   :  { %v8799_v16 = vpop.f32.mrf.mxu0  ;;  %v8833_v40 = vpop.f32.mrf.mxu1  ;;  %v6515_v10 = vmax.f32 %v6483_v23, 0.0 }
 0x2f6   :  { %v6513_v29 = vmax.f32 %v6481_v24, 0.0  ;;  %v6445_v2 = vadd.f32 %v6378_v56, %v6088_v20  ;;  %v6543_v52 = vadd.f32 %v6542_v44, %v6512_v1  ;;  %v6091_v62 = vadd.f32 %v8799_v16, %v11677_v48  ;;  %v11684_v20 = vld [vmem:[#allocation12_spill] sm:$0xff]  ;;  %v11685_v1 = vld [vmem:[#allocation14_spill] sm:$0xff] }
 0x2f7   :  { %v6024_v0 = vpop.f32.mrf.mxu0  ;;  %v6381_v59 = vpop.f32.mrf.mxu1  ;;  %v6486_v9 = vadd.f32 %v11456_v39, %v6447_v53  ;;  %v5739_v19 = vadd.f32 %v11684_v20, %v5382_v37  ;;  %v11686_v44 = vld [vmem:[#allocation20_spill] sm:$0xff] }
 0x2f8   :  { %v6089_v43 = vadd.f32 %v6024_v0, %v5732_v50  ;;  %v6544_v47 = vadd.f32 %v6543_v52, %v6513_v29  ;;  %v6484_v60 = vadd.f32 %v11456_v39, %v6445_v2  ;;  %v6448_v42 = vadd.f32 %v8833_v40, %v6091_v62  ;;  %v11687_v0 = vld [vmem:[#allocation19_spill] sm:$0xff] }
 0x2f9   :  { %v8802_v46 = vpop.f32.mrf.mxu0  ;;  %v8836_v26 = vpop.f32.mrf.mxu1  ;;  %v6518_v57 = vmax.f32 %v6486_v9, 0.0  ;;  %v5383_v8 = vadd.f32 %v11686_v44, %v11685_v1  ;;  %v6707_v44 = vld [vmem:[%s11626_s5 + $0x78] sm:$0xff] }
 0x2fa   :  { %v6446_v38 = vadd.f32 %v6381_v59, %v6089_v43  ;;  %v6545_v6 = vadd.f32 %v6544_v47, %v6514_v7  ;;  %v6516_v55 = vmax.f32 %v6484_v60, 0.0  ;;  %v6094_v22 = vadd.f32 %v8802_v46, %v11680_v49  ;;  %v11688_v47 = vld [vmem:[#allocation21_spill] sm:$0xff]  ;;  %8863 = vmatpush3.msra.mxu1 %v6707_v44 }
 0x2fb   :  { %v6037_v32 = vpop.f32.mrf.mxu0  ;;  %v6394_v31 = vpop.f32.mrf.mxu1  ;;  %v6487_v33 = vadd.f32 %v11456_v39, %v6448_v42  ;;  %v5740_v53 = vadd.f32 %v11688_v47, %v5383_v8  ;;  %v6706_v8 = vld [vmem:[%s11626_s5 + $0x70] sm:$0xff] }
 0x2fc   :  { %v6485_v27 = vadd.f32 %v11456_v39, %v6446_v38  ;;  %v6092_v11 = vadd.f32 %v6037_v32, %v5735_v13  ;;  %v6546_v34 = vadd.f32 %v6545_v6, %v6515_v10  ;;  %v6451_v51 = vadd.f32 %v8836_v26, %v6094_v22 }
 0x2fd   :  { %v8803_v36 = vpop.f32.mrf.mxu0  ;;  %v8837_v14 = vpop.f32.mrf.mxu1  ;;  %v6519_v40 = vmax.f32 %v6487_v33, 0.0 }
 0x2fe   :  { %v6517_v35 = vmax.f32 %v6485_v27, 0.0  ;;  %v6449_v12 = vadd.f32 %v6394_v31, %v6092_v11  ;;  %v6547_v30 = vadd.f32 %v6546_v34, %v6516_v55  ;;  %v6095_v28 = vadd.f32 %v8803_v36, %v11683_v4 }
 0x2ff   :  { %v6040_v58 = vpop.f32.mrf.mxu0  ;;  %v6397_v61 = vpop.f32.mrf.mxu1  ;;  %v6490_v23 = vadd.f32 %v11456_v39, %v6451_v51 }
 0x300   :  { %v6093_v17 = vadd.f32 %v6040_v58, %v5736_v21  ;;  %v6548_v15 = vadd.f32 %v6547_v30, %v6517_v35  ;;  %v6488_v56 = vadd.f32 %v11456_v39, %v6449_v12  ;;  %v6452_v3 = vadd.f32 %v8837_v14, %v6095_v28 }
 0x301   :  { %v8806_v24 = vpop.f32.mrf.mxu0  ;;  %v8840_v41 = vpop.f32.mrf.mxu1  ;;  %v6522_v10 = vmax.f32 %v6490_v23, 0.0  ;;  %v6698_v23 = vld [vmem:[%s11626_s5 + $0x30] sm:$0xff] }
 0x302   :  { %v6450_v16 = vadd.f32 %v6397_v61, %v6093_v17  ;;  %v6549_v50 = vadd.f32 %v6548_v15, %v6518_v57  ;;  %v6520_v48 = vmax.f32 %v6488_v56, 0.0  ;;  %v6098_v59 = vadd.f32 %v8806_v24, %v11687_v0 }
 0x303   :  { %v6053_v45 = vpop.f32.mrf.mxu0  ;;  %v6410_v29 = vpop.f32.mrf.mxu1  ;;  %v6491_v13 = vadd.f32 %v11456_v39, %v6452_v3  ;;  %v6703_v3 = vld [vmem:[%s11626_s5 + $0x58] sm:$0xff] }
 0x304   :  { %v6489_v2 = vadd.f32 %v11456_v39, %v6450_v16  ;;  %v6096_v52 = vadd.f32 %v6053_v45, %v5739_v19  ;;  %v6550_v62 = vadd.f32 %v6549_v50, %v6519_v40  ;;  %v6455_v42 = vadd.f32 %v8840_v41, %v6098_v59  ;;  %v6705_v40 = vld [vmem:[%s11626_s5 + $0x68] sm:$0xff]  ;;  %v6704_v50 = vld [vmem:[%s11626_s5 + $0x60] sm:$0xff]  ;;  %v6702_v45 = vld [vmem:[%s11626_s5 + $0x50] sm:$0xff] }
 0x305   :  { %v8807_v43 = vpop.f32.mrf.mxu0  ;;  %v8841_v7 = vpop.f32.mrf.mxu1  ;;  %v6523_v11 = vmax.f32 %v6491_v13, 0.0  ;;  %v11690_v16 = vmov 0.0  }
 0x306   :  { %v6521_v60 = vmax.f32 %v6489_v2, 0.0  ;;  %v6453_v46 = vadd.f32 %v6410_v29, %v6096_v52  ;;  %v6551_v26 = vadd.f32 %v6550_v62, %v6520_v48  ;;  %v6099_v25 = vadd.f32 %v8807_v43, %v11689_v18  ;;  %8864 = vmatprep.subr.mxu1 %v11690_v16  ;;  %v6701_v29 = vld [vmem:[%s11626_s5 + $0x48] sm:$0xff]  ;;  %v6700_v2 = vld [vmem:[%s11626_s5 + $0x40] sm:$0xff]  ;;  %v6699_v52 = vld [vmem:[%s11626_s5 + $0x38] sm:$0xff] }
 0x307   :  { %v6056_v54 = vpop.f32.mrf.mxu0  ;;  %v6413_v31 = vpop.f32.mrf.mxu1  ;;  %v6494_v49 = vadd.f32 %v11456_v39, %v6455_v42  ;;  %8865 = vmatpush3.msra.mxu1 %v6706_v8  ;;  %v6697_v48 = vld [vmem:[%s11626_s5 + $0x28] sm:$0xff]  ;;  %v6696_v62 = vld [vmem:[%s11626_s5 + $0x20] sm:$0xff] }
 0x308   :  { %v6097_v38 = vadd.f32 %v6056_v54, %v5740_v53  ;;  %v6552_v6 = vadd.f32 %v6551_v26, %v6521_v60  ;;  %v6492_v32 = vadd.f32 %v11456_v39, %v6453_v46  ;;  %v6456_v55 = vadd.f32 %v8841_v7, %v6099_v25  ;;  %8866 = vmatprep.subr.mxu1 %v11690_v16  ;;  %v6695_v53 = vld [vmem:[%s11626_s5 + $0x18] sm:$0xff]  ;;  %v6694_v60 = vld [vmem:[%s11626_s5 + $0x10] sm:$0xff]  ;;  %v6693_v46 = vld [vmem:[%s11626_s5 + $0x8] sm:$0xff] }
 0x309   :  { %v6526_v5 = vmax.f32 %v6494_v49, 0.0  ;;  %8867 = vmatpush3.msra.mxu1 %v6705_v40  ;;  %v6692_v26 = vld [vmem:[%s11626_s5] sm:$0xff] }
 0x30a   :  { %v6454_v27 = vadd.f32 %v6413_v31, %v6097_v38  ;;  %v6553_v9 = vadd.f32 %v6552_v6, %v6522_v10  ;;  %v6524_v22 = vmax.f32 %v6492_v32, 0.0  ;;  %v6495_v63 = vadd.f32 %v11456_v39, %v6456_v55  ;;  %8868 = vmatprep.subr.mxu1 %v11690_v16 }
 0x30b   :  { %8869 = vmatpush3.msra.mxu1 %v6704_v50 }
 0x30c   :  { %v6493_v34 = vadd.f32 %v11456_v39, %v6454_v27  ;;  %v6554_v36 = vadd.f32 %v6553_v9, %v6523_v11  ;;  %v6527_v35 = vmax.f32 %v6495_v63, 0.0  ;;  %v7888_v39 = vld [vmem:[%s11625_s4] ss:$0 sm:$0xff]  ;;  %8870 = vmatprep.subr.mxu1 %v11690_v16 }
 0x30d   :  { %8871 = vmatpush3.msra.mxu1 %v6703_v3 }
 0x30e   :  { %v6525_v14 = vmax.f32 %v6493_v34, 0.0  ;;  %v6555_v21 = vadd.f32 %v6554_v36, %v6524_v22  ;;  %8872 = vmatprep.subr.mxu1 %v11690_v16 }
 0x30f   :  { %8873 = vmatpush3.msra.mxu1 %v6702_v45 }
 0x310   :  { %v6556_v37 = vadd.f32 %v6555_v21, %v6525_v14  ;;  %8874 = vmatprep.subr.mxu1 %v11690_v16 }
 0x311   :  { %8875 = vmatpush3.msra.mxu1 %v6701_v29 }
 0x312   :  { %v6557_v12 = vadd.f32 %v6556_v37, %v6526_v5  ;;  %8876 = vmatprep.subr.mxu1 %v11690_v16 }
 0x313   :  { %8877 = vmatpush3.msra.mxu1 %v6700_v2 }
 0x314   :  { %v6558_v30 = vadd.f32 %v6557_v12, %v6527_v35  ;;  %8878 = vmatprep.subr.mxu1 %v11690_v16 }
 0x315   :  { %8879 = vmatpush3.msra.mxu1 %v6699_v52 }
 0x316   :  { %v6559_v33 = vrot.slane %v6558_v30, 4  ;;  %8880 = vmatprep.subr.mxu1 %v11690_v16 }
 0x317   :  { %8881 = vmatpush3.msra.mxu1 %v6698_v23 }
 0x318   :  { %v6560_v4 = vadd.f32 %v6559_v33, %v6558_v30  ;;  %8882 = vmatprep.subr.mxu1 %v11690_v16 }
 0x319   :  { %8883 = vmatpush3.msra.mxu1 %v6697_v48 }
 0x31a   :  { %v6561_v28 = vrot.slane %v6560_v4, 2  ;;  %8884 = vmatprep.subr.mxu1 %v11690_v16 }
 0x31b   :  { %8885 = vmatpush3.msra.mxu1 %v6696_v62 }
 0x31c   :  { %v6562_v58 = vadd.f32 %v6561_v28, %v6560_v4  ;;  %8886 = vmatprep.subr.mxu1 %v11690_v16 }
 0x31d   :  { %8887 = vmatpush3.msra.mxu1 %v6695_v53 }
 0x31e   :  { %v6563_v61 = vrot.slane %v6562_v58, 1  ;;  %8888 = vmatprep.subr.mxu1 %v11690_v16 }
 0x31f   :  { %8889 = vmatpush3.msra.mxu1 %v6694_v60 }
 0x320   :  { %v6564_v17 = vadd.f32 %v6563_v61, %v6562_v58  ;;  %8890 = vmatprep.subr.mxu1 %v11690_v16 }
 0x321   :  { %8891 = vmatpush3.msra.mxu1 %v6693_v46 }
 0x322   :  { %v6565_v57 = vmul.f32 0.00390625, %v6564_v17  ;;  %8892 = vmatprep.subr.mxu1 %v11690_v16 }
 0x323   :  { %8893 = vmatpush3.msra.mxu1 %v6692_v26 }
 0x324   :  { %6566 = vst [vmem:[#allocation2 + $0x1] sm:$0x1] %v6565_v57 }
 0x32b   :  { %v6567_v15 = vld [vmem:[#allocation2] sm:$0x3] }
 0x32c   :  { %v6568_v51 = vpack.c.bf16 %v6567_v15, %v6567_v15 }
 0x32e   :  { %8859 = vmatmul.mubr.bf16.vlgmr.msra.gmra.mxu0 %v6568_v51 }
 0x3ee   :  { %v6674_v56 = vpop.f32.mrf.mxu0 }
 0x3ef   :  { %v6675_v24 = vadd.f32 %v7888_v39, %v6674_v56 }
 0x3f0   :  { %v8860_v41 = vpop.f32.mrf.mxu0 }
 0x3f1   :  { %v6680_v20 = vsel %vm229_vm1, %v6675_v24, -inf }
 0x3f2   :  { %6681 = vmax.xlane.f32.xlu0 %v6680_v20  ;;  %v6677_v19 = vpop.f32.mrf.mxu0 }
 0x3f4   :  { %v8861_v1 = vpop.f32.mrf.mxu0 }
 0x47b   :  { %v6682_v0 = vpop.xlane.xlu0 %6681 }
 0x47c   :  { %v6683_v59 = vsub.f32 %v6675_v24, %v6682_v0 }
 0x47e   :  { %v6684_v43 = vmul.f32 1.442695, %v6683_v59 }
 0x480   :  { %9198 = vpow2.f32 %v6684_v43 }
 0x48d   :  { %v9199_v7 = vpop.eup %9198 }
 0x48e   :  { %v6686_v47 = vsel %vm229_vm1, %v9199_v7, 0.0 }
 0x48f   :  { %6687 = vadd.xlane.f32.xlu0 %v6686_v47 }
 0x518   :  { %v6688_v13 = vpop.xlane.xlu0 %6687 }
 0x519   :  { %9200 = vrcp.f32 %v6688_v13 }
 0x526   :  { %v9201_v18 = vpop.eup %9200 }
 0x527   :  { %v6690_v25 = vmul.f32 %v9201_v18, %v9199_v7 }
 0x529   :  { %6691 = vst [vmem:[#allocation3] sm:$0x3] %v6690_v25  ;;  %8895 = vmatmul.mubr.f32.vlgmr.msra.gmra.mxu1 %v6690_v25 }
 0x52a   :  { %9213 = shalt.err (!%p9210_p4)
}
 0x52b   :  { %6795 = dma.vmem_to_hbm [thread:$0]  %s6793_s16, 32, %s11628_s7, [#allocation4]   ;;  %v7897_v54 = vld [vmem:[%s11627_s6] ss:$0 sm:$0xff] }
 0x52c   :  { %s9250_s19 = smov [#allocation5]  }
 0x52d   :  { %s6802_s20 = sshll.u32 %s9250_s19, 4  ;;  %s6803_s20 = int_to_ptr.vmem [resolvable:$true] %s6802_s20 }
 0x52e   :  { %s9222_s21 = scalar_lea.vmem %s6803_s20, 32  ;;  %p9227_p6 = scmp.lt.s32.totalorder %s6803_s20, %s6803_s20 }
 0x52f   :  { %p9223_p5 = scmp.ne.s32.totalorder %s6803_s20, %s9222_s21  ;;  %p9228_p7 = scmp.lt.s32.totalorder %s9222_s21, %s9222_s21 }
 0x531   :  { %p9229_p8 = por %p9228_p7, %p9227_p6 }
 0x533   :  { %p9230_p9 = pnand %p9229_p8, %p9223_p5 }
 0x5e9   :  { %v6781_v38 = vpop.f32.mrf.mxu1 }
 0x5ea   :  { %v6782_v10 = vadd.f32 %v7897_v54, %v6781_v38 }
 0x5eb   :  { %v8896_v6 = vpop.f32.mrf.mxu1 }
 0x5ec   :  { %6785 = vst [vmem:[#allocation5] sm:$0x3] %v6782_v10 }
 0x5ed   :  { %9233 = shalt.err (!%p9230_p9)
}
 0x5ee   :  { %6805 = dma.vmem_to_hbm [thread:$0]  %s6803_s20, 32, %s11629_s8, [#allocation6]  }
 0x5ef   :  { %9242 = dma.done.wait [#allocation4], 32  }
 0x5f0   :  { %9243 = vsyncadd [#allocation4], 4294967264 }
 0x5f1   :  { %9244 = dma.done.wait [#allocation6], 32  }
 0x5f2   :  { %9245 = vsyncadd [#allocation6], 4294967264 }
 0x5f3   :  { %6812 = vsyncpa [#allocation4], 1 }
 0x5f4   :  { %6813 = vsyncpa [#allocation6], 1 }

</bundles_post_ra>
